<compile_context>
chip_gen: v5e
topology: v5e:2x2
jax: 0.10.0
libtpu: 0.0.40
codegen_flags: <defaults>
</compile_context>

<pallas_src>
import jax
import jax.numpy as jnp
from jax.experimental import pallas as pl
from jax.experimental.pallas import tpu as pltpu

VMEM = pl.BlockSpec(memory_space=pltpu.MemorySpace.VMEM)
_VMEM_LIMIT = 32 * 1024 * 1024


# ---------------------------------------------------------------------------
# Kernel 1: fused feature-extractor stand-in + AdaptiveMaxPool2d((1, F))
#   grid over batch items; each step processes the `seq` groups of one batch
#   item (each group = bb person crops) and writes the per-group max features
#   to a time-major (seq, b*F) output slab.
# ---------------------------------------------------------------------------
def feat_pool_kernel(x_ref, w_ref, b_ref, o_ref):
    # x_ref: (seq, bb, CHW) f32   w_ref: (CHW, F) bf16   b_ref: (1, F) f32
    # o_ref: (seq, F) f32  -- column block of the (seq, b*F) time-major output
    w = w_ref[...]
    bias = b_ref[...]
    bb = x_ref.shape[1]
    acc = jnp.full(o_ref.shape, -jnp.inf, dtype=jnp.float32)
    for j in range(bb):                     # bb (persons per group) is small & static
        xj = x_ref[:, j, :].astype(jnp.bfloat16)                        # (seq, CHW)
        fj = jnp.dot(xj, w, preferred_element_type=jnp.float32) + bias  # (seq, F)
        acc = jnp.maximum(acc, fj)
    o_ref[...] = acc


def feat_pool(xg, w_rep, b_feat, *, batch, seq):
    # xg: (b*seq, bb, CHW) f32 (pure view of x, PyTorch flat order)
    bb, chw = xg.shape[1], xg.shape[2]
    f = w_rep.shape[1]
    return pl.pallas_call(
        feat_pool_kernel,
        out_shape=jax.ShapeDtypeStruct((seq, batch * f), jnp.float32),
        grid=(batch,),
        in_specs=[
            pl.BlockSpec((seq, bb, chw), lambda i: (i, 0, 0)),
            pl.BlockSpec((chw, f), lambda i: (0, 0)),
            pl.BlockSpec((1, f), lambda i: (0, 0)),
        ],
        out_specs=pl.BlockSpec((seq, f), lambda i: (0, i)),
        compiler_params=pltpu.CompilerParams(
            dimension_semantics=("parallel",),
            vmem_limit_bytes=_VMEM_LIMIT,
        ),
    )(xg, w_rep, b_feat)


# ---------------------------------------------------------------------------
# Kernel 2: LSTM over seq (last hidden) + FC head (BN folded into Linear)
#   Input projection (K=2048) hoisted out of the recurrence as one M=S*B matmul.
# ---------------------------------------------------------------------------
def lstm_fc_kernel(x_ref, wih_ref, whh_ref, bias_ref,
                   w1_ref, b1_ref, w2_ref, b2_ref, o_ref, gx_ref):
    # x_ref: (S*B, F) time-major.  Gate order i, f, g, o (PyTorch convention).
    sb = x_ref.shape[0]
    hdim = whh_ref.shape[0]
    bsz = o_ref.shape[0]
    steps = sb // bsz

    # Hoisted input projection: single big matmul, off the serial dependency chain.
    gx_ref[...] = (
        jnp.dot(x_ref[...].astype(jnp.bfloat16), wih_ref[...],
                preferred_element_type=jnp.float32)
        + bias_ref[...]
    )

    whh = whh_ref[...]

    def step(t, carry):
        h, c = carry
        g = gx_ref[pl.ds(t * bsz, bsz), :] + jnp.dot(
            h.astype(jnp.bfloat16), whh, preferred_element_type=jnp.float32)
        # NOTE: 32-lane gate slices; negligible here (see review) — a param-prep
        # gate-column reorder / H=128 padding would make these lane-aligned.
        i_g = jax.nn.sigmoid(g[:, 0 * hdim:1 * hdim])
        f_g = jax.nn.sigmoid(g[:, 1 * hdim:2 * hdim])
        g_g = jnp.tanh(g[:, 2 * hdim:3 * hdim])
        o_g = jax.nn.sigmoid(g[:, 3 * hdim:4 * hdim])
        c = f_g * c + i_g * g_g
        h = o_g * jnp.tanh(c)
        return h, c

    h0 = jnp.zeros((bsz, hdim), jnp.float32)
    c0 = jnp.zeros((bsz, hdim), jnp.float32)
    h, _ = jax.lax.fori_loop(0, steps, step, (h0, c0), unroll=True)

    # FC head: Linear(H,128) with BatchNorm1d (eval) pre-folded, ReLU,
    # Dropout(0.5) == identity in eval, Linear(128, nc_pad) (lane-dense, padded).
    z = jnp.dot(h, w1_ref[...], preferred_element_type=jnp.float32) + b1_ref[...]
    z = jnp.maximum(z, 0.0)
    o_ref[...] = jnp.dot(z, w2_ref[...], preferred_element_type=jnp.float32) + b2_ref[...]


def lstm_fc(x2d, params, *, batch):
    nc_pad = params["w2"].shape[1]
    sb = x2d.shape[0]
    gdim = params["w_ih"].shape[1]
    return pl.pallas_call(
        lstm_fc_kernel,
        out_shape=jax.ShapeDtypeStruct((batch, nc_pad), jnp.float32),
        in_specs=[VMEM] * 8,
        out_specs=VMEM,
        scratch_shapes=[pltpu.VMEM((sb, gdim), jnp.float32)],
        compiler_params=pltpu.CompilerParams(vmem_limit_bytes=_VMEM_LIMIT),
    )(x2d, params["w_ih"], params["w_hh"], params["bias"],
      params["w1"], params["b1"], params["w2"], params["b2"])


# ---------------------------------------------------------------------------
# Parameter preparation (one-time host/XLA work, outside the kernels)
# ---------------------------------------------------------------------------
def prepare_params(raw, *, h, w, num_classes):
    hw = h * w
    # Fold the spatial mean of the feature stand-in into the projection.
    # Row order (c, h, w) matches x.reshape(N, C*H*W) of NCHW input directly.
    w_rep = (jnp.repeat(raw["w_feat"], hw, axis=0) / float(hw)).astype(jnp.bfloat16)

    # LSTM weights in bf16 (MXU-native); biases pre-summed, kept f32.
    w_ih = raw["w_ih"].astype(jnp.bfloat16)
    w_hh = raw["w_hh"].astype(jnp.bfloat16)
    bias = (raw["b_ih"] + raw["b_hh"]).astype(jnp.float32)

    # Fold BatchNorm1d (eval, running stats, eps=1e-5) into Linear(H,128).
    scale = raw["gamma"] * jax.lax.rsqrt(raw["rvar"] + 1e-5)          # (1,128)
    w1 = (raw["w1"] * scale).astype(jnp.float32)
    b1 = ((raw["b1"] - raw["rmean"]) * scale + raw["beta"]).astype(jnp.float32)

    # Pad the classifier to a lane-dense multiple of 128; wrapper slices back.
    nc_pad = max(128, ((num_classes + 127) // 128) * 128)
    w2 = jnp.zeros((raw["w2"].shape[0], nc_pad), jnp.float32).at[:, :num_classes].set(raw["w2"])
    b2 = jnp.zeros((1, nc_pad), jnp.float32).at[:, :num_classes].set(raw["b2"])

    return {
        "w_rep": w_rep, "b_feat": raw["b_feat"].astype(jnp.float32),
        "w_ih": w_ih, "w_hh": w_hh, "bias": bias,
        "w1": w1, "b1": b1, "w2": w2, "b2": b2,
    }


# ---------------------------------------------------------------------------
# Full forward (pure-view reshapes in JAX, all compute in the two kernels)
# ---------------------------------------------------------------------------
def group_activity_forward(x, params, *, num_classes):
    b, bb, seq, c, h, w = x.shape
    f = params["w_rep"].shape[1]
    chw = c * h * w

    # Exactly PyTorch's view chain: flat (b, bb, seq) row order, then regroup
    # consecutive bb rows -> (b*seq, bb, C*H*W). Pure contiguous views, no transpose.
    xg = x.reshape(b * bb * seq, chw).reshape(b * seq, bb, chw)

    # Fused feature-extraction stand-in + AdaptiveMaxPool2d((1,F)) over bb,
    # written time-major: (seq, b*F).
    pooled_t = feat_pool(xg, params["w_rep"], params["b_feat"], batch=b, seq=seq)

    # (seq, b*F) -> (seq*b, F): contiguous view, time-major rows for the LSTM.
    x2d = pooled_t.reshape(seq * b, f)

    logits = lstm_fc(x2d, params, batch=b)          # (b, nc_pad)
    return logits[:, :num_classes]


if __name__ == "__main__":
    b, bb, seq, c, h, w = 2, 3, 8, 4, 8, 8
    F, H, NUM_CLASSES = 2048, 32, 8

    key = jax.random.PRNGKey(0)
    ks = jax.random.split(key, 11)

    def init(k, shape, scale=0.05):
        return (scale * jax.random.normal(k, shape)).astype(jnp.float32)

    raw = {
        "w_feat": init(ks[0], (c, F)),
        "b_feat": init(ks[1], (1, F)),
        "w_ih":   init(ks[2], (F, 4 * H)),
        "w_hh":   init(ks[3], (H, 4 * H)),
        "b_ih":   init(ks[4], (1, 4 * H)),
        "b_hh":   init(ks[5], (1, 4 * H)),
        "w1":     init(ks[6], (H, 128)),
        "b1":     init(ks[7], (1, 128)),
        "gamma":  jnp.ones((1, 128), jnp.float32),
        "beta":   jnp.zeros((1, 128), jnp.float32),
        "rmean":  jnp.zeros((1, 128), jnp.float32),
        "rvar":   jnp.ones((1, 128), jnp.float32),
        "w2":     init(ks[8], (128, NUM_CLASSES)),
        "b2":     init(ks[9], (1, NUM_CLASSES)),
    }
    params = prepare_params(raw, h=h, w=w, num_classes=NUM_CLASSES)

    x = jax.random.normal(ks[10], (b, bb, seq, c, h, w), jnp.float32)

    out = jax.block_until_ready(group_activity_forward(x, params, num_classes=NUM_CLASSES))
    assert out.shape == (b, NUM_CLASSES), out.shape
    assert bool(jnp.all(jnp.isfinite(out)))
    print("KERNEL_OK")
</pallas_src>

<mosaic_0001>
module attributes {stable_mosaic.version = 11 : i64} {
  func.func @feat_pool_kernel(%arg0: i32, %arg1: memref<8x3x256xf32, #tpu.memory_space<vmem>>, %arg2: memref<256x2048xbf16, #tpu.memory_space<vmem>>, %arg3: memref<1x2048xf32, #tpu.memory_space<vmem>>, %arg4: memref<8x2048xf32, #tpu.memory_space<vmem>>) attributes {dimension_semantics = [#tpu.dimension_semantics<parallel>], iteration_bounds = array<i64: 2>, scalar_prefetch = 0 : i64, scratch_operands = 0 : i64, tpu.core_type = #tpu.core_type<tc>, window_params = [{transform_indices = @transform_0, window_bounds = array<i64: 8, 3, 256>}, {pipeline_mode = #tpu.pipeline_mode<synchronous>, transform_indices = @transform_1, window_bounds = array<i64: 256, 2048>}, {pipeline_mode = #tpu.pipeline_mode<synchronous>, transform_indices = @transform_2, window_bounds = array<i64: 1, 2048>}, {transform_indices = @transform_3, window_bounds = array<i64: 8, 2048>}]} {
    %c0 = arith.constant 0 : index
    %c0_0 = arith.constant 0 : index
    %0 = vector.load %arg2[%c0, %c0_0] : memref<256x2048xbf16, #tpu.memory_space<vmem>>, vector<256x2048xbf16>
    %c0_1 = arith.constant 0 : index
    %c0_2 = arith.constant 0 : index
    %1 = vector.load %arg3[%c0_1, %c0_2] : memref<1x2048xf32, #tpu.memory_space<vmem>>, vector<1x2048xf32>
    %cst = arith.constant 0xFF800000 : f32
    %2 = vector.broadcast %cst : f32 to vector<8x2048xf32>
    %c0_3 = arith.constant 0 : index
    %c0_4 = arith.constant 0 : index
    %c0_5 = arith.constant 0 : index
    %3 = vector.load %arg1[%c0_3, %c0_4, %c0_5] : memref<8x3x256xf32, #tpu.memory_space<vmem>>, vector<8x1x256xf32>
    %4 = vector.shape_cast %3 : vector<8x1x256xf32> to vector<8x256xf32>
    %5 = arith.truncf %4 : vector<8x256xf32> to vector<8x256xbf16>
    %cst_6 = arith.constant dense<0.000000e+00> : vector<8x2048xf32>
    %6 = tpu.matmul %5, %0, %cst_6 {dimension_numbers = #tpu.dot_dimension_numbers<[1], [0], [0], [1], [0, 0, 1, 1], [], []>} : vector<8x256xbf16>, vector<256x2048xbf16>, vector<8x2048xf32> -> vector<8x2048xf32>
    %7 = vector.broadcast %1 : vector<1x2048xf32> to vector<8x2048xf32>
    %8 = arith.addf %6, %7 : vector<8x2048xf32>
    %9 = arith.maximumf %2, %8 : vector<8x2048xf32>
    %c0_7 = arith.constant 0 : index
    %c1 = arith.constant 1 : index
    %c0_8 = arith.constant 0 : index
    %10 = vector.load %arg1[%c0_7, %c1, %c0_8] : memref<8x3x256xf32, #tpu.memory_space<vmem>>, vector<8x1x256xf32>
    %11 = vector.shape_cast %10 : vector<8x1x256xf32> to vector<8x256xf32>
    %12 = arith.truncf %11 : vector<8x256xf32> to vector<8x256xbf16>
    %cst_9 = arith.constant dense<0.000000e+00> : vector<8x2048xf32>
    %13 = tpu.matmul %12, %0, %cst_9 {dimension_numbers = #tpu.dot_dimension_numbers<[1], [0], [0], [1], [0, 0, 1, 1], [], []>} : vector<8x256xbf16>, vector<256x2048xbf16>, vector<8x2048xf32> -> vector<8x2048xf32>
    %14 = vector.broadcast %1 : vector<1x2048xf32> to vector<8x2048xf32>
    %15 = arith.addf %13, %14 : vector<8x2048xf32>
    %16 = arith.maximumf %9, %15 : vector<8x2048xf32>
    %c0_10 = arith.constant 0 : index
    %c2 = arith.constant 2 : index
    %c0_11 = arith.constant 0 : index
    %17 = vector.load %arg1[%c0_10, %c2, %c0_11] : memref<8x3x256xf32, #tpu.memory_space<vmem>>, vector<8x1x256xf32>
    %18 = vector.shape_cast %17 : vector<8x1x256xf32> to vector<8x256xf32>
    %19 = arith.truncf %18 : vector<8x256xf32> to vector<8x256xbf16>
    %cst_12 = arith.constant dense<0.000000e+00> : vector<8x2048xf32>
    %20 = tpu.matmul %19, %0, %cst_12 {dimension_numbers = #tpu.dot_dimension_numbers<[1], [0], [0], [1], [0, 0, 1, 1], [], []>} : vector<8x256xbf16>, vector<256x2048xbf16>, vector<8x2048xf32> -> vector<8x2048xf32>
    %21 = vector.broadcast %1 : vector<1x2048xf32> to vector<8x2048xf32>
    %22 = arith.addf %20, %21 : vector<8x2048xf32>
    %23 = arith.maximumf %16, %22 : vector<8x2048xf32>
    %c0_13 = arith.constant 0 : index
    %c0_14 = arith.constant 0 : index
    %24 = vector.load %arg4[%c0_13, %c0_14] : memref<8x2048xf32, #tpu.memory_space<vmem>>, vector<8x2048xf32>
    tpu.vector_store %arg4[%c0_13, %c0_14], %23 {strides = array<i32>} : memref<8x2048xf32, #tpu.memory_space<vmem>>, vector<8x2048xf32>,
    return
  }
  func.func @transform_0(%arg0: i32) -> (i32, i32, i32) {
    %c0_i32 = arith.constant 0 : i32
    %c0_i32_0 = arith.constant 0 : i32
    %c0_i32_1 = arith.constant 0 : i32
    return %arg0, %c0_i32, %c0_i32_0 : i32, i32, i32
  }
  func.func @transform_1(%arg0: i32) -> (i32, i32) {
    %c0_i32 = arith.constant 0 : i32
    %c0_i32_0 = arith.constant 0 : i32
    %c0_i32_1 = arith.constant 0 : i32
    return %c0_i32, %c0_i32_0 : i32, i32
  }
  func.func @transform_2(%arg0: i32) -> (i32, i32) {
    %c0_i32 = arith.constant 0 : i32
    %c0_i32_0 = arith.constant 0 : i32
    %c0_i32_1 = arith.constant 0 : i32
    return %c0_i32, %c0_i32_0 : i32, i32
  }
  func.func @transform_3(%arg0: i32) -> (i32, i32) {
    %c0_i32 = arith.constant 0 : i32
    %c0_i32_0 = arith.constant 0 : i32
    return %c0_i32, %arg0 : i32, i32
  }
}

</mosaic_0001>

<bundles_post_ra>
// kernel: tpu_custom_call.1
= control target key start
LH: loop header
LB: loop body
LE: loop exit
PB: predicated region body
PF: predicated region fallthrough
CT: control target
= control target key end

     0   :  { %8 = vsyncpa [#allocation3], 0  ;;  %s6953_s0 = inlined_call_operand.vmem [shape: f32[16,3,256], index: 0, kind: input, shape index: {}]   ;;  %s6954_s1 = inlined_call_operand.hbm [shape: bf16[256,2048], index: 1, kind: input, shape index: {}]   ;;  %s6955_s2 = inlined_call_operand.vmem [shape: f32[1,2048], index: 2, kind: input, shape index: {}]   ;;  %s6956_s3 = inlined_call_operand.hbm [shape: f32[8,4096], index: 3, kind: output, shape index: {}]  }
   0x1   :  { %9 = vsyncpa [#allocation4], 0 }
   0x2   :  { %11 = vsyncpa [#allocation4 + $0x1], 0  ;;  %s5055_s12 = smov 0   ;;  %s5057_s13 = smov 0  }
   0x3   :  { %s5059_s14 = smov 0   ;;  %s5061_s15 = smov 0  }
   0x4 LB: > { %s5076_s16 = sadd.s32 4294967295, %s5030_s15   ;;  %s3562_s17 = sadd.s32 4294967294, %s5030_s15   ;;  %s5030_s15 = sphi %s5061_s15, %s8217_s15   ;;  %s5026_s14 = sphi %s5059_s14, %s8216_s14   ;;  %s5022_s13 = sphi %s5057_s13, %s8215_s13   ;;  %s5018_s12 = sphi %s5055_s12, %s8214_s12  }
   0x5   : > { %s5080_s18 = sadd.s32 1, %s5030_s15   ;;  %s92_s19 = sadd.s32 1, %s5026_s14 }
   0x6   : > { %s89_s20 = ssub.s32 %s5030_s15, %s5080_s18  ;;  %p102_p0 = scmp.ne.s32.totalorder %s5026_s14, %s5022_s13 }
   0x7   : > { %p90_p1 = scmp.eq.s32.totalorder %s89_s20, 0  ;;  %p103_p2 = scmp.eq.s32.totalorder %s5076_s16, 1 }
   0x8   : > { %p108_p3 = scmp.ne.s32.totalorder %s5022_s13, %s5018_s12  ;;  %p109_p4 = scmp.eq.s32.totalorder %s3562_s17, 1 }
   0x9   : > { %s5091_s21 = scalar_select %p90_p1, %s5026_s14, %s92_s19  }
   0xa   : > { %p5093_p5 = por %p103_p2, %p102_p0  ;;  %p5097_p6 = por %p109_p4, %p108_p3 }
   0xb   : > { %p3563_p7 = scmp.ge.s32.totalorder %s5030_s15, 1  ;;  %p116_p8 = scmp.lt.s32.totalorder %s5030_s15, 3 }
   0xc   : > { %p4896_p9 = scmp.eq.s32.totalorder %s5076_s16, 0  ;;  %s127_s26 = sshll.u32 %s6954_s1, 4  ;;  %s128_s26 = int_to_ptr.hbm [resolvable:$true] %s127_s26 }
   0xd   : > { %p117_p10 = pnand %p3563_p7, %p116_p8  ;;  %s5032_s27 = smov [#allocation2]  }
   0xe   : > { %s129_s28 = sshll.u32 %s5032_s27, 4  ;;  %s5033_s29 = smov 1024   ;;  %s130_s28 = int_to_ptr.vmem [resolvable:$true] %s129_s28 }
   0xf   : > { %p4888_p11 = pneg %p117_p10  ;;  %s5034_s30 = smov 64  }
  0x10   : > { %158 = sbr.rel (%p117_p10) target bundleno = 954 (0x3ba), region = 32 }
  0x11   : > { %p4889_p12 = pnand %p4896_p9, %p4888_p11 }
  0x13   : > { %4891 = dma.hbm_to_vmem [thread:$0]  (!%p4889_p12), %s128_s26, 32768, %s130_s28, [#allocation3], %s5033_s29, %s5033_s29, %s5034_s30  }
  0x15   : > { %5009 = dma.done.wait (%p4896_p9), [#allocation3], 32768  }
  0x16   : > { %5011 = vsyncadd (%p4896_p9), [#allocation3], 4294934528  ;;  %v4029_v0 = vld [vmem:[#allocation2 + $0x380] sm:$0xf]  ;;  %v4737_v5 = vld [vmem:[#allocation2 + $0x384] sm:$0xf] }
  0x17   : > { %v4745_v1 = vld [vmem:[#allocation2 + $0x3bc] sm:$0xf0]  ;;  %v4031_v6 = vld [vmem:[#allocation2 + $0x3c0] sm:$0xf0]  ;;  %s3569_s4 = sshll.u32 %s5076_s16, 3  ;;  %vm588_vm0 = vcmask 1041409  }
  0x18   : > { %v4541_v2 = vld [vmem:[#allocation2 + $0x780] sm:$0xf]  ;;  %v5113_v3 = vor.u32 %v4745_v1, %v4029_v0  ;;  %v5117_v8 = vor.u32 %v4737_v5, %v4031_v6  ;;  %v4865_v9 = vld [vmem:[#allocation2 + $0x784] sm:$0xf]  ;;  %p5175_p13 = scmp.lt.s32.totalorder %s3569_s4, 15  ;;  %vm591_vm1 = vcmask 1042434  }
  0x19   : > { %v4873_v4 = vld [vmem:[#allocation2 + $0x7bc] sm:$0xf0]  ;;  %v4543_v10 = vld [vmem:[#allocation2 + $0x7c0] sm:$0xf0]  ;;  %vm594_vm2 = vcmask 1043459   ;;  %vm597_vm3 = vcmask 1044484  }
  0x1a   : > { %7457 = vst [vmem:[#allocation8_spill] sm:$0xff] %v5113_v3  ;;  %v5115_v7 = vor.u32 %v4873_v4, %v4541_v2  ;;  %v3965_v11 = vld [vmem:[#allocation2 + $0x300] sm:$0xf]  ;;  %1906 = vmatpush.bf16.msra.mxu0 %v5113_v3  ;;  %v5120_v12 = vor.u32 %v4865_v9, %v4543_v10  ;;  %1932 = vmatpush.bf16.msra.mxu2 %v5117_v8  ;;  %v4721_v18 = vld [vmem:[#allocation2 + $0x304] sm:$0xf]  ;;  %s8219_s4 = smov (!%p5175_p13, %s3569_s4), 15 }
  0x1b   : > { %v4729_v13 = vld [vmem:[#allocation2 + $0x33c] sm:$0xf0]  ;;  %v3967_v19 = vld [vmem:[#allocation2 + $0x340] sm:$0xf0]  ;;  %s4624_s6 = sshll.u32 %s8219_s4, 3  ;;  %vm600_vm4 = vcmask 1045509  }
  0x1c   : > { %v4477_v14 = vld [vmem:[#allocation2 + $0x700] sm:$0xf]  ;;  %1919 = vmatpush.bf16.msra.mxu1 %v5115_v7  ;;  %v5124_v16 = vor.u32 %v4729_v13, %v3965_v11  ;;  %v4849_v20 = vld [vmem:[#allocation2 + $0x704] sm:$0xf]  ;;  %1945 = vmatpush.bf16.msra.mxu3 %v5120_v12  ;;  %v5129_v21 = vor.u32 %v4721_v18, %v3967_v19  ;;  %s5248_s9 = scalar_lea.vmem %s6953_s0, %s4624_s6  ;;  %vm603_vm5 = vcmask 1046534   ;;  %vm606_vm6 = vcmask 1047559  }
  0x1d   : > { %v4857_v15 = vld [vmem:[#allocation2 + $0x73c] sm:$0xf0]  ;;  %v4479_v22 = vld [vmem:[#allocation2 + $0x740] sm:$0xf0]  ;;  %s181_s20 = sand.u32 1, %s5022_s13   ;;  %s4881_s26 = sshll.u32 %s5076_s16, 7 }
  0x1e   : > { %7458 = vst [vmem:[#allocation9_spill] sm:$0xff] %v5124_v16  ;;  %v5126_v17 = vor.u32 %v4857_v15, %v4477_v14  ;;  %v3901_v23 = vld [vmem:[#allocation2 + $0x280] sm:$0xf]  ;;  %v5131_v25 = vor.u32 %v4849_v20, %v4479_v22  ;;  %v4705_v28 = vld [vmem:[#allocation2 + $0x284] sm:$0xf]  ;;  %1907 = vmatpush.bf16.msra.mxu0 %v5124_v16  ;;  %1933 = vmatpush.bf16.msra.mxu2 %v5129_v21  ;;  %s3568_s24 = sshll.u32 %s181_s20, 7  ;;  %s3486_s29 = scalar_lea.hbm %s6956_s3, %s4881_s26 }
  0x1f   : > { %v4713_v24 = vld [vmem:[#allocation2 + $0x2bc] sm:$0xf0]  ;;  %v3903_v30 = vld [vmem:[#allocation2 + $0x2c0] sm:$0xf0]  ;;  %s6749_s25 = scalar_lea.vmem [#allocation5], %s3568_s24  ;;  %s3490_s4 = sshll.u32 %s3486_s29, 4  ;;  %s3491_s4 = int_to_ptr.hbm [resolvable:$true] %s3490_s4 }
  0x20   : > { %v4413_v26 = vld [vmem:[#allocation2 + $0x680] sm:$0xf]  ;;  %v5134_v29 = vor.u32 %v4713_v24, %v3901_v23  ;;  %v4833_v31 = vld [vmem:[#allocation2 + $0x684] sm:$0xf]  ;;  %1920 = vmatpush.bf16.msra.mxu1 %v5126_v17  ;;  %v5140_v34 = vor.u32 %v4705_v28, %v3903_v30  ;;  %1946 = vmatpush.bf16.msra.mxu3 %v5131_v25  ;;  %s3488_s30 = sshll.u32 %s6749_s25, 4  ;;  %s3475_s16 = scalar_lea.sflag [#allocation4], %s181_s20  ;;  %s3489_s30 = int_to_ptr.vmem [resolvable:$true] %s3488_s30 }
  0x21   : > { %v4841_v27 = vld [vmem:[#allocation2 + $0x6bc] sm:$0xf0]  ;;  %v4415_v32 = vld [vmem:[#allocation2 + $0x6c0] sm:$0xf0]  ;;  %s4978_s5 = sshra.s32 %s3491_s4, 4  ;;  %s4979_s5 = int_to_ptr.hbm [resolvable:$true] %s4978_s5 }
  0x22   : > { %v5138_v33 = vor.u32 %v4841_v27, %v4413_v26  ;;  %v3837_v35 = vld [vmem:[#allocation2 + $0x200] sm:$0xf]  ;;  %v5143_v38 = vor.u32 %v4833_v31, %v4415_v32  ;;  %v4689_v40 = vld [vmem:[#allocation2 + $0x204] sm:$0xf]  ;;  %1908 = vmatpush.bf16.msra.mxu0 %v5134_v29  ;;  %1934 = vmatpush.bf16.msra.mxu2 %v5140_v34  ;;  %s4980_s6 = scalar_lea.hbm %s4979_s5, 128  ;;  %p4985_p3 = scmp.lt.s32.totalorder %s4979_s5, %s6956_s3 }
  0x23   : > { %v4697_v36 = vld [vmem:[#allocation2 + $0x23c] sm:$0xf0]  ;;  %v3839_v41 = vld [vmem:[#allocation2 + $0x240] sm:$0xf0]  ;;  %p4981_p0 = scmp.ne.s32.totalorder %s4979_s5, %s4980_s6 }
  0x24   : > { %v4349_v37 = vld [vmem:[#allocation2 + $0x600] sm:$0xf]  ;;  %v4817_v42 = vld [vmem:[#allocation2 + $0x604] sm:$0xf]  ;;  %v5146_v44 = vor.u32 %v4697_v36, %v3837_v35  ;;  %1921 = vmatpush.bf16.msra.mxu1 %v5138_v33  ;;  %v5152_v46 = vor.u32 %v4689_v40, %v3839_v41  ;;  %1947 = vmatpush.bf16.msra.mxu3 %v5143_v38  ;;  %v4037_v40 = vld [vmem:[#allocation2 + $0x388] sm:$0xf] }
  0x25   : > { %v4825_v39 = vld [vmem:[#allocation2 + $0x63c] sm:$0xf0]  ;;  %v4351_v43 = vld [vmem:[#allocation2 + $0x640] sm:$0xf0]  ;;  %v4746_v41 = vld [vmem:[#allocation2 + $0x3c4] sm:$0xf0]  ;;  %p4982_p1 = pnand %p4981_p0, %p5093_p5 }
  0x26   : > { %v5150_v45 = vor.u32 %v4825_v39, %v4349_v37  ;;  %v3773_v47 = vld [vmem:[#allocation2 + $0x180] sm:$0xf]  ;;  %v5155_v50 = vor.u32 %v4817_v42, %v4351_v43  ;;  %v4673_v52 = vld [vmem:[#allocation2 + $0x184] sm:$0xf]  ;;  %1909 = vmatpush.bf16.msra.mxu0 %v5146_v44  ;;  %1935 = vmatpush.bf16.msra.mxu2 %v5152_v46  ;;  %v4549_v42 = vld [vmem:[#allocation2 + $0x788] sm:$0xf] }
  0x27   : > { %v4681_v48 = vld [vmem:[#allocation2 + $0x1bc] sm:$0xf0]  ;;  %v3775_v53 = vld [vmem:[#allocation2 + $0x1c0] sm:$0xf0]  ;;  %p4983_p2 = pneg %p4982_p1 }
  0x28   : > { %v4285_v49 = vld [vmem:[#allocation2 + $0x580] sm:$0xf]  ;;  %v4801_v54 = vld [vmem:[#allocation2 + $0x584] sm:$0xf]  ;;  %v5158_v56 = vor.u32 %v4681_v48, %v3773_v47  ;;  %1922 = vmatpush.bf16.msra.mxu1 %v5150_v45  ;;  %v5165_v58 = vor.u32 %v4673_v52, %v3775_v53  ;;  %1948 = vmatpush.bf16.msra.mxu3 %v5155_v50  ;;  %v4874_v47 = vld [vmem:[#allocation2 + $0x7c4] sm:$0xf0] }
  0x29   : > { %v4809_v51 = vld [vmem:[#allocation2 + $0x5bc] sm:$0xf0]  ;;  %v4287_v55 = vld [vmem:[#allocation2 + $0x5c0] sm:$0xf0]  ;;  %v4738_v48 = vld [vmem:[#allocation2 + $0x38c] sm:$0xf] }
  0x2a   : > { %v5163_v57 = vor.u32 %v4809_v51, %v4285_v49  ;;  %v3709_v59 = vld [vmem:[#allocation2 + $0x100] sm:$0xf]  ;;  %v5168_v62 = vor.u32 %v4801_v54, %v4287_v55  ;;  %v4657_v0 = vld [vmem:[#allocation2 + $0x104] sm:$0xf]  ;;  %1910 = vmatpush.bf16.msra.mxu0 %v5158_v56  ;;  %1936 = vmatpush.bf16.msra.mxu2 %v5165_v58  ;;  %v4039_v49 = vld [vmem:[#allocation2 + $0x3c8] sm:$0xf0] }
  0x2b   : > { %v4665_v60 = vld [vmem:[#allocation2 + $0x13c] sm:$0xf0]  ;;  %v3711_v1 = vld [vmem:[#allocation2 + $0x140] sm:$0xf0]  ;;  %v4866_v53 = vld [vmem:[#allocation2 + $0x78c] sm:$0xf] }
  0x2c   : > { %v4221_v61 = vld [vmem:[#allocation2 + $0x500] sm:$0xf]  ;;  %v4785_v2 = vld [vmem:[#allocation2 + $0x504] sm:$0xf]  ;;  %v5171_v5 = vor.u32 %v4665_v60, %v3709_v59  ;;  %1923 = vmatpush.bf16.msra.mxu1 %v5163_v57  ;;  %v5183_v9 = vor.u32 %v4657_v0, %v3711_v1  ;;  %1949 = vmatpush.bf16.msra.mxu3 %v5168_v62  ;;  %v4551_v54 = vld [vmem:[#allocation2 + $0x7c8] sm:$0xf0]  ;;  %v5218_v59 = vor.u32 %v4746_v41, %v4037_v40 }
  0x2d   : > { %v4793_v63 = vld [vmem:[#allocation2 + $0x53c] sm:$0xf0]  ;;  %v4223_v4 = vld [vmem:[#allocation2 + $0x540] sm:$0xf0]  ;;  %v3973_v60 = vld [vmem:[#allocation2 + $0x308] sm:$0xf]  ;;  %v5223_v0 = vor.u32 %v4738_v48, %v4039_v49 }
  0x2e   : > { %v5181_v6 = vor.u32 %v4793_v63, %v4221_v61  ;;  %v3645_v10 = vld [vmem:[#allocation2 + $0x80] sm:$0xf]  ;;  %v5186_v14 = vor.u32 %v4785_v2, %v4223_v4  ;;  %v4641_v18 = vld [vmem:[#allocation2 + $0x84] sm:$0xf]  ;;  %1911 = vmatpush.bf16.msra.mxu0 %v5171_v5  ;;  %1937 = vmatpush.bf16.msra.mxu2 %v5183_v9  ;;  %7470 = vst [vmem:[#allocation20_spill] sm:$0xff] %v5218_v59 }
  0x2f   : > { %v4649_v11 = vld [vmem:[#allocation2 + $0xbc] sm:$0xf0]  ;;  %v3647_v19 = vld [vmem:[#allocation2 + $0xc0] sm:$0xf0]  ;;  %v4730_v61 = vld [vmem:[#allocation2 + $0x344] sm:$0xf0]  ;;  %v5221_v63 = vor.u32 %v4874_v47, %v4549_v42 }
  0x30   : > { %7460 = vst [vmem:[#allocation10_spill] sm:$0xff] %v5181_v6  ;;  %v4157_v13 = vld [vmem:[#allocation2 + $0x480] sm:$0xf]  ;;  %v4769_v20 = vld [vmem:[#allocation2 + $0x484] sm:$0xf]  ;;  %v5189_v23 = vor.u32 %v4649_v11, %v3645_v10  ;;  %1924 = vmatpush.bf16.msra.mxu1 %v5181_v6  ;;  %v5201_v28 = vor.u32 %v4641_v18, %v3647_v19  ;;  %1950 = vmatpush.bf16.msra.mxu3 %v5186_v14 }
  0x31   : > { %7461 = vst [vmem:[#allocation11_spill] sm:$0xff] %v5186_v14  ;;  %v4777_v15 = vld [vmem:[#allocation2 + $0x4bc] sm:$0xf0]  ;;  %v4159_v22 = vld [vmem:[#allocation2 + $0x4c0] sm:$0xf0]  ;;  %v5226_v10 = vor.u32 %v4866_v53, %v4551_v54 }
  0x32   : > { %7462 = vst [vmem:[#allocation12_spill] sm:$0xff] %v5189_v23  ;;  %v3581_v24 = vld [vmem:[#allocation2] sm:$0xf]  ;;  %v5199_v27 = vor.u32 %v4777_v15, %v4157_v13  ;;  %v4625_v32 = vld [vmem:[#allocation2 + $0x4] sm:$0xf]  ;;  %v5204_v35 = vor.u32 %v4769_v20, %v4159_v22  ;;  %1912 = vmatpush.bf16.msra.mxu0 %v5189_v23  ;;  %1938 = vmatpush.bf16.msra.mxu2 %v5201_v28 }
  0x33   : > { %v4633_v26 = vld [vmem:[#allocation2 + $0x3c] sm:$0xf0]  ;;  %7464 = vst [vmem:[#allocation14_spill] sm:$0xff] %v5201_v28  ;;  %v3583_v36 = vld [vmem:[#allocation2 + $0x40] sm:$0xf0] }
  0x34   : > { %7463 = vst [vmem:[#allocation13_spill] sm:$0xff] %v5199_v27  ;;  %v4093_v30 = vld [vmem:[#allocation2 + $0x400] sm:$0xf]  ;;  %v4753_v37 = vld [vmem:[#allocation2 + $0x404] sm:$0xf]  ;;  %v5207_v43 = vor.u32 %v4633_v26, %v3581_v24  ;;  %1925 = vmatpush.bf16.msra.mxu1 %v5199_v27  ;;  %v5213_v52 = vor.u32 %v4625_v32, %v3583_v36  ;;  %1951 = vmatpush.bf16.msra.mxu3 %v5204_v35 }
  0x35   : > { %v4761_v31 = vld [vmem:[#allocation2 + $0x43c] sm:$0xf0]  ;;  %7465 = vst [vmem:[#allocation15_spill] sm:$0xff] %v5204_v35  ;;  %v4095_v39 = vld [vmem:[#allocation2 + $0x440] sm:$0xf0]  ;;  %v5232_v32 = vor.u32 %v4730_v61, %v3973_v60 }
  0x36   : > { %7466 = vst [vmem:[#allocation16_spill] sm:$0xff] %v5207_v43  ;;  %v5211_v51 = vor.u32 %v4761_v31, %v4093_v30  ;;  %v5216_v55 = vor.u32 %v4753_v37, %v4095_v39  ;;  %v4485_v1 = vld [vmem:[#allocation2 + $0x708] sm:$0xf]  ;;  %v4722_v4 = vld [vmem:[#allocation2 + $0x30c] sm:$0xf]  ;;  %1913 = vmatpush.bf16.msra.mxu0 %v5207_v43  ;;  %1939 = vmatpush.bf16.msra.mxu2 %v5213_v52 }
  0x37   : > { %7468 = vst [vmem:[#allocation18_spill] sm:$0xff] %v5213_v52  ;;  %v4858_v2 = vld [vmem:[#allocation2 + $0x744] sm:$0xf0]  ;;  %v3975_v11 = vld [vmem:[#allocation2 + $0x348] sm:$0xf0] }
  0x38   : > { %7467 = vst [vmem:[#allocation17_spill] sm:$0xff] %v5211_v51  ;;  %v4850_v13 = vld [vmem:[#allocation2 + $0x70c] sm:$0xf]  ;;  %1926 = vmatpush.bf16.msra.mxu1 %v5211_v51  ;;  %v3909_v18 = vld [vmem:[#allocation2 + $0x288] sm:$0xf]  ;;  %1952 = vmatpush.bf16.msra.mxu3 %v5216_v55  ;;  %v5236_v47 = vor.u32 %v4858_v2, %v4485_v1  ;;  %v5238_v48 = vor.u32 %v4722_v4, %v3975_v11 }
  0x39   : > { %7469 = vst [vmem:[#allocation19_spill] sm:$0xff] %v5216_v55  ;;  %v4487_v15 = vld [vmem:[#allocation2 + $0x748] sm:$0xf0]  ;;  %v4714_v19 = vld [vmem:[#allocation2 + $0x2c4] sm:$0xf0] }
  0x3a   : > { %7471 = vst [vmem:[#allocation21_spill] sm:$0xff] %v5221_v63  ;;  %v4421_v20 = vld [vmem:[#allocation2 + $0x688] sm:$0xf]  ;;  %v4706_v24 = vld [vmem:[#allocation2 + $0x28c] sm:$0xf]  ;;  %1958 = vmatpush.bf16.msrb.mxu0 %v5218_v59  ;;  %1984 = vmatpush.bf16.msrb.mxu2 %v5223_v0  ;;  %v5241_v35 = vor.u32 %v4850_v13, %v4487_v15  ;;  %v5251_v13 = vor.u32 %v4714_v19, %v3909_v18 }
  0x3b   : > { %7472 = vst [vmem:[#allocation22_spill] sm:$0xff] %v5223_v0  ;;  %v4842_v22 = vld [vmem:[#allocation2 + $0x6c4] sm:$0xf0]  ;;  %v3911_v26 = vld [vmem:[#allocation2 + $0x2c8] sm:$0xf0] }
  0x3c   : > { %7473 = vst [vmem:[#allocation23_spill] sm:$0xff] %v5226_v10  ;;  %v4834_v30 = vld [vmem:[#allocation2 + $0x68c] sm:$0xf]  ;;  %v3845_v36 = vld [vmem:[#allocation2 + $0x208] sm:$0xf]  ;;  %1971 = vmatpush.bf16.msrb.mxu1 %v5221_v63  ;;  %1997 = vmatpush.bf16.msrb.mxu3 %v5226_v10  ;;  %v5253_v15 = vor.u32 %v4842_v22, %v4421_v20  ;;  %v5255_v43 = vor.u32 %v4706_v24, %v3911_v26 }
  0x3d   : > { %v4423_v31 = vld [vmem:[#allocation2 + $0x6c8] sm:$0xf0]  ;;  %7474 = vst [vmem:[#allocation24_spill] sm:$0xff] %v5232_v32  ;;  %v4698_v37 = vld [vmem:[#allocation2 + $0x244] sm:$0xf0] }
  0x3e   : > { %v4357_v39 = vld [vmem:[#allocation2 + $0x608] sm:$0xf]  ;;  %v4690_v41 = vld [vmem:[#allocation2 + $0x20c] sm:$0xf]  ;;  %7475 = vst [vmem:[#allocation25_spill] sm:$0xff] %v5236_v47  ;;  %1959 = vmatpush.bf16.msrb.mxu0 %v5232_v32  ;;  %v5257_v28 = vor.u32 %v4834_v30, %v4423_v31  ;;  %1985 = vmatpush.bf16.msrb.mxu2 %v5238_v48  ;;  %v5264_v23 = vor.u32 %v4698_v37, %v3845_v36 }
  0x3f   : > { %v4826_v40 = vld [vmem:[#allocation2 + $0x644] sm:$0xf0]  ;;  %v3847_v42 = vld [vmem:[#allocation2 + $0x248] sm:$0xf0]  ;;  %7476 = vst [vmem:[#allocation26_spill] sm:$0xff] %v5238_v48 }
  0x40   : > { %v4818_v49 = vld [vmem:[#allocation2 + $0x60c] sm:$0xf]  ;;  %v3781_v54 = vld [vmem:[#allocation2 + $0x188] sm:$0xf]  ;;  %7477 = vst [vmem:[#allocation27_spill] sm:$0xff] %v5241_v35  ;;  %1972 = vmatpush.bf16.msrb.mxu1 %v5236_v47  ;;  %v5266_v32 = vor.u32 %v4826_v40, %v4357_v39  ;;  %v5268_v18 = vor.u32 %v4690_v41, %v3847_v42  ;;  %1998 = vmatpush.bf16.msrb.mxu3 %v5241_v35 }
  0x41   : > { %v4359_v53 = vld [vmem:[#allocation2 + $0x648] sm:$0xf0]  ;;  %v4682_v60 = vld [vmem:[#allocation2 + $0x1c4] sm:$0xf0]  ;;  %7478 = vst [vmem:[#allocation28_spill] sm:$0xff] %v5251_v13 }
  0x42   : > { %v4293_v61 = vld [vmem:[#allocation2 + $0x588] sm:$0xf]  ;;  %v4674_v51 = vld [vmem:[#allocation2 + $0x18c] sm:$0xf]  ;;  %7479 = vst [vmem:[#allocation29_spill] sm:$0xff] %v5253_v15  ;;  %v5277_v22 = vor.u32 %v4818_v49, %v4359_v53  ;;  %v5279_v24 = vor.u32 %v4682_v60, %v3781_v54  ;;  %1960 = vmatpush.bf16.msrb.mxu0 %v5251_v13  ;;  %1986 = vmatpush.bf16.msrb.mxu2 %v5255_v43 }
  0x43   : > { %v4810_v55 = vld [vmem:[#allocation2 + $0x5c4] sm:$0xf0]  ;;  %v3783_v52 = vld [vmem:[#allocation2 + $0x1c8] sm:$0xf0]  ;;  %7480 = vst [vmem:[#allocation30_spill] sm:$0xff] %v5255_v43 }
  0x44   : > { %v4802_v63 = vld [vmem:[#allocation2 + $0x58c] sm:$0xf]  ;;  %v3717_v0 = vld [vmem:[#allocation2 + $0x108] sm:$0xf]  ;;  %7481 = vst [vmem:[#allocation31_spill] sm:$0xff] %v5257_v28  ;;  %v5281_v26 = vor.u32 %v4810_v55, %v4293_v61  ;;  %v5283_v30 = vor.u32 %v4674_v51, %v3783_v52  ;;  %1973 = vmatpush.bf16.msrb.mxu1 %v5253_v15  ;;  %1999 = vmatpush.bf16.msrb.mxu3 %v5257_v28 }
  0x45   : > { %v4295_v27 = vld [vmem:[#allocation2 + $0x5c8] sm:$0xf0]  ;;  %v4666_v1 = vld [vmem:[#allocation2 + $0x144] sm:$0xf0]  ;;  %7482 = vst [vmem:[#allocation32_spill] sm:$0xff] %v5264_v23 }
  0x46   : > { %v4229_v2 = vld [vmem:[#allocation2 + $0x508] sm:$0xf]  ;;  %v4658_v11 = vld [vmem:[#allocation2 + $0x10c] sm:$0xf]  ;;  %7483 = vst [vmem:[#allocation33_spill] sm:$0xff] %v5266_v32  ;;  %v5291_v37 = vor.u32 %v4802_v63, %v4295_v27  ;;  %v5293_v39 = vor.u32 %v4666_v1, %v3717_v0  ;;  %1961 = vmatpush.bf16.msrb.mxu0 %v5264_v23  ;;  %1987 = vmatpush.bf16.msrb.mxu2 %v5268_v18 }
  0x47   : > { %v4794_v4 = vld [vmem:[#allocation2 + $0x544] sm:$0xf0]  ;;  %v3719_v59 = vld [vmem:[#allocation2 + $0x148] sm:$0xf0]  ;;  %7484 = vst [vmem:[#allocation34_spill] sm:$0xff] %v5268_v18 }
  0x48   : > { %v4786_v10 = vld [vmem:[#allocation2 + $0x50c] sm:$0xf]  ;;  %v5260_v6 = vld [vmem:[%s5248_s9] ss:$4 sm:$0x3]  ;;  %7485 = vst [vmem:[#allocation35_spill] sm:$0xff] %v5277_v22  ;;  %v5295_v40 = vor.u32 %v4794_v4, %v4229_v2  ;;  %v5297_v41 = vor.u32 %v4658_v11, %v3719_v59  ;;  %1974 = vmatpush.bf16.msrb.mxu1 %v5266_v32  ;;  %2000 = vmatpush.bf16.msrb.mxu3 %v5277_v22 }
  0x49   : > { %v4231_v14 = vld [vmem:[#allocation2 + $0x548] sm:$0xf0]  ;;  %v5274_v20 = vld [vmem:[%s5248_s9 + $0x10] ss:$4 sm:$0x3]  ;;  %7486 = vst [vmem:[#allocation36_spill] sm:$0xff] %v5279_v24 }
  0x4a   : > { %v5271_v19 = vld [vmem:[%s5248_s9 + $0x8] ss:$4 sm:$0x3]  ;;  %7487 = vst [vmem:[#allocation37_spill] sm:$0xff] %v5281_v26  ;;  %v5306_v51 = vor.u32 %v4786_v10, %v4231_v14  ;;  %v473_v55 = vperm.slane %v5260_v6, 0  ;;  %v477_v63 = vperm.slane %v5274_v20, 0  ;;  %1962 = vmatpush.bf16.msrb.mxu0 %v5279_v24  ;;  %1988 = vmatpush.bf16.msrb.mxu2 %v5283_v30 }
  0x4b   : > { %7488 = vst [vmem:[#allocation38_spill] sm:$0xff] %v5283_v30  ;;  %v5286_v31 = vld [vmem:[%s5248_s9 + $0x18] ss:$4 sm:$0x3]  ;;  %v475_v27 = vperm.slane %v5271_v19, 0 }
  0x4c   : > { %v5289_v36 = vld [vmem:[%s5248_s9 + $0x20] ss:$4 sm:$0x3]  ;;  %7489 = vst [vmem:[#allocation39_spill] sm:$0xff] %v5291_v37  ;;  %v479_v59 = vperm.slane %v5286_v31, 0  ;;  %v505_v54 = vpack.c.bf16 %v473_v55, %v473_v55  ;;  %v509_v61 = vpack.c.bf16 %v477_v63, %v477_v63  ;;  %1975 = vmatpush.bf16.msrb.mxu1 %v5281_v26  ;;  %2001 = vmatpush.bf16.msrb.mxu3 %v5291_v37 }
  0x4d   : > { %7490 = vst [vmem:[#allocation40_spill] sm:$0xff] %v5293_v39  ;;  %v5300_v42 = vld [vmem:[%s5248_s9 + $0x28] ss:$4 sm:$0x3]  ;;  %v481_v0 = vperm.slane %v5289_v36, 0  ;;  %v507_v60 = vpack.c.bf16 %v475_v27, %v475_v27 }
  0x4e   : > { %7491 = vst [vmem:[#allocation41_spill] sm:$0xff] %v5295_v40  ;;  %v5303_v49 = vld [vmem:[%s5248_s9 + $0x30] ss:$4 sm:$0x3]  ;;  %v483_v53 = vperm.slane %v5300_v42, 0  ;;  %v511_v1 = vpack.c.bf16 %v479_v59, %v479_v59  ;;  %v571_v43 = vunpack.c.l.b16 %v505_v54  ;;  %v575_v47 = vunpack.c.l.b16 %v509_v61  ;;  %1963 = vmatpush.bf16.msrb.mxu0 %v5293_v39  ;;  %1989 = vmatpush.bf16.msrb.mxu2 %v5297_v41 }
  0x4f   : > { %7492 = vst [vmem:[#allocation42_spill] sm:$0xff] %v5297_v41  ;;  %v5309_v52 = vld [vmem:[%s5248_s9 + $0x38] ss:$4 sm:$0x3]  ;;  %v485_v14 = vperm.slane %v5303_v49, 0  ;;  %v513_v2 = vpack.c.bf16 %v481_v0, %v481_v0  ;;  %v573_v35 = vunpack.c.l.b16 %v507_v60  ;;  %v480_v60 = vperm.slane %v5286_v31, 1 }
  0x50   : > { %7493 = vst [vmem:[#allocation43_spill] sm:$0xff] %v5306_v51  ;;  %v487_v10 = vperm.slane %v5309_v52, 0  ;;  %v515_v4 = vpack.c.bf16 %v483_v53, %v483_v53  ;;  %v577_v28 = vunpack.c.l.b16 %v511_v1  ;;  %v590_v59 = vrot.slane %v575_v47, 6  ;;  %1976 = vmatpush.bf16.msrb.mxu1 %v5295_v40  ;;  %2002 = vmatpush.bf16.msrb.mxu3 %v5306_v51 }
  0x51   : > { %v517_v11 = vpack.c.bf16 %v485_v14, %v485_v14  ;;  %v579_v13 = vunpack.c.l.b16 %v513_v2  ;;  %v587_v63 = vrot.slane %v573_v35, 7  ;;  %v474_v47 = vperm.slane %v5260_v6, 1 }
  0x52   : > { %v519_v15 = vpack.c.bf16 %v487_v10, %v487_v10  ;;  %v581_v48 = vunpack.c.l.b16 %v515_v4  ;;  %v593_v0 = vrot.slane %v577_v28, 5  ;;  %v482_v61 = vperm.slane %v5289_v36, 1  ;;  %v3653_v36 = vld [vmem:[#allocation2 + $0x88] sm:$0xf] }
  0x53   : > { %v583_v55 = vunpack.c.l.b16 %v517_v11  ;;  %v596_v53 = vrot.slane %v579_v13, 4  ;;  %v589_v14 = vsel %vm588_vm0, %v587_v63, %v571_v43  ;;  %v476_v43 = vperm.slane %v5271_v19, 1 }
  0x54   : > { %v585_v27 = vunpack.c.l.b16 %v519_v15  ;;  %v599_v10 = vrot.slane %v581_v48, 3  ;;  %v592_v15 = vsel %vm591_vm1, %v590_v59, %v589_v14  ;;  %v478_v48 = vperm.slane %v5274_v20, 1  ;;  %v4165_v59 = vld [vmem:[#allocation2 + $0x488] sm:$0xf] }
  0x55   : > { %v602_v54 = vrot.slane %v583_v55, 2  ;;  %v595_v28 = vsel %vm594_vm2, %v593_v0, %v592_v15  ;;  %v484_v1 = vperm.slane %v5300_v42, 1  ;;  %v486_v4 = vperm.slane %v5303_v49, 1  ;;  %v4650_v49 = vld [vmem:[#allocation2 + $0xc4] sm:$0xf0] }
  0x56   : > { %v605_v35 = vrot.slane %v585_v27, 1  ;;  %v598_v13 = vsel %vm597_vm3, %v596_v53, %v595_v28  ;;  %v488_v6 = vperm.slane %v5309_v52, 1  ;;  %v506_v11 = vpack.c.bf16 %v474_v47, %v474_v47  ;;  %v4778_v52 = vld [vmem:[#allocation2 + $0x4c4] sm:$0xf0]  ;;  %v4642_v15 = vld [vmem:[#allocation2 + $0x8c] sm:$0xf] }
  0x57   : > { %v601_v2 = vsel %vm600_vm4, %v599_v10, %v598_v13  ;;  %v508_v20 = vpack.c.bf16 %v476_v43, %v476_v43  ;;  %v510_v31 = vpack.c.bf16 %v478_v48, %v478_v48  ;;  %v512_v55 = vpack.c.bf16 %v480_v60, %v480_v60  ;;  %v4770_v28 = vld [vmem:[#allocation2 + $0x48c] sm:$0xf]  ;;  %v3589_v43 = vld [vmem:[#allocation2 + $0x8] sm:$0xf] }
  0x58   : > { %v604_v19 = vsel %vm603_vm5, %v602_v54, %v601_v2  ;;  %v514_v27 = vpack.c.bf16 %v482_v61, %v482_v61  ;;  %v516_v63 = vpack.c.bf16 %v484_v1, %v484_v1  ;;  %v518_v53 = vpack.c.bf16 %v486_v4, %v486_v4  ;;  %v3655_v54 = vld [vmem:[#allocation2 + $0xc8] sm:$0xf0]  ;;  %v4634_v60 = vld [vmem:[#allocation2 + $0x44] sm:$0xf0] }
  0x59   : > { %v607_v42 = vsel %vm606_vm6, %v605_v35, %v604_v19  ;;  %v520_v14 = vpack.c.bf16 %v488_v6, %v488_v6  ;;  %v572_v10 = vunpack.c.l.b16 %v506_v11  ;;  %v4167_v47 = vld [vmem:[#allocation2 + $0x4c8] sm:$0xf0]  ;;  %v574_v48 = vunpack.c.l.b16 %v508_v20  ;;  %v4101_v61 = vld [vmem:[#allocation2 + $0x408] sm:$0xf] }
  0x5a   : > { %v5349_v0 = vpack.c.b16 %v607_v42, %v607_v42  ;;  %v576_v13 = vunpack.c.l.b16 %v510_v31  ;;  %v578_v2 = vunpack.c.l.b16 %v512_v55  ;;  %v580_v35 = vunpack.c.l.b16 %v514_v27  ;;  %v4762_v1 = vld [vmem:[#allocation2 + $0x444] sm:$0xf0]  ;;  %v4626_v4 = vld [vmem:[#allocation2 + $0xc] sm:$0xf] }
  0x5b   : > { %v582_v19 = vunpack.c.l.b16 %v516_v63  ;;  %v584_v42 = vunpack.c.l.b16 %v518_v53  ;;  %v5352_v51 = vor.u32 %v4650_v49, %v3653_v36  ;;  %v3591_v6 = vld [vmem:[#allocation2 + $0x48] sm:$0xf0]  ;;  %v586_v40 = vunpack.c.l.b16 %v520_v14  ;;  %v4045_v63 = vld [vmem:[#allocation2 + $0x390] sm:$0xf]  ;;  %v4739_v14 = vld [vmem:[#allocation2 + $0x394] sm:$0xf] }
  0x5c   : > { %1940 = vmatmul.bf16.vlgmr.msra.gmra.mxu2 %v5349_v0  ;;  %1914 = vmatmul.bf16.vlgmr.msra.gmra.mxu0 %v5349_v0  ;;  %v4754_v11 = vld [vmem:[#allocation2 + $0x40c] sm:$0xf]  ;;  %v608_v41 = vrot.slane %v574_v48, 7  ;;  %v610_v20 = vrot.slane %v576_v13, 6  ;;  %v612_v31 = vrot.slane %v578_v2, 5  ;;  %v614_v27 = vrot.slane %v580_v35, 4 }
  0x5d   : > { %7494 = vst [vmem:[#allocation44_spill] sm:$0xff] %v5352_v51  ;;  %v4103_v55 = vld [vmem:[#allocation2 + $0x448] sm:$0xf0]  ;;  %v616_v37 = vrot.slane %v582_v19, 3  ;;  %1964 = vmatpush.bf16.msrb.mxu0 %v5352_v51  ;;  %v5356_v26 = vor.u32 %v4778_v52, %v4165_v59  ;;  %v4747_v53 = vld [vmem:[#allocation2 + $0x3cc] sm:$0xf0]  ;;  %v5359_v49 = vor.u32 %v4642_v15, %v3655_v54  ;;  %v5361_v39 = vor.u32 %v4770_v28, %v4167_v47 }
  0x5e   : > { %v609_v36 = vsel %vm588_vm0, %v608_v41, %v572_v10  ;;  %v5363_v30 = vor.u32 %v4634_v60, %v3589_v43  ;;  %v4047_v48 = vld [vmem:[#allocation2 + $0x3d0] sm:$0xf0]  ;;  %v618_v2 = vrot.slane %v584_v42, 2  ;;  %v5367_v35 = vor.u32 %v4762_v1, %v4101_v61  ;;  %v3981_v52 = vld [vmem:[#allocation2 + $0x310] sm:$0xf] }
  0x5f   : > { %7495 = vst [vmem:[#allocation45_spill] sm:$0xff] %v5356_v26  ;;  %v611_v13 = vsel %vm591_vm1, %v610_v20, %v609_v36  ;;  %1977 = vmatpush.bf16.msrb.mxu1 %v5356_v26  ;;  %v5369_v59 = vor.u32 %v4626_v4, %v3591_v6  ;;  %v4731_v19 = vld [vmem:[#allocation2 + $0x34c] sm:$0xf0]  ;;  %v620_v10 = vrot.slane %v586_v40, 1  ;;  %1990 = vmatpush.bf16.msrb.mxu2 %v5359_v49  ;;  %v4867_v61 = vld [vmem:[#allocation2 + $0x794] sm:$0xf] }
  0x60   : > { %7496 = vst [vmem:[#allocation46_spill] sm:$0xff] %v5359_v49  ;;  %v613_v41 = vsel %vm594_vm2, %v612_v31, %v611_v13  ;;  %2003 = vmatpush.bf16.msrb.mxu3 %v5361_v39  ;;  %v5374_v15 = vor.u32 %v4754_v11, %v4103_v55  ;;  %v5376_v54 = vor.u32 %v4747_v53, %v4045_v63  ;;  %v4557_v28 = vld [vmem:[#allocation2 + $0x790] sm:$0xf]  ;;  %v4559_v1 = vld [vmem:[#allocation2 + $0x7d0] sm:$0xf0] }
  0x61   : > { %7497 = vst [vmem:[#allocation47_spill] sm:$0xff] %v5361_v39  ;;  %v615_v47 = vsel %vm597_vm3, %v614_v27, %v613_v41  ;;  %1965 = vmatpush.bf16.msrb.mxu0 %v5363_v30  ;;  %v4875_v43 = vld [vmem:[#allocation2 + $0x7cc] sm:$0xf0]  ;;  %v5380_v60 = vor.u32 %v4739_v14, %v4047_v48  ;;  %v5384_v42 = vor.u32 %v4731_v19, %v3981_v52  ;;  %v4723_v4 = vld [vmem:[#allocation2 + $0x314] sm:$0xf] }
  0x62   : > { %7498 = vst [vmem:[#allocation48_spill] sm:$0xff] %v5363_v30  ;;  %v617_v40 = vsel %vm600_vm4, %v616_v37, %v615_v47  ;;  %v3983_v6 = vld [vmem:[#allocation2 + $0x350] sm:$0xf0]  ;;  %v3917_v20 = vld [vmem:[#allocation2 + $0x290] sm:$0xf]  ;;  %v5391_v27 = vor.u32 %v4875_v43, %v4557_v28  ;;  %v5393_v37 = vor.u32 %v4867_v61, %v4559_v1 }
  0x63   : > { %7499 = vst [vmem:[#allocation49_spill] sm:$0xff] %v5367_v35  ;;  %v619_v11 = vsel %vm603_vm5, %v618_v2, %v617_v40  ;;  %1978 = vmatpush.bf16.msrb.mxu1 %v5367_v35  ;;  %v4715_v31 = vld [vmem:[#allocation2 + $0x2cc] sm:$0xf0]  ;;  %1991 = vmatpush.bf16.msrb.mxu2 %v5369_v59  ;;  %v5398_v14 = vor.u32 %v4723_v4, %v3983_v6  ;;  %v4851_v48 = vld [vmem:[#allocation2 + $0x714] sm:$0xf] }
  0x64   : > { %7500 = vst [vmem:[#allocation50_spill] sm:$0xff] %v5369_v59  ;;  %v621_v55 = vsel %vm606_vm6, %v620_v10, %v619_v11  ;;  %2004 = vmatpush.bf16.msrb.mxu3 %v5374_v15  ;;  %v4493_v63 = vld [vmem:[#allocation2 + $0x710] sm:$0xf]  ;;  %v4495_v13 = vld [vmem:[#allocation2 + $0x750] sm:$0xf0]  ;;  %v5401_v2 = vor.u32 %v4715_v31, %v3917_v20 }
  0x65   : > { %7501 = vst [vmem:[#allocation51_spill] sm:$0xff] %v5374_v15  ;;  %2010 = vmatpush.bf16.msra.mxu0 %v5376_v54  ;;  %v5395_v53 = vpack.c.b16 %v621_v55, %v621_v55  ;;  %v4859_v36 = vld [vmem:[#allocation2 + $0x74c] sm:$0xf0]  ;;  %v4707_v52 = vld [vmem:[#allocation2 + $0x294] sm:$0xf]  ;;  %v5409_v47 = vor.u32 %v4851_v48, %v4495_v13 }
  0x66   : > { %7502 = vst [vmem:[#allocation52_spill] sm:$0xff] %v5376_v54  ;;  %v3919_v19 = vld [vmem:[#allocation2 + $0x2d0] sm:$0xf0]  ;;  %v3853_v41 = vld [vmem:[#allocation2 + $0x210] sm:$0xf]  ;;  %v5407_v28 = vor.u32 %v4859_v36, %v4493_v63 }
  0x67   : > { %7503 = vst [vmem:[#allocation53_spill] sm:$0xff] %v5380_v60  ;;  %2036 = vmatpush.bf16.msra.mxu2 %v5380_v60  ;;  %1953 = vmatmul.bf16.vlgmr.msra.gmra.mxu3 %v5395_v53  ;;  %v4699_v10 = vld [vmem:[#allocation2 + $0x24c] sm:$0xf0]  ;;  %v5412_v1 = vor.u32 %v4707_v52, %v3919_v19  ;;  %v4835_v40 = vld [vmem:[#allocation2 + $0x694] sm:$0xf] }
  0x68   : > { %7504 = vst [vmem:[#allocation54_spill] sm:$0xff] %v5384_v42  ;;  %1927 = vmatmul.bf16.vlgmr.msra.gmra.mxu1 %v5395_v53  ;;  %2049 = vmatpush.bf16.msra.mxu3 %v5393_v37  ;;  %v4429_v43 = vld [vmem:[#allocation2 + $0x690] sm:$0xf]  ;;  %v4431_v4 = vld [vmem:[#allocation2 + $0x6d0] sm:$0xf0]  ;;  %v5415_v6 = vor.u32 %v4699_v10, %v3853_v41 }
  0x69   : > { %7505 = vst [vmem:[#allocation55_spill] sm:$0xff] %v5391_v27  ;;  %2011 = vmatpush.bf16.msra.mxu0 %v5384_v42  ;;  %2023 = vmatpush.bf16.msra.mxu1 %v5391_v27  ;;  %v4843_v61 = vld [vmem:[#allocation2 + $0x6cc] sm:$0xf0]  ;;  %v4691_v11 = vld [vmem:[#allocation2 + $0x214] sm:$0xf]  ;;  %v5423_v36 = vor.u32 %v4835_v40, %v4431_v4 }
  0x6a   : > { %7506 = vst [vmem:[#allocation56_spill] sm:$0xff] %v5393_v37  ;;  %v3855_v20 = vld [vmem:[#allocation2 + $0x250] sm:$0xf0]  ;;  %v3789_v31 = vld [vmem:[#allocation2 + $0x190] sm:$0xf]  ;;  %v5421_v63 = vor.u32 %v4843_v61, %v4429_v43 }
  0x6b   : > { %7507 = vst [vmem:[#allocation57_spill] sm:$0xff] %v5398_v14  ;;  %2037 = vmatpush.bf16.msra.mxu2 %v5398_v14  ;;  %v4683_v55 = vld [vmem:[#allocation2 + $0x1cc] sm:$0xf0]  ;;  %v5426_v52 = vor.u32 %v4691_v11, %v3855_v20  ;;  %v4819_v19 = vld [vmem:[#allocation2 + $0x614] sm:$0xf] }
  0x6c   : > { %7508 = vst [vmem:[#allocation58_spill] sm:$0xff] %v5401_v2  ;;  %1992 = vmatmul.bf16.vlgmr.msrb.gmra.mxu2 %v5349_v0  ;;  %1966 = vmatmul.bf16.vlgmr.msrb.gmra.mxu0 %v5349_v0  ;;  %v4365_v48 = vld [vmem:[#allocation2 + $0x610] sm:$0xf]  ;;  %v4367_v41 = vld [vmem:[#allocation2 + $0x650] sm:$0xf0]  ;;  %v5429_v10 = vor.u32 %v4683_v55, %v3789_v31 }
  0x6d   : > { %7509 = vst [vmem:[#allocation59_spill] sm:$0xff] %v5407_v28  ;;  %2012 = vmatpush.bf16.msra.mxu0 %v5401_v2  ;;  %2024 = vmatpush.bf16.msra.mxu1 %v5407_v28  ;;  %v4827_v13 = vld [vmem:[#allocation2 + $0x64c] sm:$0xf0]  ;;  %v4675_v2 = vld [vmem:[#allocation2 + $0x194] sm:$0xf]  ;;  %v5435_v61 = vor.u32 %v4819_v19, %v4367_v41 }
  0x6e   : > { %7510 = vst [vmem:[#allocation60_spill] sm:$0xff] %v5409_v47  ;;  %2050 = vmatpush.bf16.msra.mxu3 %v5409_v47  ;;  %v3791_v14 = vld [vmem:[#allocation2 + $0x1d0] sm:$0xf0]  ;;  %v3725_v28 = vld [vmem:[#allocation2 + $0x110] sm:$0xf]  ;;  %v5433_v43 = vor.u32 %v4827_v13, %v4365_v48 }
  0x6f   : > { %7511 = vst [vmem:[#allocation61_spill] sm:$0xff] %v5412_v1  ;;  %2038 = vmatpush.bf16.msra.mxu2 %v5412_v1  ;;  %v4667_v47 = vld [vmem:[#allocation2 + $0x14c] sm:$0xf0]  ;;  %v5438_v11 = vor.u32 %v4675_v2, %v3791_v14  ;;  %v4803_v20 = vld [vmem:[#allocation2 + $0x594] sm:$0xf] }
  0x70   : > { %7512 = vst [vmem:[#allocation62_spill] sm:$0xff] %v5415_v6  ;;  %v4301_v40 = vld [vmem:[#allocation2 + $0x590] sm:$0xf]  ;;  %v4303_v31 = vld [vmem:[#allocation2 + $0x5d0] sm:$0xf0]  ;;  %v5441_v55 = vor.u32 %v4667_v47, %v3725_v28 }
  0x71   : > { %7513 = vst [vmem:[#allocation63_spill] sm:$0xff] %v5421_v63  ;;  %2013 = vmatpush.bf16.msra.mxu0 %v5415_v6  ;;  %2025 = vmatpush.bf16.msra.mxu1 %v5421_v63  ;;  %v4811_v4 = vld [vmem:[#allocation2 + $0x5cc] sm:$0xf0]  ;;  %v4659_v6 = vld [vmem:[#allocation2 + $0x114] sm:$0xf]  ;;  %v5447_v13 = vor.u32 %v4803_v20, %v4303_v31 }
  0x72   : > { %7514 = vst [vmem:[#allocation64_spill] sm:$0xff] %v5423_v36  ;;  %2051 = vmatpush.bf16.msra.mxu3 %v5423_v36  ;;  %v3727_v1 = vld [vmem:[#allocation2 + $0x150] sm:$0xf0]  ;;  %v3661_v63 = vld [vmem:[#allocation2 + $0x90] sm:$0xf]  ;;  %v5445_v48 = vor.u32 %v4811_v4, %v4301_v40 }
  0x73   : > { %7515 = vst [vmem:[#allocation65_spill] sm:$0xff] %v5426_v52  ;;  %2039 = vmatpush.bf16.msra.mxu2 %v5426_v52  ;;  %v4651_v36 = vld [vmem:[#allocation2 + $0xcc] sm:$0xf0]  ;;  %v5450_v19 = vor.u32 %v4659_v6, %v3727_v1  ;;  %v4787_v28 = vld [vmem:[#allocation2 + $0x514] sm:$0xf] }
  0x74   : > { %7516 = vst [vmem:[#allocation66_spill] sm:$0xff] %v5429_v10  ;;  %v4237_v14 = vld [vmem:[#allocation2 + $0x510] sm:$0xf]  ;;  %v4239_v47 = vld [vmem:[#allocation2 + $0x550] sm:$0xf0]  ;;  %v5453_v41 = vor.u32 %v4651_v36, %v3661_v63 }
  0x75   : > { %7517 = vst [vmem:[#allocation67_spill] sm:$0xff] %v5433_v43  ;;  %2014 = vmatpush.bf16.msra.mxu0 %v5429_v10  ;;  %2026 = vmatpush.bf16.msra.mxu1 %v5433_v43  ;;  %v4795_v2 = vld [vmem:[#allocation2 + $0x54c] sm:$0xf0]  ;;  %v4643_v10 = vld [vmem:[#allocation2 + $0x94] sm:$0xf]  ;;  %v5461_v6 = vor.u32 %v4787_v28, %v4239_v47 }
  0x76   : > { %7518 = vst [vmem:[#allocation68_spill] sm:$0xff] %v5435_v61  ;;  %2052 = vmatpush.bf16.msra.mxu3 %v5435_v61  ;;  %v3663_v52 = vld [vmem:[#allocation2 + $0xd0] sm:$0xf0]  ;;  %v3597_v40 = vld [vmem:[#allocation2 + $0x10] sm:$0xf]  ;;  %v5459_v1 = vor.u32 %v4795_v2, %v4237_v14 }
  0x77   : > { %7519 = vst [vmem:[#allocation69_spill] sm:$0xff] %v5438_v11  ;;  %2040 = vmatpush.bf16.msra.mxu2 %v5438_v11  ;;  %2005 = vmatmul.bf16.vlgmr.msrb.gmra.mxu3 %v5395_v53  ;;  %v4635_v4 = vld [vmem:[#allocation2 + $0x4c] sm:$0xf0]  ;;  %v4053_v31 = vld [vmem:[#allocation2 + $0x398] sm:$0xf] }
  0x78   : > { %7520 = vst [vmem:[#allocation70_spill] sm:$0xff] %v5441_v55  ;;  %1979 = vmatmul.bf16.vlgmr.msrb.gmra.mxu1 %v5395_v53  ;;  %v4173_v20 = vld [vmem:[#allocation2 + $0x490] sm:$0xf]  ;;  %v4748_v63 = vld [vmem:[#allocation2 + $0x3d4] sm:$0xf0]  ;;  %v5467_v43 = vor.u32 %v4635_v4, %v3597_v40 }
  0x79   : > { %7521 = vst [vmem:[#allocation71_spill] sm:$0xff] %v5445_v48  ;;  %2015 = vmatpush.bf16.msra.mxu0 %v5441_v55  ;;  %2027 = vmatpush.bf16.msra.mxu1 %v5445_v48  ;;  %v4779_v36 = vld [vmem:[#allocation2 + $0x4cc] sm:$0xf0]  ;;  %v5464_v55 = vor.u32 %v4643_v10, %v3663_v52  ;;  %v4771_v11 = vld [vmem:[#allocation2 + $0x494] sm:$0xf]  ;;  %v5469_v2 = vor.u32 %v4748_v63, %v4053_v31 }
  0x7a   : > { %7522 = vst [vmem:[#allocation72_spill] sm:$0xff] %v5447_v13  ;;  %2053 = vmatpush.bf16.msra.mxu3 %v5447_v13  ;;  %v4175_v61 = vld [vmem:[#allocation2 + $0x4d0] sm:$0xf0]  ;;  %v4109_v14 = vld [vmem:[#allocation2 + $0x410] sm:$0xf] }
  0x7b   : > { %7523 = vst [vmem:[#allocation73_spill] sm:$0xff] %v5450_v19  ;;  %2041 = vmatpush.bf16.msra.mxu2 %v5450_v19  ;;  %v4627_v48 = vld [vmem:[#allocation2 + $0x14] sm:$0xf]  ;;  %v4740_v28 = vld [vmem:[#allocation2 + $0x39c] sm:$0xf]  ;;  %v5473_v19 = vor.u32 %v4779_v36, %v4173_v20  ;;  %v5475_v52 = vor.u32 %v4771_v11, %v4175_v61 }
  0x7c   : > { %7524 = vst [vmem:[#allocation74_spill] sm:$0xff] %v5453_v41  ;;  %v3599_v13 = vld [vmem:[#allocation2 + $0x50] sm:$0xf0]  ;;  %v4055_v47 = vld [vmem:[#allocation2 + $0x3d8] sm:$0xf0] }
  0x7d   : > { %7525 = vst [vmem:[#allocation75_spill] sm:$0xff] %v5459_v1  ;;  %2016 = vmatpush.bf16.msra.mxu0 %v5453_v41  ;;  %2028 = vmatpush.bf16.msra.mxu1 %v5459_v1  ;;  %v4763_v10 = vld [vmem:[#allocation2 + $0x44c] sm:$0xf0]  ;;  %v3989_v42 = vld [vmem:[#allocation2 + $0x318] sm:$0xf]  ;;  %v5478_v40 = vor.u32 %v4627_v48, %v3599_v13  ;;  %v5481_v1 = vor.u32 %v4740_v28, %v4055_v47 }
  0x7e   : > { %7526 = vst [vmem:[#allocation76_spill] sm:$0xff] %v5461_v6  ;;  %2054 = vmatpush.bf16.msra.mxu3 %v5461_v6  ;;  %v4732_v41 = vld [vmem:[#allocation2 + $0x354] sm:$0xf0]  ;;  %v4755_v4 = vld [vmem:[#allocation2 + $0x414] sm:$0xf]  ;;  %v5488_v48 = vor.u32 %v4763_v10, %v4109_v14 }
  0x7f   : > { %7527 = vst [vmem:[#allocation77_spill] sm:$0xff] %v5464_v55  ;;  %2042 = vmatpush.bf16.msra.mxu2 %v5464_v55  ;;  %v4111_v31 = vld [vmem:[#allocation2 + $0x450] sm:$0xf0]  ;;  %v4565_v63 = vld [vmem:[#allocation2 + $0x798] sm:$0xf]  ;;  %v5484_v61 = vor.u32 %v4732_v41, %v3989_v42 }
  0x80   : > { %7528 = vst [vmem:[#allocation78_spill] sm:$0xff] %v5467_v43  ;;  %v4876_v37 = vld [vmem:[#allocation2 + $0x7d4] sm:$0xf0]  ;;  %v4868_v6 = vld [vmem:[#allocation2 + $0x79c] sm:$0xf]  ;;  %v5490_v13 = vor.u32 %v4755_v4, %v4111_v31 }
  0x81   : > { %7529 = vst [vmem:[#allocation79_spill] sm:$0xff] %v5469_v2  ;;  %2017 = vmatpush.bf16.msra.mxu0 %v5467_v43  ;;  %v4567_v20 = vld [vmem:[#allocation2 + $0x7d8] sm:$0xf0]  ;;  %2029 = vmatpush.bf16.msra.mxu1 %v5473_v19  ;;  %v3925_v43 = vld [vmem:[#allocation2 + $0x298] sm:$0xf]  ;;  %v5493_v28 = vor.u32 %v4876_v37, %v4565_v63 }
  0x82   : > { %7530 = vst [vmem:[#allocation80_spill] sm:$0xff] %v5473_v19  ;;  %v4724_v11 = vld [vmem:[#allocation2 + $0x31c] sm:$0xf]  ;;  %2055 = vmatpush.bf16.msra.mxu3 %v5475_v52  ;;  %v4716_v55 = vld [vmem:[#allocation2 + $0x2d4] sm:$0xf0]  ;;  %v5495_v47 = vor.u32 %v4868_v6, %v4567_v20 }
  0x83   : > { %7531 = vst [vmem:[#allocation81_spill] sm:$0xff] %v5475_v52  ;;  %v3991_v36 = vld [vmem:[#allocation2 + $0x358] sm:$0xf0]  ;;  %2043 = vmatpush.bf16.msra.mxu2 %v5478_v40  ;;  %v4501_v42 = vld [vmem:[#allocation2 + $0x718] sm:$0xf]  ;;  %v5502_v4 = vor.u32 %v4716_v55, %v3925_v43 }
  0x84   : > { %7532 = vst [vmem:[#allocation82_spill] sm:$0xff] %v5478_v40  ;;  %2018 = vmatmul.bf16.vlgmr.msra.gmra.mxu0 %v5349_v0  ;;  %v4860_v41 = vld [vmem:[#allocation2 + $0x754] sm:$0xf0]  ;;  %v4852_v14 = vld [vmem:[#allocation2 + $0x71c] sm:$0xf] }
  0x85   : > { %7533 = vst [vmem:[#allocation83_spill] sm:$0xff] %v5481_v1  ;;  %2062 = vmatpush.bf16.msrb.mxu0 %v5469_v2  ;;  %v5499_v2 = vor.u32 %v4724_v11, %v3991_v36  ;;  %v4503_v10 = vld [vmem:[#allocation2 + $0x758] sm:$0xf0]  ;;  %2030 = vmatpush.bf16.msra.mxu1 %v5488_v48  ;;  %v3861_v37 = vld [vmem:[#allocation2 + $0x218] sm:$0xf]  ;;  %v5508_v63 = vor.u32 %v4860_v41, %v4501_v42 }
  0x86   : > { %7534 = vst [vmem:[#allocation84_spill] sm:$0xff] %v5484_v61  ;;  %v4708_v31 = vld [vmem:[#allocation2 + $0x29c] sm:$0xf]  ;;  %2056 = vmatpush.bf16.msra.mxu3 %v5490_v13  ;;  %v4700_v6 = vld [vmem:[#allocation2 + $0x254] sm:$0xf0]  ;;  %v5510_v20 = vor.u32 %v4852_v14, %v4503_v10  ;;  %2044 = vmatmul.bf16.vlgmr.msra.gmra.mxu2 %v5349_v0 }
  0x87   : > { %7535 = vst [vmem:[#allocation85_spill] sm:$0xff] %v5488_v48  ;;  %2088 = vmatpush.bf16.msrb.mxu2 %v5481_v1  ;;  %v3927_v40 = vld [vmem:[#allocation2 + $0x2d8] sm:$0xf0]  ;;  %v4437_v11 = vld [vmem:[#allocation2 + $0x698] sm:$0xf]  ;;  %v5516_v1 = vor.u32 %v4700_v6, %v3861_v37 }
  0x88   : > { %7536 = vst [vmem:[#allocation86_spill] sm:$0xff] %v5490_v13  ;;  %v4844_v43 = vld [vmem:[#allocation2 + $0x6d4] sm:$0xf0]  ;;  %v5513_v55 = vor.u32 %v4708_v31, %v3927_v40  ;;  %v4836_v36 = vld [vmem:[#allocation2 + $0x69c] sm:$0xf]  ;;  %2031 = vmatmul.bf16.vlgmr.msra.gmra.mxu1 %v5395_v53 }
  0x89   : > { %7537 = vst [vmem:[#allocation87_spill] sm:$0xff] %v5493_v28  ;;  %2063 = vmatpush.bf16.msrb.mxu0 %v5484_v61  ;;  %2075 = vmatpush.bf16.msrb.mxu1 %v5493_v28  ;;  %v4439_v61 = vld [vmem:[#allocation2 + $0x6d8] sm:$0xf0]  ;;  %v3797_v42 = vld [vmem:[#allocation2 + $0x198] sm:$0xf]  ;;  %v5523_v40 = vor.u32 %v4844_v43, %v4437_v11 }
  0x8a   : > { %7538 = vst [vmem:[#allocation88_spill] sm:$0xff] %v5495_v47  ;;  %2101 = vmatpush.bf16.msrb.mxu3 %v5495_v47  ;;  %v4692_v13 = vld [vmem:[#allocation2 + $0x21c] sm:$0xf]  ;;  %v4684_v41 = vld [vmem:[#allocation2 + $0x1d4] sm:$0xf0]  ;;  %v5525_v14 = vor.u32 %v4836_v36, %v4439_v61 }
  0x8b   : > { %7539 = vst [vmem:[#allocation89_spill] sm:$0xff] %v5499_v2  ;;  %2089 = vmatpush.bf16.msrb.mxu2 %v5499_v2  ;;  %v3863_v28 = vld [vmem:[#allocation2 + $0x258] sm:$0xf0]  ;;  %2057 = vmatmul.bf16.vlgmr.msra.gmra.mxu3 %v5395_v53  ;;  %v4373_v10 = vld [vmem:[#allocation2 + $0x618] sm:$0xf]  ;;  %v5531_v2 = vor.u32 %v4684_v41, %v3797_v42 }
  0x8c   : > { %7540 = vst [vmem:[#allocation90_spill] sm:$0xff] %v5502_v4  ;;  %v4828_v31 = vld [vmem:[#allocation2 + $0x654] sm:$0xf0]  ;;  %v5528_v37 = vor.u32 %v4692_v13, %v3863_v28  ;;  %v4820_v6 = vld [vmem:[#allocation2 + $0x61c] sm:$0xf] }
  0x8d   : > { %7541 = vst [vmem:[#allocation91_spill] sm:$0xff] %v5508_v63  ;;  %2064 = vmatpush.bf16.msrb.mxu0 %v5502_v4  ;;  %2076 = vmatpush.bf16.msrb.mxu1 %v5508_v63  ;;  %v4375_v4 = vld [vmem:[#allocation2 + $0x658] sm:$0xf0]  ;;  %v3733_v48 = vld [vmem:[#allocation2 + $0x118] sm:$0xf]  ;;  %v5535_v61 = vor.u32 %v4828_v31, %v4373_v10 }
  0x8e   : > { %7542 = vst [vmem:[#allocation92_spill] sm:$0xff] %v5510_v20  ;;  %2102 = vmatpush.bf16.msrb.mxu3 %v5510_v20  ;;  %v4676_v47 = vld [vmem:[#allocation2 + $0x19c] sm:$0xf]  ;;  %v4668_v20 = vld [vmem:[#allocation2 + $0x154] sm:$0xf0]  ;;  %v5537_v11 = vor.u32 %v4820_v6, %v4375_v4 }
  0x8f   : > { %7543 = vst [vmem:[#allocation93_spill] sm:$0xff] %v5513_v55  ;;  %2090 = vmatpush.bf16.msrb.mxu2 %v5513_v55  ;;  %v3799_v63 = vld [vmem:[#allocation2 + $0x1d8] sm:$0xf0]  ;;  %v4309_v13 = vld [vmem:[#allocation2 + $0x598] sm:$0xf]  ;;  %v5543_v41 = vor.u32 %v4668_v20, %v3733_v48 }
  0x90   : > { %7544 = vst [vmem:[#allocation94_spill] sm:$0xff] %v5516_v1  ;;  %v4812_v28 = vld [vmem:[#allocation2 + $0x5d4] sm:$0xf0]  ;;  %v5540_v43 = vor.u32 %v4676_v47, %v3799_v63  ;;  %v4804_v36 = vld [vmem:[#allocation2 + $0x59c] sm:$0xf] }
  0x91   : > { %7545 = vst [vmem:[#allocation95_spill] sm:$0xff] %v5523_v40  ;;  %2065 = vmatpush.bf16.msrb.mxu0 %v5516_v1  ;;  %2077 = vmatpush.bf16.msrb.mxu1 %v5523_v40  ;;  %v4311_v42 = vld [vmem:[#allocation2 + $0x5d8] sm:$0xf0]  ;;  %v3669_v40 = vld [vmem:[#allocation2 + $0x98] sm:$0xf]  ;;  %v5547_v4 = vor.u32 %v4812_v28, %v4309_v13 }
  0x92   : > { %7546 = vst [vmem:[#allocation96_spill] sm:$0xff] %v5525_v14  ;;  %2103 = vmatpush.bf16.msrb.mxu3 %v5525_v14  ;;  %v4660_v1 = vld [vmem:[#allocation2 + $0x11c] sm:$0xf]  ;;  %v4652_v14 = vld [vmem:[#allocation2 + $0xd4] sm:$0xf0]  ;;  %v5549_v10 = vor.u32 %v4804_v36, %v4311_v42 }
  0x93   : > { %7547 = vst [vmem:[#allocation97_spill] sm:$0xff] %v5528_v37  ;;  %2091 = vmatpush.bf16.msrb.mxu2 %v5528_v37  ;;  %v3735_v55 = vld [vmem:[#allocation2 + $0x158] sm:$0xf0]  ;;  %v4245_v47 = vld [vmem:[#allocation2 + $0x518] sm:$0xf]  ;;  %v5555_v6 = vor.u32 %v4652_v14, %v3669_v40 }
  0x94   : > { %7548 = vst [vmem:[#allocation98_spill] sm:$0xff] %v5531_v2  ;;  %v4796_v63 = vld [vmem:[#allocation2 + $0x554] sm:$0xf0]  ;;  %v5552_v31 = vor.u32 %v4660_v1, %v3735_v55  ;;  %v4788_v48 = vld [vmem:[#allocation2 + $0x51c] sm:$0xf] }
  0x95   : > { %7549 = vst [vmem:[#allocation99_spill] sm:$0xff] %v5535_v61  ;;  %2066 = vmatpush.bf16.msrb.mxu0 %v5531_v2  ;;  %2078 = vmatpush.bf16.msrb.mxu1 %v5535_v61  ;;  %v4247_v20 = vld [vmem:[#allocation2 + $0x558] sm:$0xf0]  ;;  %v3605_v61 = vld [vmem:[#allocation2 + $0x18] sm:$0xf]  ;;  %v5559_v13 = vor.u32 %v4796_v63, %v4245_v47 }
  0x96   : > { %7550 = vst [vmem:[#allocation100_spill] sm:$0xff] %v5537_v11  ;;  %2104 = vmatpush.bf16.msrb.mxu3 %v5537_v11  ;;  %v4644_v2 = vld [vmem:[#allocation2 + $0x9c] sm:$0xf]  ;;  %v4636_v11 = vld [vmem:[#allocation2 + $0x54] sm:$0xf0]  ;;  %v5561_v28 = vor.u32 %v4788_v48, %v4247_v20 }
  0x97   : > { %7551 = vst [vmem:[#allocation101_spill] sm:$0xff] %v5540_v43  ;;  %2092 = vmatpush.bf16.msrb.mxu2 %v5540_v43  ;;  %v3671_v37 = vld [vmem:[#allocation2 + $0xd8] sm:$0xf0]  ;;  %v4181_v1 = vld [vmem:[#allocation2 + $0x498] sm:$0xf]  ;;  %v5567_v43 = vor.u32 %v4636_v11, %v3605_v61 }
  0x98   : > { %7552 = vst [vmem:[#allocation102_spill] sm:$0xff] %v5543_v41  ;;  %v4061_v55 = vld [vmem:[#allocation2 + $0x3a0] sm:$0xf]  ;;  %v4780_v42 = vld [vmem:[#allocation2 + $0x4d4] sm:$0xf0]  ;;  %v5564_v40 = vor.u32 %v4644_v2, %v3671_v37 }
  0x99   : > { %7553 = vst [vmem:[#allocation103_spill] sm:$0xff] %v5547_v4  ;;  %2067 = vmatpush.bf16.msrb.mxu0 %v5543_v41  ;;  %2079 = vmatpush.bf16.msrb.mxu1 %v5547_v4  ;;  %v4749_v36 = vld [vmem:[#allocation2 + $0x3dc] sm:$0xf0]  ;;  %v4772_v14 = vld [vmem:[#allocation2 + $0x49c] sm:$0xf] }
  0x9a   : > { %7554 = vst [vmem:[#allocation104_spill] sm:$0xff] %v5549_v10  ;;  %2105 = vmatpush.bf16.msrb.mxu3 %v5549_v10  ;;  %v4183_v41 = vld [vmem:[#allocation2 + $0x4d8] sm:$0xf0]  ;;  %v4117_v47 = vld [vmem:[#allocation2 + $0x418] sm:$0xf]  ;;  %v5569_v63 = vor.u32 %v4749_v36, %v4061_v55 }
  0x9b   : > { %7555 = vst [vmem:[#allocation105_spill] sm:$0xff] %v5552_v31  ;;  %2093 = vmatpush.bf16.msrb.mxu2 %v5552_v31  ;;  %v4628_v4 = vld [vmem:[#allocation2 + $0x1c] sm:$0xf]  ;;  %v4741_v48 = vld [vmem:[#allocation2 + $0x3a4] sm:$0xf]  ;;  %v5573_v31 = vor.u32 %v4780_v42, %v4181_v1  ;;  %v5575_v2 = vor.u32 %v4772_v14, %v4183_v41 }
  0x9c   : > { %7556 = vst [vmem:[#allocation106_spill] sm:$0xff] %v5555_v6  ;;  %v3607_v10 = vld [vmem:[#allocation2 + $0x58] sm:$0xf0]  ;;  %v4063_v20 = vld [vmem:[#allocation2 + $0x3e0] sm:$0xf0] }
  0x9d   : > { %7557 = vst [vmem:[#allocation107_spill] sm:$0xff] %v5559_v13  ;;  %2068 = vmatpush.bf16.msrb.mxu0 %v5555_v6  ;;  %2080 = vmatpush.bf16.msrb.mxu1 %v5559_v13  ;;  %v4764_v37 = vld [vmem:[#allocation2 + $0x454] sm:$0xf0]  ;;  %v3997_v52 = vld [vmem:[#allocation2 + $0x320] sm:$0xf]  ;;  %v5578_v61 = vor.u32 %v4628_v4, %v3607_v10  ;;  %v5581_v13 = vor.u32 %v4741_v48, %v4063_v20 }
  0x9e   : > { %7558 = vst [vmem:[#allocation108_spill] sm:$0xff] %v5561_v28  ;;  %2106 = vmatpush.bf16.msrb.mxu3 %v5561_v28  ;;  %v4733_v6 = vld [vmem:[#allocation2 + $0x35c] sm:$0xf0]  ;;  %v4756_v11 = vld [vmem:[#allocation2 + $0x41c] sm:$0xf]  ;;  %v5588_v4 = vor.u32 %v4764_v37, %v4117_v47 }
  0x9f   : > { %7559 = vst [vmem:[#allocation109_spill] sm:$0xff] %v5564_v40  ;;  %2094 = vmatpush.bf16.msrb.mxu2 %v5564_v40  ;;  %v4119_v55 = vld [vmem:[#allocation2 + $0x458] sm:$0xf0]  ;;  %v4573_v36 = vld [vmem:[#allocation2 + $0x7a0] sm:$0xf]  ;;  %v5584_v41 = vor.u32 %v4733_v6, %v3997_v52 }
  0xa0   : > { %7560 = vst [vmem:[#allocation110_spill] sm:$0xff] %v5567_v43  ;;  %v4877_v19 = vld [vmem:[#allocation2 + $0x7dc] sm:$0xf0]  ;;  %v4869_v28 = vld [vmem:[#allocation2 + $0x7a4] sm:$0xf]  ;;  %v5590_v10 = vor.u32 %v4756_v11, %v4119_v55 }
  0xa1   : > { %7561 = vst [vmem:[#allocation111_spill] sm:$0xff] %v5569_v63  ;;  %2069 = vmatpush.bf16.msrb.mxu0 %v5567_v43  ;;  %v4575_v1 = vld [vmem:[#allocation2 + $0x7e0] sm:$0xf0]  ;;  %2081 = vmatpush.bf16.msrb.mxu1 %v5573_v31  ;;  %v3933_v43 = vld [vmem:[#allocation2 + $0x2a0] sm:$0xf]  ;;  %v5593_v48 = vor.u32 %v4877_v19, %v4573_v36 }
  0xa2   : > { %7562 = vst [vmem:[#allocation112_spill] sm:$0xff] %v5573_v31  ;;  %v4725_v42 = vld [vmem:[#allocation2 + $0x324] sm:$0xf]  ;;  %2107 = vmatpush.bf16.msrb.mxu3 %v5575_v2  ;;  %v4717_v40 = vld [vmem:[#allocation2 + $0x2dc] sm:$0xf0]  ;;  %v5595_v20 = vor.u32 %v4869_v28, %v4575_v1 }
  0xa3   : > { %7563 = vst [vmem:[#allocation113_spill] sm:$0xff] %v5575_v2  ;;  %v3999_v14 = vld [vmem:[#allocation2 + $0x360] sm:$0xf0]  ;;  %2095 = vmatpush.bf16.msrb.mxu2 %v5578_v61  ;;  %v4509_v52 = vld [vmem:[#allocation2 + $0x720] sm:$0xf]  ;;  %v5602_v11 = vor.u32 %v4717_v40, %v3933_v43 }
  0xa4   : > { %7564 = vst [vmem:[#allocation114_spill] sm:$0xff] %v5578_v61  ;;  %2070 = vmatmul.bf16.vlgmr.msrb.gmra.mxu0 %v5349_v0  ;;  %v4861_v6 = vld [vmem:[#allocation2 + $0x75c] sm:$0xf0]  ;;  %v4853_v47 = vld [vmem:[#allocation2 + $0x724] sm:$0xf] }
  0xa5   : > { %7565 = vst [vmem:[#allocation115_spill] sm:$0xff] %v5581_v13  ;;  %2114 = vmatpush.bf16.msra.mxu0 %v5569_v63  ;;  %v5599_v63 = vor.u32 %v4725_v42, %v3999_v14  ;;  %v4511_v37 = vld [vmem:[#allocation2 + $0x760] sm:$0xf0]  ;;  %2082 = vmatpush.bf16.msrb.mxu1 %v5588_v4  ;;  %v3869_v19 = vld [vmem:[#allocation2 + $0x220] sm:$0xf]  ;;  %v5608_v36 = vor.u32 %v4861_v6, %v4509_v52 }
  0xa6   : > { %7566 = vst [vmem:[#allocation116_spill] sm:$0xff] %v5584_v41  ;;  %v4709_v55 = vld [vmem:[#allocation2 + $0x2a4] sm:$0xf]  ;;  %2108 = vmatpush.bf16.msrb.mxu3 %v5590_v10  ;;  %v4701_v28 = vld [vmem:[#allocation2 + $0x25c] sm:$0xf0]  ;;  %v5610_v1 = vor.u32 %v4853_v47, %v4511_v37  ;;  %2096 = vmatmul.bf16.vlgmr.msrb.gmra.mxu2 %v5349_v0 }
  0xa7   : > { %7567 = vst [vmem:[#allocation117_spill] sm:$0xff] %v5588_v4  ;;  %2140 = vmatpush.bf16.msra.mxu2 %v5581_v13  ;;  %v3935_v61 = vld [vmem:[#allocation2 + $0x2e0] sm:$0xf0]  ;;  %v4445_v42 = vld [vmem:[#allocation2 + $0x6a0] sm:$0xf]  ;;  %v5616_v13 = vor.u32 %v4701_v28, %v3869_v19 }
  0xa8   : > { %7568 = vst [vmem:[#allocation118_spill] sm:$0xff] %v5590_v10  ;;  %v4845_v43 = vld [vmem:[#allocation2 + $0x6dc] sm:$0xf0]  ;;  %v5613_v40 = vor.u32 %v4709_v55, %v3935_v61  ;;  %v4837_v14 = vld [vmem:[#allocation2 + $0x6a4] sm:$0xf]  ;;  %2083 = vmatmul.bf16.vlgmr.msrb.gmra.mxu1 %v5395_v53 }
  0xa9   : > { %7569 = vst [vmem:[#allocation119_spill] sm:$0xff] %v5593_v48  ;;  %2115 = vmatpush.bf16.msra.mxu0 %v5584_v41  ;;  %2127 = vmatpush.bf16.msra.mxu1 %v5593_v48  ;;  %v4447_v41 = vld [vmem:[#allocation2 + $0x6e0] sm:$0xf0]  ;;  %v3805_v52 = vld [vmem:[#allocation2 + $0x1a0] sm:$0xf]  ;;  %v5623_v61 = vor.u32 %v4845_v43, %v4445_v42 }
  0xaa   : > { %7570 = vst [vmem:[#allocation120_spill] sm:$0xff] %v5595_v20  ;;  %2153 = vmatpush.bf16.msra.mxu3 %v5595_v20  ;;  %v4693_v10 = vld [vmem:[#allocation2 + $0x224] sm:$0xf]  ;;  %v4685_v6 = vld [vmem:[#allocation2 + $0x1dc] sm:$0xf0]  ;;  %v5625_v47 = vor.u32 %v4837_v14, %v4447_v41 }
  0xab   : > { %7571 = vst [vmem:[#allocation121_spill] sm:$0xff] %v5599_v63  ;;  %2141 = vmatpush.bf16.msra.mxu2 %v5599_v63  ;;  %v3871_v48 = vld [vmem:[#allocation2 + $0x260] sm:$0xf0]  ;;  %2109 = vmatmul.bf16.vlgmr.msrb.gmra.mxu3 %v5395_v53  ;;  %v4381_v37 = vld [vmem:[#allocation2 + $0x620] sm:$0xf]  ;;  %v5631_v63 = vor.u32 %v4685_v6, %v3805_v52 }
  0xac   : > { %7572 = vst [vmem:[#allocation122_spill] sm:$0xff] %v5602_v11  ;;  %v4829_v55 = vld [vmem:[#allocation2 + $0x65c] sm:$0xf0]  ;;  %v5628_v19 = vor.u32 %v4693_v10, %v3871_v48  ;;  %v4821_v28 = vld [vmem:[#allocation2 + $0x624] sm:$0xf] }
  0xad   : > { %7573 = vst [vmem:[#allocation123_spill] sm:$0xff] %v5608_v36  ;;  %2116 = vmatpush.bf16.msra.mxu0 %v5602_v11  ;;  %2128 = vmatpush.bf16.msra.mxu1 %v5608_v36  ;;  %v4383_v11 = vld [vmem:[#allocation2 + $0x660] sm:$0xf0]  ;;  %v3741_v4 = vld [vmem:[#allocation2 + $0x120] sm:$0xf]  ;;  %v5635_v41 = vor.u32 %v4829_v55, %v4381_v37 }
  0xae   : > { %7574 = vst [vmem:[#allocation124_spill] sm:$0xff] %v5610_v1  ;;  %2154 = vmatpush.bf16.msra.mxu3 %v5610_v1  ;;  %v4677_v20 = vld [vmem:[#allocation2 + $0x1a4] sm:$0xf]  ;;  %v4669_v1 = vld [vmem:[#allocation2 + $0x15c] sm:$0xf0]  ;;  %v5637_v42 = vor.u32 %v4821_v28, %v4383_v11 }
  0xaf   : > { %7575 = vst [vmem:[#allocation125_spill] sm:$0xff] %v5613_v40  ;;  %2142 = vmatpush.bf16.msra.mxu2 %v5613_v40  ;;  %v3807_v36 = vld [vmem:[#allocation2 + $0x1e0] sm:$0xf0]  ;;  %v4317_v10 = vld [vmem:[#allocation2 + $0x5a0] sm:$0xf]  ;;  %v5643_v6 = vor.u32 %v4669_v1, %v3741_v4 }
  0xb0   : > { %7576 = vst [vmem:[#allocation126_spill] sm:$0xff] %v5616_v13  ;;  %v4813_v48 = vld [vmem:[#allocation2 + $0x5dc] sm:$0xf0]  ;;  %v5640_v43 = vor.u32 %v4677_v20, %v3807_v36  ;;  %v4805_v14 = vld [vmem:[#allocation2 + $0x5a4] sm:$0xf] }
  0xb1   : > { %7577 = vst [vmem:[#allocation127_spill] sm:$0xff] %v5623_v61  ;;  %2117 = vmatpush.bf16.msra.mxu0 %v5616_v13  ;;  %2129 = vmatpush.bf16.msra.mxu1 %v5623_v61  ;;  %v4319_v52 = vld [vmem:[#allocation2 + $0x5e0] sm:$0xf0]  ;;  %v3677_v61 = vld [vmem:[#allocation2 + $0xa0] sm:$0xf]  ;;  %v5647_v11 = vor.u32 %v4813_v48, %v4317_v10 }
  0xb2   : > { %7578 = vst [vmem:[#allocation128_spill] sm:$0xff] %v5625_v47  ;;  %2155 = vmatpush.bf16.msra.mxu3 %v5625_v47  ;;  %v4661_v13 = vld [vmem:[#allocation2 + $0x124] sm:$0xf]  ;;  %v4653_v47 = vld [vmem:[#allocation2 + $0xdc] sm:$0xf0]  ;;  %v5649_v37 = vor.u32 %v4805_v14, %v4319_v52 }
  0xb3   : > { %7579 = vst [vmem:[#allocation129_spill] sm:$0xff] %v5628_v19  ;;  %2143 = vmatpush.bf16.msra.mxu2 %v5628_v19  ;;  %v3743_v40 = vld [vmem:[#allocation2 + $0x160] sm:$0xf0]  ;;  %v4253_v20 = vld [vmem:[#allocation2 + $0x520] sm:$0xf]  ;;  %v5655_v28 = vor.u32 %v4653_v47, %v3677_v61 }
  0xb4   : > { %7580 = vst [vmem:[#allocation130_spill] sm:$0xff] %v5631_v63  ;;  %v4797_v36 = vld [vmem:[#allocation2 + $0x55c] sm:$0xf0]  ;;  %v5652_v55 = vor.u32 %v4661_v13, %v3743_v40  ;;  %v4789_v4 = vld [vmem:[#allocation2 + $0x524] sm:$0xf] }
  0xb5   : > { %7581 = vst [vmem:[#allocation131_spill] sm:$0xff] %v5635_v41  ;;  %2118 = vmatpush.bf16.msra.mxu0 %v5631_v63  ;;  %2130 = vmatpush.bf16.msra.mxu1 %v5635_v41  ;;  %v4255_v1 = vld [vmem:[#allocation2 + $0x560] sm:$0xf0]  ;;  %v3613_v41 = vld [vmem:[#allocation2 + $0x20] sm:$0xf]  ;;  %v5659_v10 = vor.u32 %v4797_v36, %v4253_v20 }
  0xb6   : > { %7582 = vst [vmem:[#allocation132_spill] sm:$0xff] %v5637_v42  ;;  %2156 = vmatpush.bf16.msra.mxu3 %v5637_v42  ;;  %v4645_v63 = vld [vmem:[#allocation2 + $0xa4] sm:$0xf]  ;;  %v4637_v42 = vld [vmem:[#allocation2 + $0x5c] sm:$0xf0]  ;;  %v5661_v48 = vor.u32 %v4789_v4, %v4255_v1 }
  0xb7   : > { %7583 = vst [vmem:[#allocation133_spill] sm:$0xff] %v5640_v43  ;;  %2144 = vmatpush.bf16.msra.mxu2 %v5640_v43  ;;  %v3679_v19 = vld [vmem:[#allocation2 + $0xe0] sm:$0xf0]  ;;  %v4189_v13 = vld [vmem:[#allocation2 + $0x4a0] sm:$0xf]  ;;  %v5667_v43 = vor.u32 %v4637_v42, %v3613_v41 }
  0xb8   : > { %7584 = vst [vmem:[#allocation134_spill] sm:$0xff] %v5643_v6  ;;  %v4069_v40 = vld [vmem:[#allocation2 + $0x3a8] sm:$0xf]  ;;  %v4781_v52 = vld [vmem:[#allocation2 + $0x4dc] sm:$0xf0]  ;;  %v5664_v61 = vor.u32 %v4645_v63, %v3679_v19 }
  0xb9   : > { %7585 = vst [vmem:[#allocation135_spill] sm:$0xff] %v5647_v11  ;;  %2119 = vmatpush.bf16.msra.mxu0 %v5643_v6  ;;  %2131 = vmatpush.bf16.msra.mxu1 %v5647_v11  ;;  %v4750_v14 = vld [vmem:[#allocation2 + $0x3e4] sm:$0xf0]  ;;  %v4773_v47 = vld [vmem:[#allocation2 + $0x4a4] sm:$0xf] }
  0xba   : > { %7586 = vst [vmem:[#allocation136_spill] sm:$0xff] %v5649_v37  ;;  %2157 = vmatpush.bf16.msra.mxu3 %v5649_v37  ;;  %v4191_v6 = vld [vmem:[#allocation2 + $0x4e0] sm:$0xf0]  ;;  %v4125_v20 = vld [vmem:[#allocation2 + $0x420] sm:$0xf]  ;;  %v5669_v36 = vor.u32 %v4750_v14, %v4069_v40 }
  0xbb   : > { %7587 = vst [vmem:[#allocation137_spill] sm:$0xff] %v5652_v55  ;;  %2145 = vmatpush.bf16.msra.mxu2 %v5652_v55  ;;  %v4629_v11 = vld [vmem:[#allocation2 + $0x24] sm:$0xf]  ;;  %v4742_v4 = vld [vmem:[#allocation2 + $0x3ac] sm:$0xf]  ;;  %v5673_v55 = vor.u32 %v4781_v52, %v4189_v13  ;;  %v5675_v63 = vor.u32 %v4773_v47, %v4191_v6 }
  0xbc   : > { %7588 = vst [vmem:[#allocation138_spill] sm:$0xff] %v5655_v28  ;;  %v3615_v37 = vld [vmem:[#allocation2 + $0x60] sm:$0xf0]  ;;  %v4071_v1 = vld [vmem:[#allocation2 + $0x3e8] sm:$0xf0] }
  0xbd   : > { %7589 = vst [vmem:[#allocation139_spill] sm:$0xff] %v5659_v10  ;;  %2120 = vmatpush.bf16.msra.mxu0 %v5655_v28  ;;  %2132 = vmatpush.bf16.msra.mxu1 %v5659_v10  ;;  %v4765_v19 = vld [vmem:[#allocation2 + $0x45c] sm:$0xf0]  ;;  %v4005_v2 = vld [vmem:[#allocation2 + $0x328] sm:$0xf]  ;;  %v5678_v41 = vor.u32 %v4629_v11, %v3615_v37  ;;  %v5681_v10 = vor.u32 %v4742_v4, %v4071_v1 }
  0xbe   : > { %7590 = vst [vmem:[#allocation140_spill] sm:$0xff] %v5661_v48  ;;  %2158 = vmatpush.bf16.msra.mxu3 %v5661_v48  ;;  %v4734_v28 = vld [vmem:[#allocation2 + $0x364] sm:$0xf0]  ;;  %v4757_v42 = vld [vmem:[#allocation2 + $0x424] sm:$0xf]  ;;  %v5688_v11 = vor.u32 %v4765_v19, %v4125_v20 }
  0xbf   : > { %7591 = vst [vmem:[#allocation141_spill] sm:$0xff] %v5664_v61  ;;  %2146 = vmatpush.bf16.msra.mxu2 %v5664_v61  ;;  %v4127_v40 = vld [vmem:[#allocation2 + $0x460] sm:$0xf0]  ;;  %v4581_v14 = vld [vmem:[#allocation2 + $0x7a8] sm:$0xf]  ;;  %v5684_v6 = vor.u32 %v4734_v28, %v4005_v2 }
  0xc0   : > { %7592 = vst [vmem:[#allocation142_spill] sm:$0xff] %v5667_v43  ;;  %v4878_v31 = vld [vmem:[#allocation2 + $0x7e4] sm:$0xf0]  ;;  %v4870_v48 = vld [vmem:[#allocation2 + $0x7ac] sm:$0xf]  ;;  %v5690_v37 = vor.u32 %v4757_v42, %v4127_v40 }
  0xc1   : > { %7593 = vst [vmem:[#allocation143_spill] sm:$0xff] %v5669_v36  ;;  %2121 = vmatpush.bf16.msra.mxu0 %v5667_v43  ;;  %v4583_v13 = vld [vmem:[#allocation2 + $0x7e8] sm:$0xf0]  ;;  %2133 = vmatpush.bf16.msra.mxu1 %v5673_v55  ;;  %v3941_v43 = vld [vmem:[#allocation2 + $0x2a8] sm:$0xf]  ;;  %v5693_v4 = vor.u32 %v4878_v31, %v4581_v14 }
  0xc2   : > { %7594 = vst [vmem:[#allocation144_spill] sm:$0xff] %v5673_v55  ;;  %v4726_v52 = vld [vmem:[#allocation2 + $0x32c] sm:$0xf]  ;;  %2159 = vmatpush.bf16.msra.mxu3 %v5675_v63  ;;  %v4718_v61 = vld [vmem:[#allocation2 + $0x2e4] sm:$0xf0]  ;;  %v5695_v1 = vor.u32 %v4870_v48, %v4583_v13 }
  0xc3   : > { %7595 = vst [vmem:[#allocation145_spill] sm:$0xff] %v5675_v63  ;;  %v4007_v47 = vld [vmem:[#allocation2 + $0x368] sm:$0xf0]  ;;  %2147 = vmatpush.bf16.msra.mxu2 %v5678_v41  ;;  %v4517_v2 = vld [vmem:[#allocation2 + $0x728] sm:$0xf]  ;;  %v5702_v42 = vor.u32 %v4718_v61, %v3941_v43 }
  0xc4   : > { %7596 = vst [vmem:[#allocation146_spill] sm:$0xff] %v5678_v41  ;;  %2122 = vmatmul.bf16.vlgmr.msra.gmra.mxu0 %v5349_v0  ;;  %v4862_v28 = vld [vmem:[#allocation2 + $0x764] sm:$0xf0]  ;;  %v4854_v20 = vld [vmem:[#allocation2 + $0x72c] sm:$0xf] }
  0xc5   : > { %7597 = vst [vmem:[#allocation147_spill] sm:$0xff] %v5681_v10  ;;  %2166 = vmatpush.bf16.msrb.mxu0 %v5669_v36  ;;  %v5699_v36 = vor.u32 %v4726_v52, %v4007_v47  ;;  %v4519_v19 = vld [vmem:[#allocation2 + $0x768] sm:$0xf0]  ;;  %2134 = vmatpush.bf16.msra.mxu1 %v5688_v11  ;;  %v3877_v31 = vld [vmem:[#allocation2 + $0x228] sm:$0xf]  ;;  %v5708_v14 = vor.u32 %v4862_v28, %v4517_v2 }
  0xc6   : > { %7598 = vst [vmem:[#allocation148_spill] sm:$0xff] %v5684_v6  ;;  %v4710_v40 = vld [vmem:[#allocation2 + $0x2ac] sm:$0xf]  ;;  %2160 = vmatpush.bf16.msra.mxu3 %v5690_v37  ;;  %v4702_v48 = vld [vmem:[#allocation2 + $0x264] sm:$0xf0]  ;;  %v5710_v13 = vor.u32 %v4854_v20, %v4519_v19  ;;  %2148 = vmatmul.bf16.vlgmr.msra.gmra.mxu2 %v5349_v0 }
  0xc7   : > { %7599 = vst [vmem:[#allocation149_spill] sm:$0xff] %v5688_v11  ;;  %2192 = vmatpush.bf16.msrb.mxu2 %v5681_v10  ;;  %v3943_v41 = vld [vmem:[#allocation2 + $0x2e8] sm:$0xf0]  ;;  %v4453_v52 = vld [vmem:[#allocation2 + $0x6a8] sm:$0xf]  ;;  %v5716_v10 = vor.u32 %v4702_v48, %v3877_v31 }
  0xc8   : > { %7600 = vst [vmem:[#allocation150_spill] sm:$0xff] %v5690_v37  ;;  %v4846_v43 = vld [vmem:[#allocation2 + $0x6e4] sm:$0xf0]  ;;  %v5713_v61 = vor.u32 %v4710_v40, %v3943_v41  ;;  %v4838_v47 = vld [vmem:[#allocation2 + $0x6ac] sm:$0xf]  ;;  %2135 = vmatmul.bf16.vlgmr.msra.gmra.mxu1 %v5395_v53 }
  0xc9   : > { %7601 = vst [vmem:[#allocation151_spill] sm:$0xff] %v5693_v4  ;;  %2167 = vmatpush.bf16.msrb.mxu0 %v5684_v6  ;;  %2179 = vmatpush.bf16.msrb.mxu1 %v5693_v4  ;;  %v4455_v6 = vld [vmem:[#allocation2 + $0x6e8] sm:$0xf0]  ;;  %v3813_v2 = vld [vmem:[#allocation2 + $0x1a8] sm:$0xf]  ;;  %v5723_v41 = vor.u32 %v4846_v43, %v4453_v52 }
  0xca   : > { %7602 = vst [vmem:[#allocation152_spill] sm:$0xff] %v5695_v1  ;;  %2205 = vmatpush.bf16.msrb.mxu3 %v5695_v1  ;;  %v4694_v37 = vld [vmem:[#allocation2 + $0x22c] sm:$0xf]  ;;  %v4686_v28 = vld [vmem:[#allocation2 + $0x1e4] sm:$0xf0]  ;;  %v5725_v20 = vor.u32 %v4838_v47, %v4455_v6 }
  0xcb   : > { %7603 = vst [vmem:[#allocation153_spill] sm:$0xff] %v5699_v36  ;;  %2193 = vmatpush.bf16.msrb.mxu2 %v5699_v36  ;;  %v3879_v4 = vld [vmem:[#allocation2 + $0x268] sm:$0xf0]  ;;  %2161 = vmatmul.bf16.vlgmr.msra.gmra.mxu3 %v5395_v53  ;;  %v4389_v19 = vld [vmem:[#allocation2 + $0x628] sm:$0xf]  ;;  %v5731_v36 = vor.u32 %v4686_v28, %v3813_v2 }
  0xcc   : > { %7604 = vst [vmem:[#allocation154_spill] sm:$0xff] %v5702_v42  ;;  %v4830_v40 = vld [vmem:[#allocation2 + $0x664] sm:$0xf0]  ;;  %v5728_v31 = vor.u32 %v4694_v37, %v3879_v4  ;;  %v4822_v48 = vld [vmem:[#allocation2 + $0x62c] sm:$0xf] }
  0xcd   : > { %7605 = vst [vmem:[#allocation155_spill] sm:$0xff] %v5708_v14  ;;  %2168 = vmatpush.bf16.msrb.mxu0 %v5702_v42  ;;  %2180 = vmatpush.bf16.msrb.mxu1 %v5708_v14  ;;  %v4391_v42 = vld [vmem:[#allocation2 + $0x668] sm:$0xf0]  ;;  %v3749_v11 = vld [vmem:[#allocation2 + $0x128] sm:$0xf]  ;;  %v5735_v6 = vor.u32 %v4830_v40, %v4389_v19 }
  0xce   : > { %7606 = vst [vmem:[#allocation156_spill] sm:$0xff] %v5710_v13  ;;  %2206 = vmatpush.bf16.msrb.mxu3 %v5710_v13  ;;  %v4678_v1 = vld [vmem:[#allocation2 + $0x1ac] sm:$0xf]  ;;  %v4670_v13 = vld [vmem:[#allocation2 + $0x164] sm:$0xf0]  ;;  %v5737_v52 = vor.u32 %v4822_v48, %v4391_v42 }
  0xcf   : > { %7607 = vst [vmem:[#allocation157_spill] sm:$0xff] %v5713_v61  ;;  %2194 = vmatpush.bf16.msrb.mxu2 %v5713_v61  ;;  %v3815_v14 = vld [vmem:[#allocation2 + $0x1e8] sm:$0xf0]  ;;  %v4325_v37 = vld [vmem:[#allocation2 + $0x5a8] sm:$0xf]  ;;  %v5743_v28 = vor.u32 %v4670_v13, %v3749_v11 }
  0xd0   : > { %7608 = vst [vmem:[#allocation158_spill] sm:$0xff] %v5716_v10  ;;  %v4814_v4 = vld [vmem:[#allocation2 + $0x5e4] sm:$0xf0]  ;;  %v5740_v43 = vor.u32 %v4678_v1, %v3815_v14  ;;  %v4806_v47 = vld [vmem:[#allocation2 + $0x5ac] sm:$0xf] }
  0xd1   : > { %7609 = vst [vmem:[#allocation159_spill] sm:$0xff] %v5723_v41  ;;  %2169 = vmatpush.bf16.msrb.mxu0 %v5716_v10  ;;  %2181 = vmatpush.bf16.msrb.mxu1 %v5723_v41  ;;  %v4327_v2 = vld [vmem:[#allocation2 + $0x5e8] sm:$0xf0]  ;;  %v3685_v41 = vld [vmem:[#allocation2 + $0xa8] sm:$0xf]  ;;  %v5747_v42 = vor.u32 %v4814_v4, %v4325_v37 }
  0xd2   : > { %7610 = vst [vmem:[#allocation160_spill] sm:$0xff] %v5725_v20  ;;  %2207 = vmatpush.bf16.msrb.mxu3 %v5725_v20  ;;  %v4662_v10 = vld [vmem:[#allocation2 + $0x12c] sm:$0xf]  ;;  %v4654_v20 = vld [vmem:[#allocation2 + $0xe4] sm:$0xf0]  ;;  %v5749_v19 = vor.u32 %v4806_v47, %v4327_v2 }
  0xd3   : > { %7611 = vst [vmem:[#allocation161_spill] sm:$0xff] %v5728_v31  ;;  %2195 = vmatpush.bf16.msrb.mxu2 %v5728_v31  ;;  %v3751_v61 = vld [vmem:[#allocation2 + $0x168] sm:$0xf0]  ;;  %v4261_v1 = vld [vmem:[#allocation2 + $0x528] sm:$0xf]  ;;  %v5755_v48 = vor.u32 %v4654_v20, %v3685_v41 }
  0xd4   : > { %7612 = vst [vmem:[#allocation162_spill] sm:$0xff] %v5731_v36  ;;  %v4798_v14 = vld [vmem:[#allocation2 + $0x564] sm:$0xf0]  ;;  %v5752_v40 = vor.u32 %v4662_v10, %v3751_v61  ;;  %v4790_v11 = vld [vmem:[#allocation2 + $0x52c] sm:$0xf] }
  0xd5   : > { %7613 = vst [vmem:[#allocation163_spill] sm:$0xff] %v5735_v6  ;;  %2170 = vmatpush.bf16.msrb.mxu0 %v5731_v36  ;;  %2182 = vmatpush.bf16.msrb.mxu1 %v5735_v6  ;;  %v4263_v13 = vld [vmem:[#allocation2 + $0x568] sm:$0xf0]  ;;  %v3621_v6 = vld [vmem:[#allocation2 + $0x28] sm:$0xf]  ;;  %v5759_v37 = vor.u32 %v4798_v14, %v4261_v1 }
  0xd6   : > { %7614 = vst [vmem:[#allocation164_spill] sm:$0xff] %v5737_v52  ;;  %2208 = vmatpush.bf16.msrb.mxu3 %v5737_v52  ;;  %v4646_v36 = vld [vmem:[#allocation2 + $0xac] sm:$0xf]  ;;  %v4638_v52 = vld [vmem:[#allocation2 + $0x64] sm:$0xf0]  ;;  %v5761_v4 = vor.u32 %v4790_v11, %v4263_v13 }
  0xd7   : > { %7615 = vst [vmem:[#allocation165_spill] sm:$0xff] %v5740_v43  ;;  %2196 = vmatpush.bf16.msrb.mxu2 %v5740_v43  ;;  %v3687_v31 = vld [vmem:[#allocation2 + $0xe8] sm:$0xf0]  ;;  %v4197_v10 = vld [vmem:[#allocation2 + $0x4a8] sm:$0xf]  ;;  %v5767_v43 = vor.u32 %v4638_v52, %v3621_v6 }
  0xd8   : > { %7616 = vst [vmem:[#allocation166_spill] sm:$0xff] %v5743_v28  ;;  %v4077_v61 = vld [vmem:[#allocation2 + $0x3b0] sm:$0xf]  ;;  %v4782_v2 = vld [vmem:[#allocation2 + $0x4e4] sm:$0xf0]  ;;  %v5764_v41 = vor.u32 %v4646_v36, %v3687_v31 }
  0xd9   : > { %7617 = vst [vmem:[#allocation167_spill] sm:$0xff] %v5747_v42  ;;  %2171 = vmatpush.bf16.msrb.mxu0 %v5743_v28  ;;  %2183 = vmatpush.bf16.msrb.mxu1 %v5747_v42  ;;  %v4751_v47 = vld [vmem:[#allocation2 + $0x3ec] sm:$0xf0]  ;;  %v4774_v20 = vld [vmem:[#allocation2 + $0x4ac] sm:$0xf] }
  0xda   : > { %7618 = vst [vmem:[#allocation168_spill] sm:$0xff] %v5749_v19  ;;  %2209 = vmatpush.bf16.msrb.mxu3 %v5749_v19  ;;  %v4199_v28 = vld [vmem:[#allocation2 + $0x4e8] sm:$0xf0]  ;;  %v4133_v1 = vld [vmem:[#allocation2 + $0x428] sm:$0xf]  ;;  %v5769_v14 = vor.u32 %v4751_v47, %v4077_v61 }
  0xdb   : > { %7619 = vst [vmem:[#allocation169_spill] sm:$0xff] %v5752_v40  ;;  %2197 = vmatpush.bf16.msrb.mxu2 %v5752_v40  ;;  %v4630_v42 = vld [vmem:[#allocation2 + $0x2c] sm:$0xf]  ;;  %v4743_v11 = vld [vmem:[#allocation2 + $0x3b4] sm:$0xf]  ;;  %v5773_v40 = vor.u32 %v4782_v2, %v4197_v10  ;;  %v5775_v36 = vor.u32 %v4774_v20, %v4199_v28 }
  0xdc   : > { %7620 = vst [vmem:[#allocation170_spill] sm:$0xff] %v5755_v48  ;;  %v3623_v19 = vld [vmem:[#allocation2 + $0x68] sm:$0xf0]  ;;  %v4079_v13 = vld [vmem:[#allocation2 + $0x3f0] sm:$0xf0] }
  0xdd   : > { %7621 = vst [vmem:[#allocation171_spill] sm:$0xff] %v5759_v37  ;;  %2172 = vmatpush.bf16.msrb.mxu0 %v5755_v48  ;;  %2184 = vmatpush.bf16.msrb.mxu1 %v5759_v37  ;;  %v4766_v31 = vld [vmem:[#allocation2 + $0x464] sm:$0xf0]  ;;  %v4013_v63 = vld [vmem:[#allocation2 + $0x330] sm:$0xf]  ;;  %v5778_v6 = vor.u32 %v4630_v42, %v3623_v19  ;;  %v5781_v37 = vor.u32 %v4743_v11, %v4079_v13 }
  0xde   : > { %7622 = vst [vmem:[#allocation172_spill] sm:$0xff] %v5761_v4  ;;  %2210 = vmatpush.bf16.msrb.mxu3 %v5761_v4  ;;  %v4735_v48 = vld [vmem:[#allocation2 + $0x36c] sm:$0xf0]  ;;  %v4758_v52 = vld [vmem:[#allocation2 + $0x42c] sm:$0xf]  ;;  %v5788_v42 = vor.u32 %v4766_v31, %v4133_v1 }
  0xdf   : > { %7623 = vst [vmem:[#allocation173_spill] sm:$0xff] %v5764_v41  ;;  %2198 = vmatpush.bf16.msrb.mxu2 %v5764_v41  ;;  %v4135_v61 = vld [vmem:[#allocation2 + $0x468] sm:$0xf0]  ;;  %v4589_v47 = vld [vmem:[#allocation2 + $0x7b0] sm:$0xf]  ;;  %v5784_v28 = vor.u32 %v4735_v48, %v4013_v63 }
  0xe0   : > { %7624 = vst [vmem:[#allocation174_spill] sm:$0xff] %v5767_v43  ;;  %v4879_v55 = vld [vmem:[#allocation2 + $0x7ec] sm:$0xf0]  ;;  %v4871_v4 = vld [vmem:[#allocation2 + $0x7b4] sm:$0xf]  ;;  %v5790_v19 = vor.u32 %v4758_v52, %v4135_v61  ;;  %v5804_v52 = vld [vmem:[%s6955_s2] sm:$0xff] }
  0xe1   : > { %7625 = vst [vmem:[#allocation175_spill] sm:$0xff] %v5769_v14  ;;  %2173 = vmatpush.bf16.msrb.mxu0 %v5767_v43  ;;  %v4591_v10 = vld [vmem:[#allocation2 + $0x7f0] sm:$0xf0]  ;;  %2185 = vmatpush.bf16.msrb.mxu1 %v5773_v40  ;;  %v3949_v43 = vld [vmem:[#allocation2 + $0x2b0] sm:$0xf]  ;;  %v5793_v11 = vor.u32 %v4879_v55, %v4589_v47 }
  0xe2   : > { %7626 = vst [vmem:[#allocation176_spill] sm:$0xff] %v5773_v40  ;;  %v4727_v2 = vld [vmem:[#allocation2 + $0x334] sm:$0xf]  ;;  %2211 = vmatpush.bf16.msrb.mxu3 %v5775_v36  ;;  %v4719_v41 = vld [vmem:[#allocation2 + $0x2ec] sm:$0xf0]  ;;  %v5795_v13 = vor.u32 %v4871_v4, %v4591_v10 }
  0xe3   : > { %7627 = vst [vmem:[#allocation177_spill] sm:$0xff] %v5775_v36  ;;  %v4015_v20 = vld [vmem:[#allocation2 + $0x370] sm:$0xf0]  ;;  %2199 = vmatpush.bf16.msrb.mxu2 %v5778_v6  ;;  %v4525_v63 = vld [vmem:[#allocation2 + $0x730] sm:$0xf]  ;;  %v5807_v55 = vor.u32 %v4719_v41, %v3949_v43 }
  0xe4   : > { %7628 = vst [vmem:[#allocation178_spill] sm:$0xff] %v5778_v6  ;;  %v4863_v48 = vld [vmem:[#allocation2 + $0x76c] sm:$0xf0]  ;;  %2174 = vmatmul.bf16.vlgmr.msrb.gmra.mxu0 %v5349_v0  ;;  %v5799_v36 = vor.u32 %v4727_v2, %v4015_v20  ;;  %v4855_v1 = vld [vmem:[#allocation2 + $0x734] sm:$0xf] }
  0xe5   : > { %7629 = vst [vmem:[#allocation179_spill] sm:$0xff] %v5781_v37  ;;  %2218 = vmatpush.bf16.msra.mxu0 %v5769_v14  ;;  %v1915_v14 = vpop.f32.mrf.mxu0  ;;  %v4527_v31 = vld [vmem:[#allocation2 + $0x770] sm:$0xf0]  ;;  %2186 = vmatpush.bf16.msrb.mxu1 %v5788_v42  ;;  %v3885_v47 = vld [vmem:[#allocation2 + $0x230] sm:$0xf]  ;;  %v5813_v2 = vor.u32 %v4863_v48, %v4525_v63 }
  0xe6   : > { %7630 = vst [vmem:[#allocation180_spill] sm:$0xff] %v5784_v28  ;;  %v4711_v4 = vld [vmem:[#allocation2 + $0x2b4] sm:$0xf]  ;;  %2212 = vmatpush.bf16.msrb.mxu3 %v5790_v19  ;;  %v4703_v10 = vld [vmem:[#allocation2 + $0x26c] sm:$0xf0]  ;;  %v5815_v20 = vor.u32 %v4855_v1, %v4527_v31  ;;  %2200 = vmatmul.bf16.vlgmr.msrb.gmra.mxu2 %v5349_v0 }
  0xe7   : > { %7631 = vst [vmem:[#allocation181_spill] sm:$0xff] %v5788_v42  ;;  %2244 = vmatpush.bf16.msra.mxu2 %v5781_v37  ;;  %v3951_v61 = vld [vmem:[#allocation2 + $0x2f0] sm:$0xf0]  ;;  %v4461_v43 = vld [vmem:[#allocation2 + $0x6b0] sm:$0xf]  ;;  %v1941_v42 = vpop.f32.mrf.mxu2 }
  0xe8   : > { %7632 = vst [vmem:[#allocation182_spill] sm:$0xff] %v5790_v19  ;;  %v4847_v41 = vld [vmem:[#allocation2 + $0x6ec] sm:$0xf0]  ;;  %v5821_v37 = vor.u32 %v4711_v4, %v3951_v61  ;;  %v4839_v19 = vld [vmem:[#allocation2 + $0x6b4] sm:$0xf]  ;;  %2187 = vmatmul.bf16.vlgmr.msrb.gmra.mxu1 %v5395_v53 }
  0xe9   : > { %7633 = vst [vmem:[#allocation183_spill] sm:$0xff] %v5793_v11  ;;  %2219 = vmatpush.bf16.msra.mxu0 %v5784_v28  ;;  %2231 = vmatpush.bf16.msra.mxu1 %v5793_v11  ;;  %v5818_v28 = vperm.slane %v5804_v52, 0  ;;  %v4463_v6 = vld [vmem:[#allocation2 + $0x6f0] sm:$0xf0]  ;;  %v5824_v11 = vor.u32 %v4703_v10, %v3885_v47  ;;  %v3821_v1 = vld [vmem:[#allocation2 + $0x1b0] sm:$0xf]  ;;  %v5831_v4 = vor.u32 %v4847_v41, %v4461_v43 }
  0xea   : > { %7634 = vst [vmem:[#allocation184_spill] sm:$0xff] %v5795_v13  ;;  %2257 = vmatpush.bf16.msra.mxu3 %v5795_v13  ;;  %v4695_v63 = vld [vmem:[#allocation2 + $0x234] sm:$0xf]  ;;  %v4687_v31 = vld [vmem:[#allocation2 + $0x1ec] sm:$0xf0]  ;;  %v5833_v61 = vor.u32 %v4839_v19, %v4463_v6  ;;  %v5843_v6 = vperm.slane %v5804_v52, 1 }
  0xeb   : > { %7635 = vst [vmem:[#allocation185_spill] sm:$0xff] %v5799_v36  ;;  %2245 = vmatpush.bf16.msra.mxu2 %v5799_v36  ;;  %v3887_v48 = vld [vmem:[#allocation2 + $0x270] sm:$0xf0]  ;;  %2213 = vmatmul.bf16.vlgmr.msrb.gmra.mxu3 %v5395_v53  ;;  %v4397_v47 = vld [vmem:[#allocation2 + $0x630] sm:$0xf] }
  0xec   : > { %7636 = vst [vmem:[#allocation186_spill] sm:$0xff] %v5807_v55  ;;  %v4831_v36 = vld [vmem:[#allocation2 + $0x66c] sm:$0xf0]  ;;  %v5837_v13 = vor.u32 %v4695_v63, %v3887_v48  ;;  %v4823_v40 = vld [vmem:[#allocation2 + $0x634] sm:$0xf] }
  0xed   : > { %7637 = vst [vmem:[#allocation187_spill] sm:$0xff] %v5813_v2  ;;  %2220 = vmatpush.bf16.msra.mxu0 %v5807_v55  ;;  %2232 = vmatpush.bf16.msra.mxu1 %v5813_v2  ;;  %v1917_v10 = vpop.f32.mrf.mxu0  ;;  %v1916_v55 = vadd.f32 %v1915_v14, %v5818_v28  ;;  %v4399_v60 = vld [vmem:[#allocation2 + $0x670] sm:$0xf0]  ;;  %v5840_v2 = vor.u32 %v4687_v31, %v3821_v1  ;;  %v3757_v19 = vld [vmem:[#allocation2 + $0x130] sm:$0xf] }
  0xee   : > { %7638 = vst [vmem:[#allocation188_spill] sm:$0xff] %v5815_v20  ;;  %2258 = vmatpush.bf16.msra.mxu3 %v5815_v20  ;;  %v4679_v20 = vld [vmem:[#allocation2 + $0x1b4] sm:$0xf]  ;;  %v4671_v41 = vld [vmem:[#allocation2 + $0x16c] sm:$0xf0]  ;;  %v1928_v10 = vpop.f32.mrf.mxu1  ;;  %v5847_v14 = vor.u32 %v4831_v36, %v4397_v47  ;;  %v5849_v63 = vor.u32 %v4823_v40, %v4399_v60  ;;  %v1942_v60 = vadd.f32 %v1941_v42, %v5843_v6  ;;  %v1954_v42 = vpop.f32.mrf.mxu3 }
  0xef   : > { %7639 = vst [vmem:[#allocation189_spill] sm:$0xff] %v5818_v28  ;;  %2246 = vmatpush.bf16.msra.mxu2 %v5821_v37  ;;  %v3823_v43 = vld [vmem:[#allocation2 + $0x1f0] sm:$0xf0]  ;;  %v4333_v48 = vld [vmem:[#allocation2 + $0x5b0] sm:$0xf]  ;;  %v1943_v27 = vpop.f32.mrf.mxu2 }
  0xf0   : > { %7640 = vst [vmem:[#allocation190_spill] sm:$0xff] %v5821_v37  ;;  %v4815_v1 = vld [vmem:[#allocation2 + $0x5ec] sm:$0xf0]  ;;  %v5854_v31 = vor.u32 %v4679_v20, %v3823_v43  ;;  %v4807_v37 = vld [vmem:[#allocation2 + $0x5b4] sm:$0xf] }
  0xf1   : > { %7641 = vst [vmem:[#allocation191_spill] sm:$0xff] %v5824_v11  ;;  %2221 = vmatpush.bf16.msra.mxu0 %v5824_v11  ;;  %2233 = vmatpush.bf16.msra.mxu1 %v5831_v4  ;;  %v5851_v11 = vadd.f32 %v1928_v10, %v1916_v55  ;;  %v4335_v28 = vld [vmem:[#allocation2 + $0x5f0] sm:$0xf0]  ;;  %v3693_v40 = vld [vmem:[#allocation2 + $0xb0] sm:$0xf]  ;;  %v5862_v55 = vor.u32 %v4815_v1, %v4333_v48 }
  0xf2   : > { %7642 = vst [vmem:[#allocation192_spill] sm:$0xff] %v5831_v4  ;;  %2259 = vmatpush.bf16.msra.mxu3 %v5833_v61  ;;  %v5857_v4 = vor.u32 %v4671_v41, %v3757_v19  ;;  %v3759_v36 = vld [vmem:[#allocation2 + $0x170] sm:$0xf0]  ;;  %v4655_v47 = vld [vmem:[#allocation2 + $0xec] sm:$0xf0]  ;;  %v5864_v20 = vor.u32 %v4807_v37, %v4335_v28  ;;  %v5872_v48 = vadd.f32 %v1954_v42, %v1942_v60 }
  0xf3   : > { %7643 = vst [vmem:[#allocation193_spill] sm:$0xff] %v5833_v61  ;;  %2247 = vmatpush.bf16.msra.mxu2 %v5837_v13  ;;  %v4663_v61 = vld [vmem:[#allocation2 + $0x134] sm:$0xf]  ;;  %v4269_v43 = vld [vmem:[#allocation2 + $0x530] sm:$0xf] }
  0xf4   : > { %7644 = vst [vmem:[#allocation194_spill] sm:$0xff] %v5837_v13  ;;  %v4799_v19 = vld [vmem:[#allocation2 + $0x56c] sm:$0xf0]  ;;  %v5867_v41 = vor.u32 %v4663_v61, %v3759_v36  ;;  %v4791_v10 = vld [vmem:[#allocation2 + $0x534] sm:$0xf]  ;;  %v5870_v13 = vor.u32 %v4655_v47, %v3693_v40 }
  0xf5   : > { %7645 = vst [vmem:[#allocation195_spill] sm:$0xff] %v5840_v2  ;;  %2222 = vmatpush.bf16.msra.mxu0 %v5840_v2  ;;  %2234 = vmatpush.bf16.msra.mxu1 %v5847_v14  ;;  %v1967_v27 = vpop.f32.mrf.mxu0  ;;  %v4271_v2 = vld [vmem:[#allocation2 + $0x570] sm:$0xf0]  ;;  %v4205_v37 = vld [vmem:[#allocation2 + $0x4b0] sm:$0xf]  ;;  %v5876_v61 = vor.u32 %v4799_v19, %v4269_v43 }
  0xf6   : > { %7646 = vst [vmem:[#allocation196_spill] sm:$0xff] %v5843_v6  ;;  %2260 = vmatpush.bf16.msra.mxu3 %v5849_v63  ;;  %v3629_v28 = vld [vmem:[#allocation2 + $0x30] sm:$0xf]  ;;  %v1930_v6 = vpop.f32.mrf.mxu1  ;;  %v5878_v36 = vor.u32 %v4791_v10, %v4271_v2  ;;  %v4752_v40 = vld [vmem:[#allocation2 + $0x3f4] sm:$0xf0] }
  0xf7   : > { %7647 = vst [vmem:[#allocation197_spill] sm:$0xff] %v5847_v14  ;;  %2248 = vmatpush.bf16.msra.mxu2 %v5854_v31  ;;  %v4647_v14 = vld [vmem:[#allocation2 + $0xb4] sm:$0xf]  ;;  %v4639_v1 = vld [vmem:[#allocation2 + $0x6c] sm:$0xf0]  ;;  %v1993_v2 = vpop.f32.mrf.mxu2 }
  0xf8   : > { %7648 = vst [vmem:[#allocation198_spill] sm:$0xff] %v5849_v63  ;;  %v3695_v63 = vld [vmem:[#allocation2 + $0xf0] sm:$0xf0]  ;;  %v5887_v6 = vor.u32 %v4639_v1, %v3629_v28  ;;  %v4141_v10 = vld [vmem:[#allocation2 + $0x430] sm:$0xf] }
  0xf9   : > { %7649 = vst [vmem:[#allocation199_spill] sm:$0xff] %v5851_v11  ;;  %2223 = vmatpush.bf16.msra.mxu0 %v5857_v4  ;;  %2235 = vmatpush.bf16.msra.mxu1 %v5862_v55  ;;  %v5881_v47 = vor.u32 %v4647_v14, %v3695_v63  ;;  %v4775_v60 = vld [vmem:[#allocation2 + $0x4b4] sm:$0xf]  ;;  %v4087_v11 = vld [vmem:[#allocation2 + $0x3f8] sm:$0xf0] }
  0xfa   : > { %7650 = vst [vmem:[#allocation200_spill] sm:$0xff] %v5854_v31  ;;  %2261 = vmatpush.bf16.msra.mxu3 %v5864_v20  ;;  %v4783_v31 = vld [vmem:[#allocation2 + $0x4ec] sm:$0xf0]  ;;  %v4207_v42 = vld [vmem:[#allocation2 + $0x4f0] sm:$0xf0] }
  0xfb   : > { %7651 = vst [vmem:[#allocation201_spill] sm:$0xff] %v5857_v4  ;;  %v4085_v4 = vld [vmem:[#allocation2 + $0x3b8] sm:$0xf]  ;;  %2249 = vmatpush.bf16.msra.mxu2 %v5867_v41  ;;  %v4631_v43 = vld [vmem:[#allocation2 + $0x34] sm:$0xf]  ;;  %v5893_v14 = vor.u32 %v4783_v31, %v4205_v37  ;;  %v5895_v63 = vor.u32 %v4775_v60, %v4207_v42 }
  0xfc   : > { %7652 = vst [vmem:[#allocation202_spill] sm:$0xff] %v5862_v55  ;;  %v3631_v19 = vld [vmem:[#allocation2 + $0x70] sm:$0xf0]  ;;  %v4744_v55 = vld [vmem:[#allocation2 + $0x3bc] sm:$0xf] }
  0xfd   : > { %7653 = vst [vmem:[#allocation203_spill] sm:$0xff] %v5864_v20  ;;  %2224 = vmatpush.bf16.msra.mxu0 %v5870_v13  ;;  %v5889_v20 = vor.u32 %v4752_v40, %v4085_v4  ;;  %2236 = vmatpush.bf16.msra.mxu1 %v5876_v61  ;;  %v4736_v28 = vld [vmem:[#allocation2 + $0x374] sm:$0xf0]  ;;  %v1969_v1 = vpop.f32.mrf.mxu0  ;;  %v5898_v15 = vor.u32 %v4631_v43, %v3631_v19  ;;  %v4759_v4 = vld [vmem:[#allocation2 + $0x434] sm:$0xf]  ;;  %v5908_v19 = vperm.slane %v5804_v52, 3 }
  0xfe   : > { %7654 = vst [vmem:[#allocation204_spill] sm:$0xff] %v5867_v41  ;;  %2262 = vmatpush.bf16.msra.mxu3 %v5878_v36  ;;  %v4767_v41 = vld [vmem:[#allocation2 + $0x46c] sm:$0xf0]  ;;  %v4143_v40 = vld [vmem:[#allocation2 + $0x470] sm:$0xf0]  ;;  %v5902_v37 = vor.u32 %v4744_v55, %v4087_v11  ;;  %v1980_v11 = vpop.f32.mrf.mxu1 }
  0xff   : > { %7655 = vst [vmem:[#allocation205_spill] sm:$0xff] %v5870_v13  ;;  %v4021_v13 = vld [vmem:[#allocation2 + $0x338] sm:$0xf]  ;;  %2250 = vmatpush.bf16.msra.mxu2 %v5881_v47  ;;  %v4872_v60 = vld [vmem:[#allocation2 + $0x7bc] sm:$0xf] }
 0x100   : > { %7656 = vst [vmem:[#allocation206_spill] sm:$0xff] %v5872_v48  ;;  %v5884_v48 = vperm.slane %v5804_v52, 2  ;;  %v4597_v35 = vld [vmem:[#allocation2 + $0x7b8] sm:$0xf]  ;;  %v4599_v42 = vld [vmem:[#allocation2 + $0x7f8] sm:$0xf0]  ;;  %v5905_v1 = vor.u32 %v4736_v28, %v4021_v13 }
 0x101   : > { %7657 = vst [vmem:[#allocation207_spill] sm:$0xff] %v5876_v61  ;;  %v1956_v61 = vpop.f32.mrf.mxu3  ;;  %2225 = vmatpush.bf16.msra.mxu0 %v5887_v6  ;;  %v4880_v31 = vld [vmem:[#allocation2 + $0x7f4] sm:$0xf0]  ;;  %v4023_v43 = vld [vmem:[#allocation2 + $0x378] sm:$0xf0]  ;;  %2237 = vmatpush.bf16.msra.mxu1 %v5893_v14  ;;  %v5919_v28 = vor.u32 %v4872_v60, %v4599_v42 }
 0x102   : > { %7658 = vst [vmem:[#allocation208_spill] sm:$0xff] %v5878_v36  ;;  %v1968_v59 = vadd.f32 %v1967_v27, %v5884_v48  ;;  %2263 = vmatpush.bf16.msra.mxu3 %v5895_v63  ;;  %v5912_v27 = vor.u32 %v4767_v41, %v4141_v10  ;;  %v5914_v61 = vor.u32 %v4759_v4, %v4143_v40  ;;  %v3957_v55 = vld [vmem:[#allocation2 + $0x2b8] sm:$0xf]  ;;  %v4856_v4 = vld [vmem:[#allocation2 + $0x73c] sm:$0xf] }
 0x103   : > { %7659 = vst [vmem:[#allocation209_spill] sm:$0xff] %v5881_v47  ;;  %v4728_v47 = vld [vmem:[#allocation2 + $0x33c] sm:$0xf]  ;;  %2251 = vmatpush.bf16.msra.mxu2 %v5898_v15  ;;  %v5917_v13 = vor.u32 %v4880_v31, %v4597_v35  ;;  %v4864_v41 = vld [vmem:[#allocation2 + $0x774] sm:$0xf0]  ;;  %v1994_v35 = vadd.f32 %v1993_v2, %v5908_v19 }
 0x104   : > { %7660 = vst [vmem:[#allocation210_spill] sm:$0xff] %v5884_v48  ;;  %v5921_v36 = vadd.f32 %v1980_v11, %v1968_v59  ;;  %2226 = vmatmul.bf16.vlgmr.msra.gmra.mxu0 %v5349_v0  ;;  %v5925_v10 = vor.u32 %v4728_v47, %v4023_v43  ;;  %v4535_v40 = vld [vmem:[#allocation2 + $0x778] sm:$0xf0]  ;;  %v3893_v59 = vld [vmem:[#allocation2 + $0x238] sm:$0xf] }
 0x105   : > { %7661 = vst [vmem:[#allocation211_spill] sm:$0xff] %v5887_v6  ;;  %2270 = vmatpush.bf16.msrb.mxu0 %v5889_v20  ;;  %v4720_v6 = vld [vmem:[#allocation2 + $0x2f4] sm:$0xf0]  ;;  %v4712_v60 = vld [vmem:[#allocation2 + $0x2bc] sm:$0xf]  ;;  %2238 = vmatpush.bf16.msra.mxu1 %v5912_v27 }
 0x106   : > { %7662 = vst [vmem:[#allocation212_spill] sm:$0xff] %v5889_v20  ;;  %v4533_v20 = vld [vmem:[#allocation2 + $0x738] sm:$0xf]  ;;  %v5929_v31 = vor.u32 %v4720_v6, %v3957_v55  ;;  %v3959_v42 = vld [vmem:[#allocation2 + $0x2f8] sm:$0xf0]  ;;  %2264 = vmatpush.bf16.msra.mxu3 %v5914_v61  ;;  %2252 = vmatmul.bf16.vlgmr.msra.gmra.mxu2 %v5349_v0 }
 0x107   : > { %7663 = vst [vmem:[#allocation213_spill] sm:$0xff] %v5893_v14  ;;  %2296 = vmatpush.bf16.msrb.mxu2 %v5902_v37  ;;  %v4704_v11 = vld [vmem:[#allocation2 + $0x274] sm:$0xf0]  ;;  %v5935_v47 = vor.u32 %v4864_v41, %v4533_v20  ;;  %v5940_v55 = vor.u32 %v4712_v60, %v3959_v42  ;;  %v3895_v20 = vld [vmem:[#allocation2 + $0x278] sm:$0xf0]  ;;  %v1982_v41 = vpop.f32.mrf.mxu1 }
 0x108   : > { %7664 = vst [vmem:[#allocation214_spill] sm:$0xff] %v5895_v63  ;;  %v1995_v63 = vpop.f32.mrf.mxu2  ;;  %v4469_v43 = vld [vmem:[#allocation2 + $0x6b8] sm:$0xf]  ;;  %2239 = vmatmul.bf16.vlgmr.msra.gmra.mxu1 %v5395_v53  ;;  %v4407_v41 = vld [vmem:[#allocation2 + $0x678] sm:$0xf0] }
 0x109   : > { %7665 = vst [vmem:[#allocation215_spill] sm:$0xff] %v5898_v15  ;;  %2271 = vmatpush.bf16.msrb.mxu0 %v5905_v1  ;;  %2283 = vmatpush.bf16.msrb.mxu1 %v5917_v13  ;;  %v5937_v63 = vor.u32 %v4856_v4, %v4535_v40  ;;  %v2006_v6 = vpop.f32.mrf.mxu3  ;;  %v4848_v2 = vld [vmem:[#allocation2 + $0x6f4] sm:$0xf0] }
 0x10a   : > { %7666 = vst [vmem:[#allocation216_spill] sm:$0xff] %v5902_v37  ;;  %2309 = vmatpush.bf16.msrb.mxu3 %v5919_v28  ;;  %v4471_v37 = vld [vmem:[#allocation2 + $0x6f8] sm:$0xf0]  ;;  %v3829_v4 = vld [vmem:[#allocation2 + $0x1b8] sm:$0xf] }
 0x10b   : > { %7667 = vst [vmem:[#allocation217_spill] sm:$0xff] %v5905_v1  ;;  %2297 = vmatpush.bf16.msrb.mxu2 %v5925_v10  ;;  %v4840_v1 = vld [vmem:[#allocation2 + $0x6bc] sm:$0xf]  ;;  %v4688_v40 = vld [vmem:[#allocation2 + $0x1f4] sm:$0xf0]  ;;  %2265 = vmatmul.bf16.vlgmr.msra.gmra.mxu3 %v5395_v53 }
 0x10c   : > { %7668 = vst [vmem:[#allocation218_spill] sm:$0xff] %v5908_v19  ;;  %v5954_v60 = vor.u32 %v4840_v1, %v4471_v37  ;;  %v4405_v42 = vld [vmem:[#allocation2 + $0x638] sm:$0xf] }
 0x10d   : > { %7669 = vst [vmem:[#allocation219_spill] sm:$0xff] %v5912_v27  ;;  %2272 = vmatpush.bf16.msrb.mxu0 %v5929_v31  ;;  %2284 = vmatpush.bf16.msrb.mxu1 %v5935_v47  ;;  %v3765_v37 = vld [vmem:[#allocation2 + $0x138] sm:$0xf] }
 0x10e   : > { %7670 = vst [vmem:[#allocation220_spill] sm:$0xff] %v5914_v61  ;;  %v5942_v61 = vadd.f32 %v2006_v6, %v1994_v35  ;;  %2310 = vmatpush.bf16.msrb.mxu3 %v5937_v63  ;;  %v5952_v35 = vor.u32 %v4848_v2, %v4469_v43  ;;  %v4824_v6 = vld [vmem:[#allocation2 + $0x63c] sm:$0xf]  ;;  %v4672_v1 = vld [vmem:[#allocation2 + $0x174] sm:$0xf0] }
 0x10f   : > { %7671 = vst [vmem:[#allocation221_spill] sm:$0xff] %v5917_v13  ;;  %v5945_v13 = vor.u32 %v4704_v11, %v3893_v59  ;;  %v4832_v59 = vld [vmem:[#allocation2 + $0x674] sm:$0xf0]  ;;  %2298 = vmatpush.bf16.msrb.mxu2 %v5940_v55  ;;  %v4680_v43 = vld [vmem:[#allocation2 + $0x1bc] sm:$0xf] }
 0x110   : > { %7672 = vst [vmem:[#allocation222_spill] sm:$0xff] %v5919_v28  ;;  %v4696_v28 = vld [vmem:[#allocation2 + $0x23c] sm:$0xf]  ;;  %v4816_v15 = vld [vmem:[#allocation2 + $0x5f4] sm:$0xf0] }
 0x111   : > { %7673 = vst [vmem:[#allocation223_spill] sm:$0xff] %v5921_v36  ;;  %v5957_v11 = vor.u32 %v4696_v28, %v3895_v20  ;;  %2273 = vmatpush.bf16.msrb.mxu0 %v5945_v13  ;;  %v3831_v2 = vld [vmem:[#allocation2 + $0x1f8] sm:$0xf0]  ;;  %2285 = vmatpush.bf16.msrb.mxu1 %v5952_v35  ;;  %v5967_v28 = vor.u32 %v4832_v59, %v4405_v42  ;;  %v3701_v59 = vld [vmem:[#allocation2 + $0xb8] sm:$0xf] }
 0x112   : > { %7674 = vst [vmem:[#allocation224_spill] sm:$0xff] %v5925_v10  ;;  %v2019_v10 = vpop.f32.mrf.mxu0  ;;  %2311 = vmatpush.bf16.msrb.mxu3 %v5954_v60  ;;  %v5969_v20 = vor.u32 %v4824_v6, %v4407_v41  ;;  %v3767_v42 = vld [vmem:[#allocation2 + $0x178] sm:$0xf0]  ;;  %v4656_v6 = vld [vmem:[#allocation2 + $0xf4] sm:$0xf0] }
 0x113   : > { %7675 = vst [vmem:[#allocation225_spill] sm:$0xff] %v5929_v31  ;;  %v5960_v31 = vperm.slane %v5804_v52, 4  ;;  %2299 = vmatpush.bf16.msrb.mxu2 %v5957_v11  ;;  %v4768_v14 = vld [vmem:[#allocation2 + $0x474] sm:$0xf0] }
 0x114   : > { %7676 = vst [vmem:[#allocation226_spill] sm:$0xff] %v5935_v47  ;;  %v5963_v47 = vor.u32 %v4688_v40, %v3829_v4  ;;  %v4808_v4 = vld [vmem:[#allocation2 + $0x5bc] sm:$0xf] }
 0x115   : > { %7677 = vst [vmem:[#allocation227_spill] sm:$0xff] %v5937_v63  ;;  %v2008_v63 = vpop.f32.mrf.mxu3  ;;  %v4343_v40 = vld [vmem:[#allocation2 + $0x5f8] sm:$0xf0]  ;;  %v2020_v27 = vadd.f32 %v2019_v10, %v5960_v31  ;;  %2286 = vmatpush.bf16.msrb.mxu1 %v5967_v28  ;;  %v4800_v10 = vld [vmem:[#allocation2 + $0x574] sm:$0xf0] }
 0x116   : > { %7678 = vst [vmem:[#allocation228_spill] sm:$0xff] %v5940_v55  ;;  %v4341_v55 = vld [vmem:[#allocation2 + $0x5b8] sm:$0xf]  ;;  %2274 = vmatpush.bf16.msrb.mxu0 %v5963_v47  ;;  %2312 = vmatpush.bf16.msrb.mxu3 %v5969_v20  ;;  %v5982_v41 = vor.u32 %v4808_v4, %v4343_v40  ;;  %v5993_v4 = vperm.slane %v5804_v52, 5 }
 0x117   : > { %7679 = vst [vmem:[#allocation229_spill] sm:$0xff] %v5942_v61  ;;  %v5980_v63 = vor.u32 %v4816_v15, %v4341_v55  ;;  %v4648_v15 = vld [vmem:[#allocation2 + $0xbc] sm:$0xf]  ;;  %v4213_v40 = vld [vmem:[#allocation2 + $0x4b8] sm:$0xf] }
 0x118   : > { %7680 = vst [vmem:[#allocation230_spill] sm:$0xff] %v5945_v13  ;;  %v5972_v13 = vor.u32 %v4680_v43, %v3831_v2  ;;  %v4277_v43 = vld [vmem:[#allocation2 + $0x538] sm:$0xf]  ;;  %v2032_v2 = vpop.f32.mrf.mxu1  ;;  %v3703_v55 = vld [vmem:[#allocation2 + $0xf8] sm:$0xf0] }
 0x119   : > { %7681 = vst [vmem:[#allocation231_spill] sm:$0xff] %v5952_v35  ;;  %v5976_v35 = vor.u32 %v4672_v1, %v3765_v37  ;;  %v4792_v37 = vld [vmem:[#allocation2 + $0x53c] sm:$0xf]  ;;  %2287 = vmatpush.bf16.msrb.mxu1 %v5980_v63  ;;  %v4603_v61 = vld [vmem:[%s5248_s9 + $0x1] ss:$4 sm:$0x3] }
 0x11a   : > { %7682 = vst [vmem:[#allocation232_spill] sm:$0xff] %v5954_v60  ;;  %v4664_v60 = vld [vmem:[#allocation2 + $0x13c] sm:$0xf]  ;;  %2300 = vmatpush.bf16.msrb.mxu2 %v5972_v13  ;;  %2313 = vmatpush.bf16.msrb.mxu3 %v5982_v41 }
 0x11b   : > { %7683 = vst [vmem:[#allocation233_spill] sm:$0xff] %v5957_v11  ;;  %v4279_v1 = vld [vmem:[#allocation2 + $0x578] sm:$0xf0]  ;;  %v5987_v11 = vadd.f32 %v2032_v2, %v2020_v27  ;;  %2275 = vmatpush.bf16.msrb.mxu0 %v5976_v35  ;;  %v5997_v27 = vor.u32 %v4800_v10, %v4277_v43 }
 0x11c   : > { %7684 = vst [vmem:[#allocation234_spill] sm:$0xff] %v5960_v31  ;;  %v2021_v31 = vpop.f32.mrf.mxu0  ;;  %v4632_v2 = vld [vmem:[#allocation2 + $0x3c] sm:$0xf] }
 0x11d   : > { %7685 = vst [vmem:[#allocation235_spill] sm:$0xff] %v5963_v47  ;;  %v5985_v47 = vor.u32 %v4664_v60, %v3767_v42  ;;  %v5999_v31 = vor.u32 %v4792_v37, %v4279_v1  ;;  %v4784_v60 = vld [vmem:[#allocation2 + $0x4f4] sm:$0xf0]  ;;  %v4776_v42 = vld [vmem:[#allocation2 + $0x4bc] sm:$0xf]  ;;  %v2058_v37 = vpop.f32.mrf.mxu3  ;;  %2288 = vmatpush.bf16.msrb.mxu1 %v5997_v27 }
 0x11e   : > { %7686 = vst [vmem:[#allocation236_spill] sm:$0xff] %v5967_v28  ;;  %v5990_v28 = vor.u32 %v4656_v6, %v3701_v59  ;;  %v4215_v59 = vld [vmem:[#allocation2 + $0x4f8] sm:$0xf0]  ;;  %v6002_v6 = vor.u32 %v4648_v15, %v3703_v55  ;;  %v6012_v1 = vld [vmem:[%s5248_s9 + $0x11] ss:$4 sm:$0x3]  ;;  %v6015_v15 = vor.u32 %v4784_v60, %v4213_v40 }
 0x11f   : > { %7687 = vst [vmem:[#allocation237_spill] sm:$0xff] %v5969_v20  ;;  %v4640_v20 = vld [vmem:[#allocation2 + $0x74] sm:$0xf0]  ;;  %2301 = vmatpush.bf16.msrb.mxu2 %v5985_v47  ;;  %v3639_v43 = vld [vmem:[#allocation2 + $0x78] sm:$0xf0]  ;;  %v6017_v55 = vor.u32 %v4776_v42, %v4215_v59  ;;  %2314 = vmatpush.bf16.msrb.mxu3 %v5999_v31  ;;  %v2346_v40 = vperm.slane %v4603_v61, 0 }
 0x120   : > { %7688 = vst [vmem:[#allocation238_spill] sm:$0xff] %v5972_v13  ;;  %v3637_v13 = vld [vmem:[#allocation2 + $0x38] sm:$0xf]  ;;  %2276 = vmatpush.bf16.msrb.mxu0 %v5990_v28  ;;  %v2350_v60 = vperm.slane %v6012_v1, 0  ;;  %v6033_v59 = vor.u32 %v4632_v2, %v3639_v43 }
 0x121   : > { %7689 = vst [vmem:[#allocation239_spill] sm:$0xff] %v5976_v35  ;;  %v2045_v35 = vpop.f32.mrf.mxu2  ;;  %v6021_v19 = vld [vmem:[%s5248_s9 + $0x19] ss:$4 sm:$0x3]  ;;  %2289 = vmatpush.bf16.msrb.mxu1 %v6015_v15 }
 0x122   : > { %7690 = vst [vmem:[#allocation240_spill] sm:$0xff] %v5980_v63  ;;  %v2046_v10 = vadd.f32 %v2045_v35, %v5993_v4  ;;  %v4149_v63 = vld [vmem:[#allocation2 + $0x438] sm:$0xf]  ;;  %v2034_v35 = vpop.f32.mrf.mxu1  ;;  %v2352_v42 = vperm.slane %v6021_v19, 0 }
 0x123   : > { %7691 = vst [vmem:[#allocation241_spill] sm:$0xff] %v5982_v41  ;;  %v6008_v41 = vor.u32 %v4640_v20, %v3637_v13  ;;  %v6028_v20 = vld [vmem:[%s5248_s9 + $0x21] ss:$4 sm:$0x3]  ;;  %2302 = vmatpush.bf16.msrb.mxu2 %v6002_v6  ;;  %v2382_v35 = vpack.c.bf16 %v2350_v60, %v2350_v60  ;;  %2315 = vmatpush.bf16.msrb.mxu3 %v6017_v55 }
 0x124   : > { %7692 = vst [vmem:[#allocation242_spill] sm:$0xff] %v5985_v47  ;;  %v6025_v13 = vadd.f32 %v2058_v37, %v2046_v10  ;;  %v6038_v10 = vld [vmem:[%s5248_s9 + $0x29] ss:$4 sm:$0x3]  ;;  %v2378_v37 = vpack.c.bf16 %v2346_v40, %v2346_v40  ;;  %v2384_v36 = vpack.c.bf16 %v2352_v42, %v2352_v42  ;;  %v6046_v2 = vor.u32 %v4768_v14, %v4149_v63 }
 0x125   : > { %7693 = vst [vmem:[#allocation243_spill] sm:$0xff] %v5987_v11  ;;  %v6005_v11 = vld [vmem:[%s5248_s9 + $0x9] ss:$4 sm:$0x3]  ;;  %2277 = vmatpush.bf16.msrb.mxu0 %v6008_v41  ;;  %v2414_v43 = vunpack.c.l.b16 %v2382_v35  ;;  %v2356_v60 = vperm.slane %v6038_v10, 0  ;;  %v2347_v14 = vperm.slane %v4603_v61, 1 }
 0x126   : > { %7694 = vst [vmem:[#allocation244_spill] sm:$0xff] %v5990_v28  ;;  %v2348_v47 = vperm.slane %v6005_v11, 0  ;;  %v4760_v28 = vld [vmem:[#allocation2 + $0x43c] sm:$0xf]  ;;  %v2410_v42 = vunpack.c.l.b16 %v2378_v37  ;;  %v2416_v63 = vunpack.c.l.b16 %v2384_v36  ;;  %v2351_v35 = vperm.slane %v6012_v1, 1  ;;  %2290 = vmatpush.bf16.msrb.mxu1 %v6046_v2 }
 0x127   : > { %7695 = vst [vmem:[#allocation245_spill] sm:$0xff] %v5993_v4  ;;  %v4151_v4 = vld [vmem:[#allocation2 + $0x478] sm:$0xf0]  ;;  %2303 = vmatpush.bf16.msrb.mxu2 %v6033_v59  ;;  %v2388_v61 = vpack.c.bf16 %v2356_v60, %v2356_v60 }
 0x128   : > { %7696 = vst [vmem:[#allocation246_spill] sm:$0xff] %v5997_v27  ;;  %v2354_v27 = vperm.slane %v6028_v20, 0  ;;  %2278 = vmatmul.bf16.vlgmr.msrb.gmra.mxu0 %v5349_v0 }
 0x129   : > { %7697 = vst [vmem:[#allocation247_spill] sm:$0xff] %v5999_v31  ;;  %v2380_v31 = vpack.c.bf16 %v2348_v47, %v2348_v47  ;;  %2458 = vmatpush.bf16.msra.mxu0 %v5113_v3  ;;  %v6048_v47 = vor.u32 %v4760_v28, %v4151_v4  ;;  %v2047_v40 = vpop.f32.mrf.mxu2  ;;  %v6057_v28 = vld [vmem:[%s5248_s9 + $0x39] ss:$4 sm:$0x3]  ;;  %v2349_v4 = vperm.slane %v6005_v11, 1  ;;  %2291 = vmatmul.bf16.vlgmr.msrb.gmra.mxu1 %v5395_v53 }
 0x12a   : > { %7698 = vst [vmem:[#allocation248_spill] sm:$0xff] %v6002_v6  ;;  %v2386_v3 = vpack.c.bf16 %v2354_v27, %v2354_v27  ;;  %v2353_v27 = vperm.slane %v6021_v19, 1  ;;  %2471 = vmatpush.bf16.msra.mxu1 %v5115_v7  ;;  %v2360_v11 = vperm.slane %v6057_v28, 0  ;;  %v2379_v40 = vpack.c.bf16 %v2347_v14, %v2347_v14  ;;  %2304 = vmatmul.bf16.vlgmr.msrb.gmra.mxu2 %v5349_v0 }
 0x12b   : > { %7699 = vst [vmem:[#allocation249_spill] sm:$0xff] %v6008_v41  ;;  %v2412_v48 = vunpack.c.l.b16 %v2380_v31  ;;  %2484 = vmatpush.bf16.msra.mxu2 %v5117_v8  ;;  %v2060_v41 = vpop.f32.mrf.mxu3  ;;  %2316 = vmatpush.bf16.msrb.mxu3 %v6048_v47  ;;  %v2430_v19 = vrot.slane %v2416_v63, 5 }
 0x12c   : > { %7700 = vst [vmem:[#allocation250_spill] sm:$0xff] %v6015_v15  ;;  %v2355_v41 = vperm.slane %v6028_v20, 1  ;;  %v2418_v37 = vunpack.c.l.b16 %v2386_v3  ;;  %v2357_v20 = vperm.slane %v6038_v10, 1  ;;  %v2385_v60 = vpack.c.bf16 %v2353_v27, %v2353_v27 }
 0x12d   : > { %7701 = vst [vmem:[#allocation251_spill] sm:$0xff] %v6017_v55  ;;  %v2426_v31 = vrot.slane %v2412_v48, 7  ;;  %2459 = vmatpush.bf16.msra.mxu0 %v5124_v16  ;;  %v2428_v48 = vrot.slane %v2414_v43, 6  ;;  %v2381_v43 = vpack.c.bf16 %v2349_v4, %v2349_v4  ;;  %v2383_v16 = vpack.c.bf16 %v2351_v35, %v2351_v35  ;;  %v2071_v35 = vpop.f32.mrf.mxu0 }
 0x12e   : > { %7702 = vst [vmem:[#allocation252_spill] sm:$0xff] %v6025_v13  ;;  %v6042_v13 = vld [vmem:[%s5248_s9 + $0x31] ss:$4 sm:$0x3]  ;;  %2317 = vmatmul.bf16.vlgmr.msrb.gmra.mxu3 %v5395_v53  ;;  %2472 = vmatpush.bf16.msra.mxu1 %v5126_v17  ;;  %v2411_v0 = vunpack.c.l.b16 %v2379_v40  ;;  %v2417_v4 = vunpack.c.l.b16 %v2385_v60  ;;  %v6081_v53 = vperm.slane %v5804_v52, 6 }
 0x12f   : > { %7703 = vst [vmem:[#allocation253_spill] sm:$0xff] %v6033_v59  ;;  %v2358_v55 = vperm.slane %v6042_v13, 0  ;;  %2497 = vmatpush.bf16.msra.mxu3 %v5120_v12  ;;  %v2427_v36 = vsel %vm588_vm0, %v2426_v31, %v2410_v42  ;;  %2485 = vmatpush.bf16.msra.mxu2 %v5129_v21  ;;  %v2387_v42 = vpack.c.bf16 %v2355_v41, %v2355_v41  ;;  %v2432_v31 = vrot.slane %v2418_v37, 4 }
 0x130   : > { %7704 = vst [vmem:[#allocation254_spill] sm:$0xff] %v6048_v47  ;;  %v2429_v3 = vsel %vm591_vm1, %v2428_v48, %v2427_v36  ;;  %v2413_v14 = vunpack.c.l.b16 %v2381_v43  ;;  %v2359_v10 = vperm.slane %v6042_v13, 1  ;;  %v2415_v63 = vunpack.c.l.b16 %v2383_v16 }
 0x131   : > { %v2390_v1 = vpack.c.bf16 %v2358_v55, %v2358_v55  ;;  %2460 = vmatpush.bf16.msra.mxu0 %v5134_v29  ;;  %v2420_v55 = vunpack.c.l.b16 %v2388_v61  ;;  %v2392_v48 = vpack.c.bf16 %v2360_v11, %v2360_v11  ;;  %v2431_v27 = vsel %vm594_vm2, %v2430_v19, %v2429_v3 }
 0x132   : > { %v2389_v41 = vpack.c.bf16 %v2357_v20, %v2357_v20  ;;  %v2440_v61 = vrot.slane %v2413_v14, 7  ;;  %v2419_v36 = vunpack.c.l.b16 %v2387_v42  ;;  %v2442_v40 = vrot.slane %v2415_v63, 6  ;;  %2473 = vmatpush.bf16.msra.mxu1 %v5138_v33 }
 0x133   : > { %2498 = vmatpush.bf16.msra.mxu3 %v5131_v25  ;;  %2486 = vmatpush.bf16.msra.mxu2 %v5140_v34  ;;  %v2422_v37 = vunpack.c.l.b16 %v2390_v1  ;;  %v2434_v16 = vrot.slane %v2420_v55, 3  ;;  %v2361_v13 = vperm.slane %v6057_v28, 1  ;;  %v2444_v60 = vrot.slane %v2417_v4, 5 }
 0x134   : > { %v2441_v43 = vsel %vm588_vm0, %v2440_v61, %v2411_v0  ;;  %v2433_v11 = vsel %vm597_vm3, %v2432_v31, %v2431_v27  ;;  %v2391_v19 = vpack.c.bf16 %v2359_v10, %v2359_v10  ;;  %v2072_v1 = vadd.f32 %v2071_v35, %v6081_v53  ;;  %v2084_v10 = vpop.f32.mrf.mxu1 }
 0x135   : > { %2461 = vmatpush.bf16.msra.mxu0 %v5146_v44  ;;  %v2443_v20 = vsel %vm591_vm1, %v2442_v40, %v2441_v43  ;;  %v2424_v3 = vunpack.c.l.b16 %v2392_v48  ;;  %v2421_v42 = vunpack.c.l.b16 %v2389_v41  ;;  %v2436_v14 = vrot.slane %v2422_v37, 2  ;;  %v2073_v35 = vpop.f32.mrf.mxu0 }
 0x136   : > { %v2446_v55 = vrot.slane %v2419_v36, 4  ;;  %2474 = vmatpush.bf16.msra.mxu1 %v5150_v45  ;;  %v2435_v28 = vsel %vm600_vm4, %v2434_v16, %v2433_v11  ;;  %v2393_v0 = vpack.c.bf16 %v2361_v13, %v2361_v13  ;;  %v2445_v31 = vsel %vm594_vm2, %v2444_v60, %v2443_v20  ;;  %v2097_v16 = vpop.f32.mrf.mxu2  ;;  %v7705_v13 = vld [vmem:[#allocation12_spill] sm:$0xff]  ;;  %v2110_v11 = vpop.f32.mrf.mxu3  ;;  %v7707_v20 = vld [vmem:[#allocation11_spill] sm:$0xff] }
 0x137   : > { %2499 = vmatpush.bf16.msra.mxu3 %v5143_v38  ;;  %2487 = vmatpush.bf16.msra.mxu2 %v5152_v46  ;;  %v2423_v63 = vunpack.c.l.b16 %v2391_v19  ;;  %v6099_v4 = vadd.f32 %v2084_v10, %v2072_v1  ;;  %v2438_v48 = vrot.slane %v2424_v3, 1  ;;  %v2448_v27 = vrot.slane %v2421_v42, 3  ;;  %v7706_v19 = vld [vmem:[#allocation10_spill] sm:$0xff]  ;;  %v7711_v10 = vld [vmem:[#allocation13_spill] sm:$0xff] }
 0x138   : > { %v6103_v41 = vperm.slane %v5804_v52, 7  ;;  %v2437_v61 = vsel %vm603_vm5, %v2436_v14, %v2435_v28  ;;  %v2447_v37 = vsel %vm597_vm3, %v2446_v55, %v2445_v31  ;;  %v2425_v36 = vunpack.c.l.b16 %v2393_v0  ;;  %v7708_v14 = vld [vmem:[#allocation14_spill] sm:$0xff]  ;;  %v7709_v0 = vld [vmem:[#allocation16_spill] sm:$0xff] }
 0x139   : > { %2462 = vmatpush.bf16.msra.mxu0 %v5158_v56  ;;  %v2450_v40 = vrot.slane %v2423_v63, 2  ;;  %v2439_v43 = vsel %vm606_vm6, %v2438_v48, %v2437_v61  ;;  %v2449_v52 = vsel %vm600_vm4, %v2448_v27, %v2447_v37  ;;  %v7710_v31 = vld [vmem:[#allocation20_spill] sm:$0xff]  ;;  %v7712_v63 = vld [vmem:[#allocation15_spill] sm:$0xff]  ;;  %v7713_v48 = vld [vmem:[#allocation18_spill] sm:$0xff] }
 0x13a   : > { %2475 = vmatpush.bf16.msra.mxu1 %v5163_v57  ;;  %v2098_v60 = vadd.f32 %v2097_v16, %v6103_v41  ;;  %v2452_v1 = vrot.slane %v2425_v36, 1  ;;  %v6119_v55 = vpack.c.b16 %v2439_v43, %v2439_v43  ;;  %v7714_v61 = vld [vmem:[#allocation22_spill] sm:$0xff]  ;;  %v7716_v16 = vld [vmem:[#allocation17_spill] sm:$0xff]  ;;  %v7717_v43 = vld [vmem:[#allocation19_spill] sm:$0xff] }
 0x13b   : > { %2500 = vmatpush.bf16.msra.mxu3 %v5155_v50  ;;  %2488 = vmatpush.bf16.msra.mxu2 %v5165_v58  ;;  %v2451_v28 = vsel %vm603_vm5, %v2450_v40, %v2449_v52  ;;  %v7715_v40 = vld [vmem:[#allocation24_spill] sm:$0xff]  ;;  %v7718_v52 = vld [vmem:[#allocation21_spill] sm:$0xff] }
 0x13c   : > { %v6116_v3 = vadd.f32 %v2110_v11, %v2098_v60  ;;  %v2086_v42 = vpop.f32.mrf.mxu1  ;;  %v2453_v35 = vsel %vm606_vm6, %v2452_v1, %v2451_v28  ;;  %v7719_v60 = vld [vmem:[#allocation23_spill] sm:$0xff]  ;;  %v6143_v11 = vld [vmem:[%s6955_s2 + $0x8] sm:$0xff]  ;;  %v7720_v1 = vld [vmem:[#allocation26_spill] sm:$0xff] }
 0x13d   : > { %2463 = vmatpush.bf16.msra.mxu0 %v5171_v5  ;;  %v6130_v36 = vpack.c.b16 %v2453_v35, %v2453_v35  ;;  %v7721_v42 = vld [vmem:[#allocation28_spill] sm:$0xff]  ;;  %v7722_v28 = vld [vmem:[#allocation25_spill] sm:$0xff]  ;;  %v7723_v35 = vld [vmem:[#allocation27_spill] sm:$0xff] }
 0x13e   : > { %2476 = vmatpush.bf16.msra.mxu1 %v7706_v19  ;;  %v2099_v27 = vpop.f32.mrf.mxu2  ;;  %v2112_v37 = vpop.f32.mrf.mxu3 }
 0x13f   : > { %2501 = vmatpush.bf16.msra.mxu3 %v5168_v62  ;;  %2489 = vmatpush.bf16.msra.mxu2 %v5183_v9  ;;  %v6150_v27 = vperm.slane %v6143_v11, 0 }
 0x141   : > { %2464 = vmatpush.bf16.msra.mxu0 %v7705_v13  ;;  %7724 = vst [vmem:[#allocation12_spill] sm:$0xff] %v6150_v27  ;;  %v2123_v37 = vpop.f32.mrf.mxu0 }
 0x142   : > { %2477 = vmatpush.bf16.msra.mxu1 %v7711_v10 }
 0x143   : > { %2502 = vmatpush.bf16.msra.mxu3 %v7707_v20  ;;  %2490 = vmatpush.bf16.msra.mxu2 %v7708_v14 }
 0x145   : > { %2465 = vmatpush.bf16.msra.mxu0 %v7709_v0 }
 0x146   : > { %2478 = vmatpush.bf16.msra.mxu1 %v7716_v16 }
 0x147   : > { %2503 = vmatpush.bf16.msra.mxu3 %v7712_v63  ;;  %2491 = vmatpush.bf16.msra.mxu2 %v7713_v48 }
 0x148   : > { %2466 = vmatmul.bf16.vlgmr.msra.gmra.mxu0 %v6119_v55 }
 0x149   : > { %2510 = vmatpush.bf16.msrb.mxu0 %v7710_v31  ;;  %2479 = vmatmul.bf16.vlgmr.msra.gmra.mxu1 %v6130_v36 }
 0x14a   : > { %2523 = vmatpush.bf16.msrb.mxu1 %v7718_v52  ;;  %2492 = vmatmul.bf16.vlgmr.msra.gmra.mxu2 %v6119_v55 }
 0x14b   : > { %2536 = vmatpush.bf16.msrb.mxu2 %v7714_v61  ;;  %2504 = vmatpush.bf16.msra.mxu3 %v7717_v43  ;;  %v7727_v61 = vld [vmem:[#allocation31_spill] sm:$0xff] }
 0x14d   : > { %2511 = vmatpush.bf16.msrb.mxu0 %v7715_v40  ;;  %v7725_v40 = vld [vmem:[#allocation30_spill] sm:$0xff] }
 0x14e   : > { %2505 = vmatmul.bf16.vlgmr.msra.gmra.mxu3 %v6130_v36  ;;  %2524 = vmatpush.bf16.msrb.mxu1 %v7722_v28 }
 0x14f   : > { %2549 = vmatpush.bf16.msrb.mxu3 %v7719_v60  ;;  %2537 = vmatpush.bf16.msrb.mxu2 %v7720_v1  ;;  %v7726_v60 = vld [vmem:[#allocation29_spill] sm:$0xff]  ;;  %v2124_v1 = vadd.f32 %v2123_v37, %v6150_v27  ;;  %v2162_v27 = vpop.f32.mrf.mxu3 }
 0x150   : > { %v7730_v37 = vld [vmem:[#allocation37_spill] sm:$0xff] }
 0x151   : > { %2512 = vmatpush.bf16.msrb.mxu0 %v7721_v42  ;;  %v2136_v42 = vpop.f32.mrf.mxu1 }
 0x152   : > { %2525 = vmatpush.bf16.msrb.mxu1 %v7726_v60  ;;  %v7728_v60 = vld [vmem:[#allocation38_spill] sm:$0xff] }
 0x153   : > { %2550 = vmatpush.bf16.msrb.mxu3 %v7723_v35  ;;  %2538 = vmatpush.bf16.msrb.mxu2 %v7725_v40  ;;  %v6161_v35 = vadd.f32 %v2136_v42, %v2124_v1  ;;  %v2125_v40 = vpop.f32.mrf.mxu0  ;;  %v7734_v1 = vld [vmem:[#allocation43_spill] sm:$0xff] }
 0x154   : > { %v7733_v40 = vld [vmem:[#allocation41_spill] sm:$0xff] }
 0x155   : > { %2513 = vmatpush.bf16.msrb.mxu0 %v5264_v23  ;;  %v6164_v23 = vperm.slane %v6143_v11, 1 }
 0x156   : > { %2526 = vmatpush.bf16.msrb.mxu1 %v5266_v32 }
 0x157   : > { %2551 = vmatpush.bf16.msrb.mxu3 %v7727_v61  ;;  %2539 = vmatpush.bf16.msrb.mxu2 %v5268_v18  ;;  %v7729_v61 = vld [vmem:[#allocation40_spill] sm:$0xff]  ;;  %v7731_v18 = vld [vmem:[#allocation39_spill] sm:$0xff] }
 0x159   : > { %2514 = vmatpush.bf16.msrb.mxu0 %v5279_v24  ;;  %v2149_v24 = vpop.f32.mrf.mxu2 }
 0x15a   : > { %2527 = vmatpush.bf16.msrb.mxu1 %v7730_v37  ;;  %v2150_v32 = vadd.f32 %v2149_v24, %v6164_v23 }
 0x15b   : > { %2552 = vmatpush.bf16.msrb.mxu3 %v5277_v22  ;;  %2540 = vmatpush.bf16.msrb.mxu2 %v7728_v60  ;;  %v7732_v22 = vld [vmem:[#allocation42_spill] sm:$0xff]  ;;  %v2138_v60 = vpop.f32.mrf.mxu1 }
 0x15c   : > { %v6175_v42 = vadd.f32 %v2162_v27, %v2150_v32  ;;  %v7738_v32 = vld [vmem:[#allocation51_spill] sm:$0xff]  ;;  %v7740_v27 = vld [vmem:[#allocation53_spill] sm:$0xff] }
 0x15d   : > { %2515 = vmatpush.bf16.msrb.mxu0 %v7729_v61  ;;  %v7739_v60 = vld [vmem:[#allocation55_spill] sm:$0xff]  ;;  %v7761_v61 = vld [vmem:[#allocation70_spill] sm:$0xff] }
 0x15e   : > { %2528 = vmatpush.bf16.msrb.mxu1 %v7733_v40  ;;  %7735 = vst [vmem:[#allocation10_spill] sm:$0xff] %v6175_v42  ;;  %v7866_v42 = vld [vmem:[#allocation162_spill] sm:$0xff] }
 0x15f   : > { %2553 = vmatpush.bf16.msrb.mxu3 %v7731_v18  ;;  %2541 = vmatpush.bf16.msrb.mxu2 %v7732_v22  ;;  %v7736_v22 = vld [vmem:[#allocation50_spill] sm:$0xff] }
 0x161   : > { %2516 = vmatpush.bf16.msrb.mxu0 %v5352_v51  ;;  %v2151_v24 = vpop.f32.mrf.mxu2  ;;  %v2164_v51 = vpop.f32.mrf.mxu3 }
 0x162   : > { %2529 = vmatpush.bf16.msrb.mxu1 %v5356_v26  ;;  %v7742_v24 = vld [vmem:[#allocation54_spill] sm:$0xff]  ;;  %v7743_v51 = vld [vmem:[#allocation59_spill] sm:$0xff]  ;;  %v7754_v26 = vld [vmem:[#allocation68_spill] sm:$0xff] }
 0x163   : > { %2554 = vmatpush.bf16.msrb.mxu3 %v7734_v1  ;;  %2542 = vmatpush.bf16.msrb.mxu2 %v5359_v49  ;;  %v7737_v1 = vld [vmem:[#allocation49_spill] sm:$0xff]  ;;  %v7751_v49 = vld [vmem:[#allocation62_spill] sm:$0xff] }
 0x165   : > { %2517 = vmatpush.bf16.msrb.mxu0 %v5363_v30  ;;  %v7741_v30 = vld [vmem:[#allocation56_spill] sm:$0xff] }
 0x166   : > { %2530 = vmatpush.bf16.msrb.mxu1 %v7737_v1  ;;  %v7749_v1 = vld [vmem:[#allocation61_spill] sm:$0xff] }
 0x167   : > { %2555 = vmatpush.bf16.msrb.mxu3 %v5361_v39  ;;  %2543 = vmatpush.bf16.msrb.mxu2 %v7736_v22  ;;  %v7745_v22 = vld [vmem:[#allocation60_spill] sm:$0xff] }
 0x168   : > { %2518 = vmatmul.bf16.vlgmr.msrb.gmra.mxu0 %v6119_v55  ;;  %v7750_v39 = vld [vmem:[#allocation64_spill] sm:$0xff] }
 0x169   : > { %2562 = vmatpush.bf16.msra.mxu0 %v5376_v54  ;;  %2531 = vmatmul.bf16.vlgmr.msrb.gmra.mxu1 %v6130_v36  ;;  %v7744_v54 = vld [vmem:[#allocation57_spill] sm:$0xff] }
 0x16a   : > { %2575 = vmatpush.bf16.msra.mxu1 %v7739_v60  ;;  %2544 = vmatmul.bf16.vlgmr.msrb.gmra.mxu2 %v6119_v55  ;;  %v6197_v60 = vperm.slane %v6143_v11, 2 }
 0x16b   : > { %2556 = vmatpush.bf16.msrb.mxu3 %v7738_v32  ;;  %2588 = vmatpush.bf16.msra.mxu2 %v7740_v27  ;;  %v2175_v27 = vpop.f32.mrf.mxu0  ;;  %v7747_v32 = vld [vmem:[#allocation58_spill] sm:$0xff] }
 0x16c   : > { %7746 = vst [vmem:[#allocation11_spill] sm:$0xff] %v6197_v60 }
 0x16d   : > { %2563 = vmatpush.bf16.msra.mxu0 %v7742_v24  ;;  %v2176_v24 = vadd.f32 %v2175_v27, %v6197_v60  ;;  %v7759_v27 = vld [vmem:[#allocation69_spill] sm:$0xff] }
 0x16e   : > { %2557 = vmatmul.bf16.vlgmr.msrb.gmra.mxu3 %v6130_v36  ;;  %2576 = vmatpush.bf16.msra.mxu1 %v7743_v51  ;;  %v7752_v51 = vld [vmem:[#allocation67_spill] sm:$0xff]  ;;  %v2214_v60 = vpop.f32.mrf.mxu3 }
 0x16f   : > { %2601 = vmatpush.bf16.msra.mxu3 %v7741_v30  ;;  %2589 = vmatpush.bf16.msra.mxu2 %v7744_v54  ;;  %v7748_v30 = vld [vmem:[#allocation63_spill] sm:$0xff]  ;;  %v7753_v54 = vld [vmem:[#allocation65_spill] sm:$0xff] }
 0x171   : > { %2564 = vmatpush.bf16.msra.mxu0 %v7747_v32 }
 0x172   : > { %2577 = vmatpush.bf16.msra.mxu1 %v7748_v30  ;;  %v6211_v30 = vperm.slane %v6143_v11, 3 }
 0x173   : > { %2602 = vmatpush.bf16.msra.mxu3 %v7745_v22  ;;  %2590 = vmatpush.bf16.msra.mxu2 %v7749_v1  ;;  %v2188_v22 = vpop.f32.mrf.mxu1  ;;  %v2177_v32 = vpop.f32.mrf.mxu0  ;;  %v7757_v1 = vld [vmem:[#allocation66_spill] sm:$0xff] }
 0x174   : > { %v6208_v40 = vadd.f32 %v2188_v22, %v2176_v24  ;;  %7756 = vst [vmem:[#allocation16_spill] sm:$0xff] %v6211_v30  ;;  %v7762_v22 = vld [vmem:[#allocation75_spill] sm:$0xff]  ;;  %v7763_v32 = vld [vmem:[#allocation73_spill] sm:$0xff] }
 0x175   : > { %2565 = vmatpush.bf16.msra.mxu0 %v7751_v49  ;;  %v7760_v49 = vld [vmem:[#allocation72_spill] sm:$0xff] }
 0x176   : > { %2578 = vmatpush.bf16.msra.mxu1 %v7752_v51  ;;  %7755 = vst [vmem:[#allocation14_spill] sm:$0xff] %v6208_v40  ;;  %v2201_v51 = vpop.f32.mrf.mxu2  ;;  %v7769_v40 = vld [vmem:[#allocation81_spill] sm:$0xff] }
 0x177   : > { %2603 = vmatpush.bf16.msra.mxu3 %v7750_v39  ;;  %2591 = vmatpush.bf16.msra.mxu2 %v7753_v54  ;;  %v7758_v39 = vld [vmem:[#allocation71_spill] sm:$0xff]  ;;  %v2202_v54 = vadd.f32 %v2201_v51, %v6211_v30  ;;  %v2216_v30 = vpop.f32.mrf.mxu3 }
 0x178   : > { %v7778_v30 = vld [vmem:[#allocation84_spill] sm:$0xff] }
 0x179   : > { %2566 = vmatpush.bf16.msra.mxu0 %v7757_v1  ;;  %v6221_v24 = vadd.f32 %v2214_v60, %v2202_v54  ;;  %v7765_v1 = vld [vmem:[#allocation76_spill] sm:$0xff]  ;;  %v7773_v54 = vld [vmem:[#allocation86_spill] sm:$0xff]  ;;  %v7775_v60 = vld [vmem:[#allocation87_spill] sm:$0xff] }
 0x17a   : > { %2579 = vmatpush.bf16.msra.mxu1 %v7758_v39  ;;  %v7766_v39 = vld [vmem:[#allocation74_spill] sm:$0xff] }
 0x17b   : > { %2604 = vmatpush.bf16.msra.mxu3 %v7754_v26  ;;  %2592 = vmatpush.bf16.msra.mxu2 %v7759_v27  ;;  %7764 = vst [vmem:[#allocation20_spill] sm:$0xff] %v6221_v24  ;;  %v2190_v26 = vpop.f32.mrf.mxu1  ;;  %v7767_v27 = vld [vmem:[#allocation80_spill] sm:$0xff] }
 0x17c   : > { %v7774_v26 = vld [vmem:[#allocation79_spill] sm:$0xff]  ;;  %v7791_v24 = vld [vmem:[#allocation100_spill] sm:$0xff] }
 0x17d   : > { %2567 = vmatpush.bf16.msra.mxu0 %v7761_v61  ;;  %v7770_v61 = vld [vmem:[#allocation78_spill] sm:$0xff] }
 0x17e   : > { %2580 = vmatpush.bf16.msra.mxu1 %v7762_v22  ;;  %v2203_v51 = vpop.f32.mrf.mxu2  ;;  %v7771_v22 = vld [vmem:[#allocation85_spill] sm:$0xff] }
 0x17f   : > { %2605 = vmatpush.bf16.msra.mxu3 %v7760_v49  ;;  %2593 = vmatpush.bf16.msra.mxu2 %v7763_v32  ;;  %v7768_v49 = vld [vmem:[#allocation77_spill] sm:$0xff]  ;;  %v7772_v32 = vld [vmem:[#allocation82_spill] sm:$0xff]  ;;  %v7779_v51 = vld [vmem:[#allocation91_spill] sm:$0xff] }
 0x181   : > { %2568 = vmatpush.bf16.msra.mxu0 %v7766_v39  ;;  %v7776_v39 = vld [vmem:[#allocation83_spill] sm:$0xff] }
 0x182   : > { %2581 = vmatpush.bf16.msra.mxu1 %v7767_v27  ;;  %v7777_v27 = vld [vmem:[#allocation88_spill] sm:$0xff] }
 0x183   : > { %2606 = vmatpush.bf16.msra.mxu3 %v7765_v1  ;;  %2594 = vmatpush.bf16.msra.mxu2 %v7768_v49  ;;  %v7789_v49 = vld [vmem:[#allocation97_spill] sm:$0xff] }
 0x185   : > { %2569 = vmatpush.bf16.msra.mxu0 %v7770_v61 }
 0x186   : > { %2582 = vmatpush.bf16.msra.mxu1 %v7771_v22  ;;  %v7785_v22 = vld [vmem:[#allocation93_spill] sm:$0xff] }
 0x187   : > { %2607 = vmatpush.bf16.msra.mxu3 %v7769_v40  ;;  %2595 = vmatpush.bf16.msra.mxu2 %v7772_v32  ;;  %v7784_v32 = vld [vmem:[#allocation95_spill] sm:$0xff]  ;;  %v7786_v40 = vld [vmem:[#allocation96_spill] sm:$0xff] }
 0x188   : > { %2570 = vmatmul.bf16.vlgmr.msra.gmra.mxu0 %v6119_v55 }
 0x189   : > { %2614 = vmatpush.bf16.msrb.mxu0 %v7774_v26  ;;  %2583 = vmatmul.bf16.vlgmr.msra.gmra.mxu1 %v6130_v36  ;;  %v7782_v26 = vld [vmem:[#allocation92_spill] sm:$0xff] }
 0x18a   : > { %2627 = vmatpush.bf16.msrb.mxu1 %v7775_v60  ;;  %2596 = vmatmul.bf16.vlgmr.msra.gmra.mxu2 %v6119_v55  ;;  %v6244_v60 = vperm.slane %v6143_v11, 4 }
 0x18b   : > { %2608 = vmatpush.bf16.msra.mxu3 %v7773_v54  ;;  %2640 = vmatpush.bf16.msrb.mxu2 %v7776_v39  ;;  %v7780_v54 = vld [vmem:[#allocation89_spill] sm:$0xff]  ;;  %v2227_v39 = vpop.f32.mrf.mxu0 }
 0x18c   : > { %7781 = vst [vmem:[#allocation13_spill] sm:$0xff] %v6244_v60  ;;  %v2228_v61 = vadd.f32 %v2227_v39, %v6244_v60  ;;  %v7794_v39 = vld [vmem:[#allocation103_spill] sm:$0xff]  ;;  %v7796_v60 = vld [vmem:[#allocation104_spill] sm:$0xff] }
 0x18d   : > { %2615 = vmatpush.bf16.msrb.mxu0 %v7778_v30  ;;  %v7787_v30 = vld [vmem:[#allocation94_spill] sm:$0xff] }
 0x18e   : > { %2609 = vmatmul.bf16.vlgmr.msra.gmra.mxu3 %v6130_v36  ;;  %2628 = vmatpush.bf16.msrb.mxu1 %v7779_v51  ;;  %v2240_v51 = vpop.f32.mrf.mxu1 }
 0x18f   : > { %2653 = vmatpush.bf16.msrb.mxu3 %v7777_v27  ;;  %2641 = vmatpush.bf16.msrb.mxu2 %v7780_v54  ;;  %v7783_v27 = vld [vmem:[#allocation90_spill] sm:$0xff]  ;;  %v7788_v54 = vld [vmem:[#allocation99_spill] sm:$0xff]  ;;  %v6255_v1 = vadd.f32 %v2240_v51, %v2228_v61 }
 0x190   : > { %v7797_v61 = vld [vmem:[#allocation102_spill] sm:$0xff] }
 0x191   : > { %2616 = vmatpush.bf16.msrb.mxu0 %v7783_v27  ;;  %7790 = vst [vmem:[#allocation15_spill] sm:$0xff] %v6255_v1  ;;  %v7800_v1 = vld [vmem:[#allocation105_spill] sm:$0xff] }
 0x192   : > { %2629 = vmatpush.bf16.msrb.mxu1 %v7784_v32  ;;  %v6259_v32 = vperm.slane %v6143_v11, 5  ;;  %v7804_v27 = vld [vmem:[#allocation109_spill] sm:$0xff] }
 0x193   : > { %2654 = vmatpush.bf16.msrb.mxu3 %v7782_v26  ;;  %2642 = vmatpush.bf16.msrb.mxu2 %v7785_v22  ;;  %v2229_v26 = vpop.f32.mrf.mxu0  ;;  %v7793_v22 = vld [vmem:[#allocation98_spill] sm:$0xff] }
 0x194   : > { %7792 = vst [vmem:[#allocation18_spill] sm:$0xff] %v6259_v32 }
 0x195   : > { %2617 = vmatpush.bf16.msrb.mxu0 %v7787_v30  ;;  %v2253_v30 = vpop.f32.mrf.mxu2 }
 0x196   : > { %2630 = vmatpush.bf16.msrb.mxu1 %v7788_v54  ;;  %v2254_v54 = vadd.f32 %v2253_v30, %v6259_v32  ;;  %v2242_v51 = vpop.f32.mrf.mxu1  ;;  %v7805_v30 = vld [vmem:[#allocation113_spill] sm:$0xff] }
 0x197   : > { %2655 = vmatpush.bf16.msrb.mxu3 %v7786_v40  ;;  %2643 = vmatpush.bf16.msrb.mxu2 %v7789_v49  ;;  %v7795_v40 = vld [vmem:[#allocation101_spill] sm:$0xff]  ;;  %v2266_v49 = vpop.f32.mrf.mxu3  ;;  %v7809_v51 = vld [vmem:[#allocation118_spill] sm:$0xff] }
 0x198   : > { %v6267_v26 = vadd.f32 %v2266_v49, %v2254_v54  ;;  %v7807_v49 = vld [vmem:[#allocation117_spill] sm:$0xff]  ;;  %v7808_v54 = vld [vmem:[#allocation114_spill] sm:$0xff] }
 0x199   : > { %2618 = vmatpush.bf16.msrb.mxu0 %v7793_v22  ;;  %v7801_v22 = vld [vmem:[#allocation108_spill] sm:$0xff] }
 0x19a   : > { %2631 = vmatpush.bf16.msrb.mxu1 %v7794_v39  ;;  %7798 = vst [vmem:[#allocation17_spill] sm:$0xff] %v6267_v26  ;;  %v7802_v39 = vld [vmem:[#allocation106_spill] sm:$0xff]  ;;  %v7825_v26 = vld [vmem:[#allocation131_spill] sm:$0xff] }
 0x19b   : > { %2656 = vmatpush.bf16.msrb.mxu3 %v7791_v24  ;;  %2644 = vmatpush.bf16.msrb.mxu2 %v7795_v40  ;;  %v7799_v24 = vld [vmem:[#allocation107_spill] sm:$0xff]  ;;  %v7803_v40 = vld [vmem:[#allocation112_spill] sm:$0xff] }
 0x19d   : > { %2619 = vmatpush.bf16.msrb.mxu0 %v7797_v61  ;;  %v7806_v61 = vld [vmem:[#allocation110_spill] sm:$0xff] }
 0x19e   : > { %2632 = vmatpush.bf16.msrb.mxu1 %v7799_v24 }
 0x19f   : > { %2657 = vmatpush.bf16.msrb.mxu3 %v7796_v60  ;;  %2645 = vmatpush.bf16.msrb.mxu2 %v7800_v1  ;;  %v2255_v60 = vpop.f32.mrf.mxu2  ;;  %v2268_v32 = vpop.f32.mrf.mxu3  ;;  %v7810_v1 = vld [vmem:[#allocation111_spill] sm:$0xff] }
 0x1a0   : > { %v7814_v32 = vld [vmem:[#allocation116_spill] sm:$0xff]  ;;  %v6290_v60 = vperm.slane %v6143_v11, 6 }
 0x1a1   : > { %2620 = vmatpush.bf16.msrb.mxu0 %v7802_v39  ;;  %v7812_v39 = vld [vmem:[#allocation115_spill] sm:$0xff] }
 0x1a2   : > { %2633 = vmatpush.bf16.msrb.mxu1 %v7803_v40  ;;  %v7813_v40 = vld [vmem:[#allocation120_spill] sm:$0xff]  ;;  %7815 = vst [vmem:[#allocation19_spill] sm:$0xff] %v6290_v60 }
 0x1a3   : > { %2658 = vmatpush.bf16.msrb.mxu3 %v7801_v22  ;;  %2646 = vmatpush.bf16.msrb.mxu2 %v7804_v27  ;;  %v7811_v22 = vld [vmem:[#allocation119_spill] sm:$0xff]  ;;  %v7823_v27 = vld [vmem:[#allocation126_spill] sm:$0xff] }
 0x1a5   : > { %2621 = vmatpush.bf16.msrb.mxu0 %v7806_v61  ;;  %v7821_v61 = vld [vmem:[#allocation125_spill] sm:$0xff] }
 0x1a6   : > { %2634 = vmatpush.bf16.msrb.mxu1 %v7807_v49  ;;  %v7820_v49 = vld [vmem:[#allocation127_spill] sm:$0xff] }
 0x1a7   : > { %2659 = vmatpush.bf16.msrb.mxu3 %v7805_v30  ;;  %2647 = vmatpush.bf16.msrb.mxu2 %v7808_v54  ;;  %v7822_v30 = vld [vmem:[#allocation128_spill] sm:$0xff] }
 0x1a8   : > { %2622 = vmatmul.bf16.vlgmr.msrb.gmra.mxu0 %v6119_v55 }
 0x1a9   : > { %2666 = vmatpush.bf16.msra.mxu0 %v7810_v1  ;;  %2635 = vmatmul.bf16.vlgmr.msrb.gmra.mxu1 %v6130_v36  ;;  %v2279_v1 = vpop.f32.mrf.mxu0 }
 0x1aa   : > { %2679 = vmatpush.bf16.msra.mxu1 %v7811_v22  ;;  %2648 = vmatmul.bf16.vlgmr.msrb.gmra.mxu2 %v6119_v55  ;;  %v7817_v22 = vld [vmem:[#allocation121_spill] sm:$0xff]  ;;  %v2280_v54 = vadd.f32 %v2279_v1, %v6290_v60  ;;  %v7828_v1 = vld [vmem:[#allocation132_spill] sm:$0xff]  ;;  %v7830_v60 = vld [vmem:[#allocation135_spill] sm:$0xff] }
 0x1ab   : > { %2660 = vmatpush.bf16.msrb.mxu3 %v7809_v51  ;;  %2692 = vmatpush.bf16.msra.mxu2 %v7812_v39  ;;  %v7816_v51 = vld [vmem:[#allocation123_spill] sm:$0xff]  ;;  %v7818_v39 = vld [vmem:[#allocation124_spill] sm:$0xff] }
 0x1ad   : > { %2667 = vmatpush.bf16.msra.mxu0 %v7814_v32  ;;  %v2292_v32 = vpop.f32.mrf.mxu1 }
 0x1ae   : > { %2661 = vmatmul.bf16.vlgmr.msrb.gmra.mxu3 %v6130_v36  ;;  %2680 = vmatpush.bf16.msra.mxu1 %v7816_v51  ;;  %v6301_v24 = vadd.f32 %v2292_v32, %v2280_v54 }
 0x1af   : > { %2705 = vmatpush.bf16.msra.mxu3 %v7813_v40  ;;  %2693 = vmatpush.bf16.msra.mxu2 %v7817_v22  ;;  %v7819_v40 = vld [vmem:[#allocation122_spill] sm:$0xff]  ;;  %v7826_v22 = vld [vmem:[#allocation129_spill] sm:$0xff] }
 0x1b0   : > { %7824 = vst [vmem:[#allocation21_spill] sm:$0xff] %v6301_v24  ;;  %v7834_v24 = vld [vmem:[#allocation134_spill] sm:$0xff] }
 0x1b1   : > { %2668 = vmatpush.bf16.msra.mxu0 %v7819_v40  ;;  %v2281_v51 = vpop.f32.mrf.mxu0  ;;  %v6306_v40 = vperm.slane %v6143_v11, 7  ;;  %v2318_v32 = vpop.f32.mrf.mxu3  ;;  %v7835_v11 = vld [vmem:[#allocation139_spill] sm:$0xff] }
 0x1b2   : > { %2681 = vmatpush.bf16.msra.mxu1 %v7820_v49  ;;  %v7829_v49 = vld [vmem:[#allocation130_spill] sm:$0xff]  ;;  %v7832_v51 = vld [vmem:[#allocation136_spill] sm:$0xff] }
 0x1b3   : > { %2706 = vmatpush.bf16.msra.mxu3 %v7818_v39  ;;  %2694 = vmatpush.bf16.msra.mxu2 %v7821_v61  ;;  %7827 = vst [vmem:[#allocation25_spill] sm:$0xff] %v6306_v40  ;;  %v2305_v61 = vpop.f32.mrf.mxu2 }
 0x1b4   : > { %v2306_v54 = vadd.f32 %v2305_v61, %v6306_v40  ;;  %v7840_v61 = vld [vmem:[#allocation141_spill] sm:$0xff] }
 0x1b5   : > { %2669 = vmatpush.bf16.msra.mxu0 %v7823_v27  ;;  %v7838_v27 = vld [vmem:[#allocation138_spill] sm:$0xff] }
 0x1b6   : > { %2682 = vmatpush.bf16.msra.mxu1 %v7825_v26  ;;  %v6314_v26 = vadd.f32 %v2318_v32, %v2306_v54  ;;  %v7842_v54 = vld [vmem:[#allocation142_spill] sm:$0xff] }
 0x1b7   : > { %2707 = vmatpush.bf16.msra.mxu3 %v7822_v30  ;;  %2695 = vmatpush.bf16.msra.mxu2 %v7826_v22  ;;  %v7831_v30 = vld [vmem:[#allocation133_spill] sm:$0xff]  ;;  %v2294_v22 = vpop.f32.mrf.mxu1  ;;  %v7844_v32 = vld [vmem:[#allocation146_spill] sm:$0xff] }
 0x1b8   : > { %7833 = vst [vmem:[#allocation255_spill] sm:$0xff] %v6314_v26  ;;  %v7843_v22 = vld [vmem:[#allocation149_spill] sm:$0xff]  ;;  %v7860_v26 = vld [vmem:[#allocation158_spill] sm:$0xff] }
 0x1b9   : > { %2670 = vmatpush.bf16.msra.mxu0 %v7829_v49  ;;  %v7837_v49 = vld [vmem:[#allocation140_spill] sm:$0xff]  ;;  %v2320_v40 = vpop.f32.mrf.mxu3 }
 0x1ba   : > { %2683 = vmatpush.bf16.msra.mxu1 %v7830_v60 }
 0x1bb   : > { %2708 = vmatpush.bf16.msra.mxu3 %v7828_v1  ;;  %2696 = vmatpush.bf16.msra.mxu2 %v7831_v30  ;;  %v7836_v1 = vld [vmem:[#allocation137_spill] sm:$0xff]  ;;  %v2307_v60 = vpop.f32.mrf.mxu2  ;;  %v7839_v30 = vld [vmem:[#allocation144_spill] sm:$0xff] }
 0x1bc   : > { %v7848_v60 = vld [vmem:[#allocation147_spill] sm:$0xff] }
 0x1bd   : > { %2671 = vmatpush.bf16.msra.mxu0 %v7834_v24 }
 0x1be   : > { %2684 = vmatpush.bf16.msra.mxu1 %v7835_v11  ;;  %v7845_v11 = vld [vmem:[#allocation150_spill] sm:$0xff] }
 0x1bf   : > { %2709 = vmatpush.bf16.msra.mxu3 %v7832_v51  ;;  %2697 = vmatpush.bf16.msra.mxu2 %v7836_v1  ;;  %v7841_v51 = vld [vmem:[#allocation145_spill] sm:$0xff]  ;;  %v7846_v1 = vld [vmem:[#allocation143_spill] sm:$0xff] }
 0x1c1   : > { %2672 = vmatpush.bf16.msra.mxu0 %v7838_v27  ;;  %v7858_v27 = vld [vmem:[#allocation160_spill] sm:$0xff] }
 0x1c2   : > { %2685 = vmatpush.bf16.msra.mxu1 %v7839_v30  ;;  %v7849_v30 = vld [vmem:[#allocation152_spill] sm:$0xff] }
 0x1c3   : > { %2710 = vmatpush.bf16.msra.mxu3 %v7837_v49  ;;  %2698 = vmatpush.bf16.msra.mxu2 %v7840_v61  ;;  %v7847_v49 = vld [vmem:[#allocation151_spill] sm:$0xff] }
 0x1c5   : > { %2673 = vmatpush.bf16.msra.mxu0 %v7842_v54  ;;  %v2467_v40 = vpop.f32.mrf.mxu0  ;;  %v7856_v54 = vld [vmem:[#allocation159_spill] sm:$0xff] }
 0x1c6   : > { %2686 = vmatpush.bf16.msra.mxu1 %v7843_v22  ;;  %v2480_v61 = vpop.f32.mrf.mxu1 }
 0x1c7   : > { %2711 = vmatpush.bf16.msra.mxu3 %v7841_v51  ;;  %2699 = vmatpush.bf16.msra.mxu2 %v7844_v32  ;;  %v7850_v32 = vld [vmem:[#allocation148_spill] sm:$0xff]  ;;  %v7857_v51 = vld [vmem:[#allocation157_spill] sm:$0xff] }
 0x1c8   : > { %2674 = vmatmul.bf16.vlgmr.msra.gmra.mxu0 %v6119_v55 }
 0x1c9   : > { %2718 = vmatpush.bf16.msrb.mxu0 %v7846_v1  ;;  %2687 = vmatmul.bf16.vlgmr.msra.gmra.mxu1 %v6130_v36  ;;  %v7852_v1 = vld [vmem:[#allocation153_spill] sm:$0xff] }
 0x1ca   : > { %2731 = vmatpush.bf16.msrb.mxu1 %v7847_v49  ;;  %2700 = vmatmul.bf16.vlgmr.msra.gmra.mxu2 %v6119_v55  ;;  %v7853_v49 = vld [vmem:[#allocation156_spill] sm:$0xff] }
 0x1cb   : > { %2712 = vmatpush.bf16.msra.mxu3 %v7845_v11  ;;  %2744 = vmatpush.bf16.msrb.mxu2 %v7848_v60  ;;  %v7851_v11 = vld [vmem:[#allocation155_spill] sm:$0xff]  ;;  %v7854_v60 = vld [vmem:[#allocation189_spill] sm:$0xff] }
 0x1cc   : > { %v2468_v22 = vadd.f32 %v2467_v40, %v7854_v60  ;;  %v7863_v40 = vld [vmem:[#allocation161_spill] sm:$0xff]  ;;  %v7864_v60 = vld [vmem:[#allocation164_spill] sm:$0xff] }
 0x1cd   : > { %2719 = vmatpush.bf16.msrb.mxu0 %v7850_v32  ;;  %v2469_v32 = vpop.f32.mrf.mxu0 }
 0x1ce   : > { %2713 = vmatmul.bf16.vlgmr.msra.gmra.mxu3 %v6130_v36  ;;  %2732 = vmatpush.bf16.msrb.mxu1 %v7851_v11  ;;  %v6345_v24 = vadd.f32 %v2480_v61, %v2468_v22  ;;  %v7867_v61 = vld [vmem:[#allocation167_spill] sm:$0xff]  ;;  %v7868_v22 = vld [vmem:[#allocation165_spill] sm:$0xff]  ;;  %v7870_v11 = vld [vmem:[#allocation168_spill] sm:$0xff] }
 0x1cf   : > { %2757 = vmatpush.bf16.msrb.mxu3 %v7849_v30  ;;  %2745 = vmatpush.bf16.msrb.mxu2 %v7852_v1  ;;  %v7855_v30 = vld [vmem:[#allocation154_spill] sm:$0xff] }
 0x1d0   : > { %7859 = vst [vmem:[#allocation256_spill] sm:$0xff] %v6345_v24  ;;  %v7872_v24 = vld [vmem:[#allocation166_spill] sm:$0xff] }
 0x1d1   : > { %2720 = vmatpush.bf16.msrb.mxu0 %v7855_v30  ;;  %v7865_v30 = vld [vmem:[#allocation196_spill] sm:$0xff]  ;;  %v2506_v39 = vpop.f32.mrf.mxu3  ;;  %v7876_v1 = vld [vmem:[#allocation170_spill] sm:$0xff] }
 0x1d2   : > { %2733 = vmatpush.bf16.msrb.mxu1 %v7856_v54  ;;  %v2493_v54 = vpop.f32.mrf.mxu2 }
 0x1d3   : > { %2758 = vmatpush.bf16.msrb.mxu3 %v7853_v49  ;;  %2746 = vmatpush.bf16.msrb.mxu2 %v7857_v51  ;;  %v7862_v49 = vld [vmem:[#allocation163_spill] sm:$0xff]  ;;  %v2494_v51 = vadd.f32 %v2493_v54, %v7865_v30  ;;  %v7874_v54 = vld [vmem:[#allocation169_spill] sm:$0xff]  ;;  %v7875_v30 = vld [vmem:[#allocation172_spill] sm:$0xff] }
 0x1d5   : > { %2721 = vmatpush.bf16.msrb.mxu0 %v7860_v26  ;;  %v6357_v32 = vadd.f32 %v2506_v39, %v2494_v51  ;;  %v2482_v26 = vpop.f32.mrf.mxu1  ;;  %v7877_v39 = vld [vmem:[#allocation176_spill] sm:$0xff]  ;;  %v7879_v51 = vld [vmem:[#allocation177_spill] sm:$0xff] }
 0x1d6   : > { %2734 = vmatpush.bf16.msrb.mxu1 %v7862_v49  ;;  %v7878_v26 = vld [vmem:[#allocation173_spill] sm:$0xff] }
 0x1d7   : > { %2759 = vmatpush.bf16.msrb.mxu3 %v7858_v27  ;;  %2747 = vmatpush.bf16.msrb.mxu2 %v7863_v40  ;;  %7869 = vst [vmem:[#allocation257_spill] sm:$0xff] %v6357_v32  ;;  %v7881_v40 = vld [vmem:[#allocation181_spill] sm:$0xff]  ;;  %v7906_v27 = vld [vmem:[#allocation202_spill] sm:$0xff] }
 0x1d8   : > { %v7897_v32 = vld [vmem:[#allocation193_spill] sm:$0xff] }
 0x1d9   : > { %2722 = vmatpush.bf16.msrb.mxu0 %v7866_v42 }
 0x1da   : > { %2735 = vmatpush.bf16.msrb.mxu1 %v7867_v61  ;;  %v2495_v42 = vpop.f32.mrf.mxu2  ;;  %v2508_v61 = vpop.f32.mrf.mxu3 }
 0x1db   : > { %2760 = vmatpush.bf16.msrb.mxu3 %v7864_v60  ;;  %2748 = vmatpush.bf16.msrb.mxu2 %v7868_v22  ;;  %v7873_v60 = vld [vmem:[#allocation171_spill] sm:$0xff] }
 0x1dc   : > { %v7885_v42 = vld [vmem:[#allocation183_spill] sm:$0xff] }
 0x1dd   : > { %2723 = vmatpush.bf16.msrb.mxu0 %v7872_v24  ;;  %v7882_v24 = vld [vmem:[#allocation178_spill] sm:$0xff]  ;;  %v7886_v61 = vld [vmem:[#allocation179_spill] sm:$0xff] }
 0x1de   : > { %2736 = vmatpush.bf16.msrb.mxu1 %v7873_v60  ;;  %v7883_v60 = vld [vmem:[#allocation182_spill] sm:$0xff] }
 0x1df   : > { %2761 = vmatpush.bf16.msrb.mxu3 %v7870_v11  ;;  %2749 = vmatpush.bf16.msrb.mxu2 %v7874_v54  ;;  %v7880_v11 = vld [vmem:[#allocation174_spill] sm:$0xff]  ;;  %v7884_v54 = vld [vmem:[#allocation175_spill] sm:$0xff] }
 0x1e1   : > { %2724 = vmatpush.bf16.msrb.mxu0 %v7876_v1  ;;  %v7887_v1 = vld [vmem:[#allocation184_spill] sm:$0xff] }
 0x1e2   : > { %2737 = vmatpush.bf16.msrb.mxu1 %v7877_v39  ;;  %v7895_v39 = vld [vmem:[#allocation190_spill] sm:$0xff] }
 0x1e3   : > { %2762 = vmatpush.bf16.msrb.mxu3 %v7875_v30  ;;  %2750 = vmatpush.bf16.msrb.mxu2 %v7878_v26  ;;  %v7894_v26 = vld [vmem:[#allocation192_spill] sm:$0xff] }
 0x1e5   : > { %2725 = vmatpush.bf16.msrb.mxu0 %v7880_v11  ;;  %v2519_v11 = vpop.f32.mrf.mxu0 }
 0x1e6   : > { %2738 = vmatpush.bf16.msrb.mxu1 %v7881_v40 }
 0x1e7   : > { %2763 = vmatpush.bf16.msrb.mxu3 %v7879_v51  ;;  %2751 = vmatpush.bf16.msrb.mxu2 %v7882_v24  ;;  %v7888_v24 = vld [vmem:[#allocation180_spill] sm:$0xff]  ;;  %v2532_v51 = vpop.f32.mrf.mxu1 }
 0x1e8   : > { %2726 = vmatmul.bf16.vlgmr.msrb.gmra.mxu0 %v6119_v55 }
 0x1e9   : > { %2770 = vmatpush.bf16.msra.mxu0 %v7884_v54  ;;  %2739 = vmatmul.bf16.vlgmr.msrb.gmra.mxu1 %v6130_v36  ;;  %v7890_v54 = vld [vmem:[#allocation185_spill] sm:$0xff] }
 0x1ea   : > { %2783 = vmatpush.bf16.msra.mxu1 %v7885_v42  ;;  %2752 = vmatmul.bf16.vlgmr.msrb.gmra.mxu2 %v6119_v55  ;;  %v7891_v42 = vld [vmem:[#allocation210_spill] sm:$0xff] }
 0x1eb   : > { %2764 = vmatpush.bf16.msrb.mxu3 %v7883_v60  ;;  %2796 = vmatpush.bf16.msra.mxu2 %v7886_v61  ;;  %v7889_v60 = vld [vmem:[#allocation187_spill] sm:$0xff]  ;;  %v2520_v40 = vadd.f32 %v2519_v11, %v7891_v42  ;;  %v7892_v61 = vld [vmem:[#allocation188_spill] sm:$0xff]  ;;  %v7900_v11 = vld [vmem:[#allocation197_spill] sm:$0xff] }
 0x1ec   : > { %v7901_v42 = vld [vmem:[#allocation194_spill] sm:$0xff] }
 0x1ed   : > { %2771 = vmatpush.bf16.msra.mxu0 %v7888_v24  ;;  %v6390_v30 = vadd.f32 %v2532_v51, %v2520_v40  ;;  %v2521_v49 = vpop.f32.mrf.mxu0  ;;  %v7904_v40 = vld [vmem:[#allocation195_spill] sm:$0xff]  ;;  %v7944_v24 = vld [vmem:[#allocation238_spill] sm:$0xff] }
 0x1ee   : > { %2765 = vmatmul.bf16.vlgmr.msrb.gmra.mxu3 %v6130_v36  ;;  %2784 = vmatpush.bf16.msra.mxu1 %v7889_v60  ;;  %v7907_v49 = vld [vmem:[#allocation200_spill] sm:$0xff]  ;;  %v7908_v60 = vld [vmem:[#allocation203_spill] sm:$0xff] }
 0x1ef   : > { %2809 = vmatpush.bf16.msra.mxu3 %v7887_v1  ;;  %2797 = vmatpush.bf16.msra.mxu2 %v7890_v54  ;;  %v7893_v1 = vld [vmem:[#allocation186_spill] sm:$0xff]  ;;  %7896 = vst [vmem:[#allocation258_spill] sm:$0xff] %v6390_v30  ;;  %v7899_v54 = vld [vmem:[#allocation191_spill] sm:$0xff]  ;;  %v7910_v30 = vld [vmem:[#allocation201_spill] sm:$0xff] }
 0x1f1   : > { %2772 = vmatpush.bf16.msra.mxu0 %v7893_v1  ;;  %v2545_v1 = vpop.f32.mrf.mxu2 }
 0x1f2   : > { %2785 = vmatpush.bf16.msra.mxu1 %v7894_v26  ;;  %v7903_v26 = vld [vmem:[#allocation218_spill] sm:$0xff] }
 0x1f3   : > { %2810 = vmatpush.bf16.msra.mxu3 %v7892_v61  ;;  %2798 = vmatpush.bf16.msra.mxu2 %v7895_v39  ;;  %v7902_v61 = vld [vmem:[#allocation198_spill] sm:$0xff]  ;;  %v2546_v22 = vadd.f32 %v2545_v1, %v7903_v26  ;;  %v2558_v39 = vpop.f32.mrf.mxu3  ;;  %v7912_v1 = vld [vmem:[#allocation204_spill] sm:$0xff] }
 0x1f5   : > { %2773 = vmatpush.bf16.msra.mxu0 %v7899_v54  ;;  %v6401_v51 = vadd.f32 %v2558_v39, %v2546_v22  ;;  %v7915_v39 = vld [vmem:[#allocation213_spill] sm:$0xff] }
 0x1f6   : > { %2786 = vmatpush.bf16.msra.mxu1 %v7900_v11 }
 0x1f7   : > { %2811 = vmatpush.bf16.msra.mxu3 %v7897_v32  ;;  %2799 = vmatpush.bf16.msra.mxu2 %v7901_v42  ;;  %7905 = vst [vmem:[#allocation259_spill] sm:$0xff] %v6401_v51  ;;  %v2534_v32 = vpop.f32.mrf.mxu1  ;;  %v7919_v42 = vld [vmem:[#allocation219_spill] sm:$0xff] }
 0x1f8   : > { %v7914_v32 = vld [vmem:[#allocation205_spill] sm:$0xff] }
 0x1f9   : > { %2774 = vmatpush.bf16.msra.mxu0 %v7904_v40  ;;  %v2547_v26 = vpop.f32.mrf.mxu2  ;;  %v7913_v40 = vld [vmem:[#allocation208_spill] sm:$0xff] }
 0x1fa   : > { %2787 = vmatpush.bf16.msra.mxu1 %v7906_v27  ;;  %v7918_v27 = vld [vmem:[#allocation211_spill] sm:$0xff]  ;;  %v7922_v26 = vld [vmem:[#allocation212_spill] sm:$0xff] }
 0x1fb   : > { %2812 = vmatpush.bf16.msra.mxu3 %v7902_v61  ;;  %2800 = vmatpush.bf16.msra.mxu2 %v7907_v49  ;;  %v7911_v61 = vld [vmem:[#allocation207_spill] sm:$0xff]  ;;  %v2560_v22 = vpop.f32.mrf.mxu3  ;;  %v7916_v49 = vld [vmem:[#allocation209_spill] sm:$0xff] }
 0x1fc   : > { %v7924_v22 = vld [vmem:[#allocation216_spill] sm:$0xff] }
 0x1fd   : > { %2775 = vmatpush.bf16.msra.mxu0 %v7910_v30  ;;  %v7920_v30 = vld [vmem:[#allocation215_spill] sm:$0xff] }
 0x1fe   : > { %2788 = vmatpush.bf16.msra.mxu1 %v7911_v61  ;;  %v7921_v61 = vld [vmem:[#allocation220_spill] sm:$0xff] }
 0x1ff   : > { %2813 = vmatpush.bf16.msra.mxu3 %v7908_v60  ;;  %2801 = vmatpush.bf16.msra.mxu2 %v7912_v1  ;;  %v7917_v60 = vld [vmem:[#allocation214_spill] sm:$0xff]  ;;  %v7934_v1 = vld [vmem:[#allocation232_spill] sm:$0xff] }
 0x201   : > { %2776 = vmatpush.bf16.msra.mxu0 %v7914_v32  ;;  %v7925_v32 = vld [vmem:[#allocation222_spill] sm:$0xff] }
 0x202   : > { %2789 = vmatpush.bf16.msra.mxu1 %v7915_v39  ;;  %v7933_v39 = vld [vmem:[#allocation228_spill] sm:$0xff] }
 0x203   : > { %2814 = vmatpush.bf16.msra.mxu3 %v7913_v40  ;;  %2802 = vmatpush.bf16.msra.mxu2 %v7916_v49  ;;  %v7923_v40 = vld [vmem:[#allocation221_spill] sm:$0xff]  ;;  %v7932_v49 = vld [vmem:[#allocation231_spill] sm:$0xff] }
 0x205   : > { %2777 = vmatpush.bf16.msra.mxu0 %v7918_v27 }
 0x206   : > { %2790 = vmatpush.bf16.msra.mxu1 %v7919_v42  ;;  %v7926_v42 = vld [vmem:[#allocation217_spill] sm:$0xff] }
 0x207   : > { %2815 = vmatpush.bf16.msra.mxu3 %v7917_v60  ;;  %2803 = vmatpush.bf16.msra.mxu2 %v7920_v30  ;;  %v7927_v30 = vld [vmem:[#allocation226_spill] sm:$0xff]  ;;  %v2584_v60 = vpop.f32.mrf.mxu1 }
 0x208   : > { %2778 = vmatmul.bf16.vlgmr.msra.gmra.mxu0 %v6119_v55 }
 0x209   : > { %2822 = vmatpush.bf16.msrb.mxu0 %v7922_v26  ;;  %2791 = vmatmul.bf16.vlgmr.msra.gmra.mxu1 %v6130_v36  ;;  %v7929_v26 = vld [vmem:[#allocation227_spill] sm:$0xff] }
 0x20a   : > { %2835 = vmatpush.bf16.msrb.mxu1 %v7923_v40  ;;  %2804 = vmatmul.bf16.vlgmr.msra.gmra.mxu2 %v6119_v55  ;;  %v2571_v40 = vpop.f32.mrf.mxu0 }
 0x20b   : > { %2816 = vmatpush.bf16.msra.mxu3 %v7921_v61  ;;  %2848 = vmatpush.bf16.msrb.mxu2 %v7924_v22  ;;  %v7928_v61 = vld [vmem:[#allocation224_spill] sm:$0xff]  ;;  %v7930_v22 = vld [vmem:[#allocation225_spill] sm:$0xff] }
 0x20d   : > { %2823 = vmatpush.bf16.msrb.mxu0 %v7926_v42  ;;  %v7936_v42 = vld [vmem:[#allocation230_spill] sm:$0xff] }
 0x20e   : > { %2817 = vmatmul.bf16.vlgmr.msra.gmra.mxu3 %v6130_v36  ;;  %2836 = vmatpush.bf16.msrb.mxu1 %v7927_v30  ;;  %v7938_v30 = vld [vmem:[#allocation236_spill] sm:$0xff] }
 0x20f   : > { %2861 = vmatpush.bf16.msrb.mxu3 %v7925_v32  ;;  %2849 = vmatpush.bf16.msrb.mxu2 %v7928_v61  ;;  %v7931_v32 = vld [vmem:[#allocation234_spill] sm:$0xff]  ;;  %v7952_v61 = vld [vmem:[#allocation244_spill] sm:$0xff] }
 0x210   : > { %v2572_v27 = vadd.f32 %v2571_v40, %v7931_v32  ;;  %v7940_v40 = vld [vmem:[#allocation237_spill] sm:$0xff] }
 0x211   : > { %2824 = vmatpush.bf16.msrb.mxu0 %v7930_v22  ;;  %v7939_v22 = vld [vmem:[#allocation233_spill] sm:$0xff]  ;;  %v2610_v11 = vpop.f32.mrf.mxu3 }
 0x212   : > { %2837 = vmatpush.bf16.msrb.mxu1 %v7932_v49  ;;  %v6437_v51 = vadd.f32 %v2584_v60, %v2572_v27  ;;  %v2597_v49 = vpop.f32.mrf.mxu2  ;;  %v7941_v32 = vld [vmem:[#allocation245_spill] sm:$0xff]  ;;  %v7942_v27 = vld [vmem:[#allocation235_spill] sm:$0xff]  ;;  %v2586_v60 = vpop.f32.mrf.mxu1 }
 0x213   : > { %2862 = vmatpush.bf16.msrb.mxu3 %v7929_v26  ;;  %2850 = vmatpush.bf16.msrb.mxu2 %v7933_v39  ;;  %v2598_v39 = vadd.f32 %v2597_v49, %v7941_v32  ;;  %v7948_v49 = vld [vmem:[#allocation239_spill] sm:$0xff]  ;;  %v7950_v32 = vld [vmem:[#allocation242_spill] sm:$0xff] }
 0x214   : > { %7935 = vst [vmem:[#allocation260_spill] sm:$0xff] %v6437_v51  ;;  %v4613_v60 = vld [vmem:[%s5248_s9 + $0x12] ss:$4 sm:$0x3] }
 0x215   : > { %2825 = vmatpush.bf16.msrb.mxu0 %v7936_v42  ;;  %v7943_v42 = vld [vmem:[#allocation240_spill] sm:$0xff]  ;;  %v6449_v26 = vadd.f32 %v2610_v11, %v2598_v39  ;;  %v2918_v54 = vperm.slane %v4613_v60, 0 }
 0x216   : > { %2838 = vmatpush.bf16.msrb.mxu1 %v7938_v30  ;;  %v4611_v11 = vld [vmem:[%s5248_s9 + $0x2] ss:$4 sm:$0x3]  ;;  %v7954_v30 = vld [vmem:[#allocation249_spill] sm:$0xff] }
 0x217   : > { %2863 = vmatpush.bf16.msrb.mxu3 %v7934_v1  ;;  %2851 = vmatpush.bf16.msrb.mxu2 %v7939_v22  ;;  %v2573_v1 = vpop.f32.mrf.mxu0  ;;  %7945 = vst [vmem:[#allocation261_spill] sm:$0xff] %v6449_v26  ;;  %v7946_v22 = vld [vmem:[#allocation241_spill] sm:$0xff]  ;;  %v2914_v51 = vperm.slane %v4611_v11, 0  ;;  %v2915_v26 = vperm.slane %v4611_v11, 1 }
 0x218   : > { %v7949_v1 = vld [vmem:[#allocation246_spill] sm:$0xff]  ;;  %v4616_v11 = vld [vmem:[%s5248_s9 + $0x2a] ss:$4 sm:$0x3] }
 0x219   : > { %2826 = vmatpush.bf16.msrb.mxu0 %v7942_v27  ;;  %v2612_v39 = vpop.f32.mrf.mxu3 }
 0x21a   : > { %2839 = vmatpush.bf16.msrb.mxu1 %v7943_v42  ;;  %v7951_v42 = vld [vmem:[#allocation247_spill] sm:$0xff]  ;;  %v2950_v39 = vpack.c.bf16 %v2918_v54, %v2918_v54 }
 0x21b   : > { %2864 = vmatpush.bf16.msrb.mxu3 %v7940_v40  ;;  %2852 = vmatpush.bf16.msrb.mxu2 %v7944_v24  ;;  %v4612_v40 = vld [vmem:[%s5248_s9 + $0xa] ss:$4 sm:$0x3]  ;;  %v2599_v24 = vpop.f32.mrf.mxu2 }
 0x21c   : > { %v2916_v27 = vperm.slane %v4612_v40, 0  ;;  %v2917_v18 = vperm.slane %v4612_v40, 1  ;;  %v2946_v40 = vpack.c.bf16 %v2914_v51, %v2914_v51  ;;  %v4617_v51 = vld [vmem:[%s5248_s9 + $0x32] ss:$4 sm:$0x3] }
 0x21d   : > { %2827 = vmatpush.bf16.msrb.mxu0 %v7948_v49  ;;  %v7953_v49 = vld [vmem:[#allocation251_spill] sm:$0xff] }
 0x21e   : > { %2840 = vmatpush.bf16.msrb.mxu1 %v7949_v1  ;;  %v2948_v1 = vpack.c.bf16 %v2916_v27, %v2916_v27  ;;  %v2949_v37 = vpack.c.bf16 %v2917_v18, %v2917_v18 }
 0x21f   : > { %2865 = vmatpush.bf16.msrb.mxu3 %v7946_v22  ;;  %2853 = vmatpush.bf16.msrb.mxu2 %v7950_v32  ;;  %v4614_v22 = vld [vmem:[%s5248_s9 + $0x1a] ss:$4 sm:$0x3]  ;;  %v2919_v32 = vperm.slane %v4613_v60, 1  ;;  %v7955_v60 = vld [vmem:[#allocation8_spill] sm:$0xff] }
 0x220   : > { %v2920_v24 = vperm.slane %v4614_v22, 0 }
 0x221   : > { %2828 = vmatpush.bf16.msrb.mxu0 %v7952_v61  ;;  %v2921_v61 = vperm.slane %v4614_v22, 1  ;;  %v2951_v27 = vpack.c.bf16 %v2919_v32, %v2919_v32  ;;  %v2981_v22 = vunpack.c.l.b16 %v2949_v37  ;;  %v2982_v32 = vunpack.c.l.b16 %v2950_v39 }
 0x222   : > { %2841 = vmatpush.bf16.msrb.mxu1 %v6015_v15  ;;  %v2947_v15 = vpack.c.bf16 %v2915_v26, %v2915_v26  ;;  %v2952_v18 = vpack.c.bf16 %v2920_v24, %v2920_v24  ;;  %v2978_v26 = vunpack.c.l.b16 %v2946_v40  ;;  %v4618_v40 = vld [vmem:[%s5248_s9 + $0x3a] ss:$4 sm:$0x3] }
 0x223   : > { %2866 = vmatpush.bf16.msrb.mxu3 %v7951_v42  ;;  %2854 = vmatpush.bf16.msrb.mxu2 %v6002_v6  ;;  %v4615_v42 = vld [vmem:[%s5248_s9 + $0x22] ss:$4 sm:$0x3]  ;;  %v2980_v6 = vunpack.c.l.b16 %v2948_v1  ;;  %v2953_v1 = vpack.c.bf16 %v2921_v61, %v2921_v61  ;;  %v3008_v24 = vrot.slane %v2981_v22, 7  ;;  %s4984_s9 = scalar_lea.hbm %s6956_s3, 256 }
 0x224   : > { %v2923_v54 = vperm.slane %v4615_v42, 1  ;;  %v2984_v61 = vunpack.c.l.b16 %v2952_v18  ;;  %p4986_p4 = scmp.lt.s32.totalorder %s4984_s9, %s4980_s6 }
 0x225   : > { %2829 = vmatpush.bf16.msrb.mxu0 %v7954_v30 }
 0x226   : > { %2842 = vmatpush.bf16.msrb.mxu1 %v6046_v2  ;;  %v2955_v39 = vpack.c.bf16 %v2923_v54, %v2923_v54  ;;  %p4987_p7 = por %p4986_p4, %p4985_p3 }
 0x227   : > { %2867 = vmatpush.bf16.msrb.mxu3 %v7953_v49  ;;  %2855 = vmatpush.bf16.msrb.mxu2 %v6033_v59  ;;  %v2922_v49 = vperm.slane %v4615_v42, 0  ;;  %v2979_v42 = vunpack.c.l.b16 %v2947_v15  ;;  %v2623_v59 = vpop.f32.mrf.mxu0  ;;  %v2636_v15 = vpop.f32.mrf.mxu1 }
 0x228   : > { %2830 = vmatmul.bf16.vlgmr.msrb.gmra.mxu0 %v6119_v55  ;;  %p4988_p8 = pnand %p4987_p7, %p4983_p2 }
 0x229   : > { %3026 = vmatpush.bf16.msra.mxu0 %v7955_v60  ;;  %2843 = vmatmul.bf16.vlgmr.msrb.gmra.mxu1 %v6130_v36  ;;  %v2924_v60 = vperm.slane %v4616_v11, 0  ;;  %v2954_v37 = vpack.c.bf16 %v2922_v49, %v2922_v49  ;;  %v2927_v49 = vperm.slane %v4617_v51, 1  ;;  %v3009_v18 = vsel %vm588_vm0, %v3008_v24, %v2979_v42 }
 0x22a   : > { %3039 = vmatpush.bf16.msra.mxu1 %v5115_v7  ;;  %2856 = vmatmul.bf16.vlgmr.msrb.gmra.mxu2 %v6119_v55  ;;  %v2994_v7 = vrot.slane %v2980_v6, 7  ;;  %v2926_v55 = vperm.slane %v4617_v51, 0  ;;  %v2996_v6 = vrot.slane %v2982_v32, 6  ;;  %v2998_v32 = vrot.slane %v2984_v61, 5 }
 0x22b   : > { %2868 = vmatpush.bf16.msrb.mxu3 %v6048_v47  ;;  %3052 = vmatpush.bf16.msra.mxu2 %v5117_v8  ;;  %v2983_v47 = vunpack.c.l.b16 %v2951_v27  ;;  %v7956_v8 = vld [vmem:[#allocation9_spill] sm:$0xff]  ;;  %v2985_v27 = vunpack.c.l.b16 %v2953_v1  ;;  %v2987_v1 = vunpack.c.l.b16 %v2955_v39 }
 0x22c   : > { %v2958_v54 = vpack.c.bf16 %v2926_v55, %v2926_v55 }
 0x22d   : > { %3027 = vmatpush.bf16.msra.mxu0 %v7956_v8  ;;  %v2995_v8 = vsel %vm588_vm0, %v2994_v7, %v2978_v26  ;;  %v3012_v51 = vrot.slane %v2985_v27, 5  ;;  %v2959_v26 = vpack.c.bf16 %v2927_v49, %v2927_v49  ;;  %v3014_v42 = vrot.slane %v2987_v1, 4  ;;  %v2649_v24 = vpop.f32.mrf.mxu2  ;;  %v7964_v1 = vld [vmem:[#allocation29_spill] sm:$0xff] }
 0x22e   : > { %2869 = vmatmul.bf16.vlgmr.msrb.gmra.mxu3 %v6130_v36  ;;  %3040 = vmatpush.bf16.msra.mxu1 %v5126_v17  ;;  %v2956_v36 = vpack.c.bf16 %v2924_v60, %v2924_v60  ;;  %v2624_v17 = vadd.f32 %v2623_v59, %v6081_v53  ;;  %v2929_v59 = vperm.slane %v4618_v40, 1  ;;  %v2990_v55 = vunpack.c.l.b16 %v2958_v54 }
 0x22f   : > { %3065 = vmatpush.bf16.msra.mxu3 %v5120_v12  ;;  %v2925_v12 = vperm.slane %v4616_v11, 1  ;;  %3053 = vmatpush.bf16.msra.mxu2 %v5129_v21  ;;  %v3010_v11 = vrot.slane %v2983_v47, 6  ;;  %v2986_v21 = vunpack.c.l.b16 %v2954_v37  ;;  %v2650_v39 = vadd.f32 %v2649_v24, %v6103_v41  ;;  %v2625_v27 = vpop.f32.mrf.mxu0  ;;  %v7971_v24 = vld [vmem:[#allocation36_spill] sm:$0xff] }
 0x230   : > { %v6493_v47 = vadd.f32 %v2636_v15, %v2624_v17  ;;  %v2988_v60 = vunpack.c.l.b16 %v2956_v36  ;;  %v2961_v61 = vpack.c.bf16 %v2929_v59, %v2929_v59  ;;  %v2991_v36 = vunpack.c.l.b16 %v2959_v26  ;;  %v7966_v59 = vld [vmem:[#allocation31_spill] sm:$0xff]  ;;  %v7968_v26 = vld [vmem:[#allocation33_spill] sm:$0xff] }
 0x231   : > { %3028 = vmatpush.bf16.msra.mxu0 %v5134_v29  ;;  %v2957_v22 = vpack.c.bf16 %v2925_v12, %v2925_v12  ;;  %v2997_v29 = vsel %vm591_vm1, %v2996_v6, %v2995_v8  ;;  %v3011_v7 = vsel %vm591_vm1, %v3010_v11, %v3009_v18  ;;  %v2638_v8 = vpop.f32.mrf.mxu1  ;;  %v3004_v17 = vrot.slane %v2990_v55, 2 }
 0x232   : > { %3041 = vmatpush.bf16.msra.mxu1 %v5138_v33  ;;  %v2880_v33 = vmax.f32 %v6099_v4, %v6493_v47  ;;  %v2999_v12 = vsel %vm594_vm2, %v2998_v32, %v2997_v29  ;;  %v3002_v6 = vrot.slane %v2988_v60, 3  ;;  %v2993_v15 = vunpack.c.l.b16 %v2961_v61  ;;  %v7965_v29 = vld [vmem:[#allocation30_spill] sm:$0xff]  ;;  %v7967_v60 = vld [vmem:[#allocation32_spill] sm:$0xff]  ;;  %v7972_v61 = vld [vmem:[#allocation37_spill] sm:$0xff] }
 0x233   : > { %3066 = vmatpush.bf16.msra.mxu3 %v5131_v25  ;;  %3054 = vmatpush.bf16.msra.mxu2 %v5140_v34  ;;  %v2928_v25 = vperm.slane %v4618_v40, 0  ;;  %v3000_v34 = vrot.slane %v2986_v21, 4  ;;  %v2989_v37 = vunpack.c.l.b16 %v2957_v22  ;;  %v2662_v40 = vpop.f32.mrf.mxu3  ;;  %v3018_v22 = vrot.slane %v2991_v36, 2  ;;  %v7976_v36 = vld [vmem:[#allocation40_spill] sm:$0xff]  ;;  %v7979_v8 = vld [vmem:[#allocation43_spill] sm:$0xff] }
 0x234   : > { %v3020_v18 = vrot.slane %v2993_v15, 1  ;;  %v7981_v15 = vld [vmem:[#allocation45_spill] sm:$0xff] }
 0x235   : > { %3029 = vmatpush.bf16.msra.mxu0 %v5146_v44  ;;  %v3013_v44 = vsel %vm594_vm2, %v3012_v51, %v3011_v7  ;;  %v7969_v7 = vld [vmem:[#allocation34_spill] sm:$0xff] }
 0x236   : > { %3042 = vmatpush.bf16.msra.mxu1 %v5150_v45  ;;  %v3001_v45 = vsel %vm597_vm3, %v3000_v34, %v2999_v12  ;;  %v3015_v11 = vsel %vm597_vm3, %v3014_v42, %v3013_v44  ;;  %v7970_v34 = vld [vmem:[#allocation35_spill] sm:$0xff]  ;;  %v7973_v44 = vld [vmem:[#allocation38_spill] sm:$0xff] }
 0x237   : > { %3067 = vmatpush.bf16.msra.mxu3 %v5143_v38  ;;  %3055 = vmatpush.bf16.msra.mxu2 %v5152_v46  ;;  %v2960_v38 = vpack.c.bf16 %v2928_v25, %v2928_v25  ;;  %v3016_v46 = vrot.slane %v2989_v37, 3  ;;  %v3003_v21 = vsel %vm600_vm4, %v3002_v6, %v3001_v45  ;;  %v2651_v25 = vpop.f32.mrf.mxu2  ;;  %v7975_v6 = vld [vmem:[#allocation10_spill] sm:$0xff]  ;;  %v7977_v45 = vld [vmem:[#allocation41_spill] sm:$0xff] }
 0x238   : > { %v7988_v25 = vld [vmem:[#allocation52_spill] sm:$0xff] }
 0x239   : > { %3030 = vmatpush.bf16.msra.mxu0 %v5158_v56  ;;  %v2992_v49 = vunpack.c.l.b16 %v2960_v38 }
 0x23a   : > { %3043 = vmatpush.bf16.msra.mxu1 %v5163_v57  ;;  %v3017_v57 = vsel %vm600_vm4, %v3016_v46, %v3015_v11  ;;  %v7978_v46 = vld [vmem:[#allocation42_spill] sm:$0xff] }
 0x23b   : > { %3068 = vmatpush.bf16.msra.mxu3 %v5155_v50  ;;  %3056 = vmatpush.bf16.msra.mxu2 %v5165_v58  ;;  %v6510_v50 = vadd.f32 %v2662_v40, %v2650_v39  ;;  %v3006_v58 = vrot.slane %v2992_v49, 1  ;;  %v3019_v54 = vsel %vm603_vm5, %v3018_v22, %v3017_v57  ;;  %v2664_v32 = vpop.f32.mrf.mxu3  ;;  %v7974_v40 = vld [vmem:[#allocation39_spill] sm:$0xff]  ;;  %v7984_v57 = vld [vmem:[#allocation48_spill] sm:$0xff] }
 0x23c   : > { %v7983_v22 = vld [vmem:[#allocation47_spill] sm:$0xff]  ;;  %v7990_v32 = vld [vmem:[#allocation53_spill] sm:$0xff] }
 0x23d   : > { %v2881_v56 = vmax.f32 %v6116_v3, %v6510_v50  ;;  %3031 = vmatpush.bf16.msra.mxu0 %v5171_v5 }
 0x23e   : > { %3044 = vmatpush.bf16.msra.mxu1 %v7706_v19 }
 0x23f   : > { %3069 = vmatpush.bf16.msra.mxu3 %v5168_v62  ;;  %3057 = vmatpush.bf16.msra.mxu2 %v5183_v9  ;;  %v3005_v62 = vsel %vm603_vm5, %v3004_v17, %v3003_v21  ;;  %v3021_v9 = vsel %vm606_vm6, %v3020_v18, %v3019_v54  ;;  %v7980_v17 = vld [vmem:[#allocation44_spill] sm:$0xff]  ;;  %v7982_v21 = vld [vmem:[#allocation46_spill] sm:$0xff]  ;;  %v7987_v18 = vld [vmem:[#allocation51_spill] sm:$0xff] }
 0x240   : > { %v3007_v5 = vsel %vm606_vm6, %v3006_v58, %v3005_v62  ;;  %v7985_v58 = vld [vmem:[#allocation49_spill] sm:$0xff]  ;;  %v7986_v62 = vld [vmem:[#allocation50_spill] sm:$0xff]  ;;  %v7989_v54 = vld [vmem:[#allocation55_spill] sm:$0xff] }
 0x241   : > { %3032 = vmatpush.bf16.msra.mxu0 %v7705_v13  ;;  %v6531_v19 = vpack.c.b16 %v3007_v5, %v3007_v5  ;;  %v7957_v13 = vld [vmem:[#allocation22_spill] sm:$0xff]  ;;  %v7991_v5 = vld [vmem:[#allocation56_spill] sm:$0xff] }
 0x242   : > { %3045 = vmatpush.bf16.msra.mxu1 %v7711_v10  ;;  %v7960_v10 = vld [vmem:[#allocation26_spill] sm:$0xff] }
 0x243   : > { %3070 = vmatpush.bf16.msra.mxu3 %v7707_v20  ;;  %3058 = vmatpush.bf16.msra.mxu2 %v7708_v14  ;;  %v6535_v20 = vpack.c.b16 %v3021_v9, %v3021_v9  ;;  %v7958_v14 = vld [vmem:[#allocation23_spill] sm:$0xff]  ;;  %v7992_v9 = vld [vmem:[#allocation54_spill] sm:$0xff] }
 0x245   : > { %3033 = vmatpush.bf16.msra.mxu0 %v7709_v0  ;;  %v7959_v0 = vld [vmem:[#allocation24_spill] sm:$0xff] }
 0x246   : > { %3046 = vmatpush.bf16.msra.mxu1 %v7716_v16  ;;  %v7963_v16 = vld [vmem:[#allocation12_spill] sm:$0xff] }
 0x247   : > { %3071 = vmatpush.bf16.msra.mxu3 %v7712_v63  ;;  %3059 = vmatpush.bf16.msra.mxu2 %v7713_v48  ;;  %v2675_v63 = vpop.f32.mrf.mxu0  ;;  %v7962_v48 = vld [vmem:[#allocation28_spill] sm:$0xff] }
 0x248   : > { %3034 = vmatmul.bf16.vlgmr.msra.gmra.mxu0 %v6531_v19 }
 0x249   : > { %3078 = vmatpush.bf16.msrb.mxu0 %v7710_v31  ;;  %3047 = vmatmul.bf16.vlgmr.msra.gmra.mxu1 %v6535_v20  ;;  %v7961_v31 = vld [vmem:[#allocation27_spill] sm:$0xff] }
 0x24a   : > { %3091 = vmatpush.bf16.msrb.mxu1 %v7718_v52  ;;  %3060 = vmatmul.bf16.vlgmr.msra.gmra.mxu2 %v6531_v19  ;;  %v2688_v52 = vpop.f32.mrf.mxu1 }
 0x24b   : > { %3072 = vmatpush.bf16.msra.mxu3 %v7717_v43  ;;  %3104 = vmatpush.bf16.msrb.mxu2 %v7957_v13  ;;  %v2676_v43 = vadd.f32 %v2675_v63, %v7963_v16  ;;  %v7993_v13 = vld [vmem:[#allocation59_spill] sm:$0xff] }
 0x24c   : > { %v7997_v63 = vld [vmem:[#allocation11_spill] sm:$0xff] }
 0x24d   : > { %3079 = vmatpush.bf16.msrb.mxu0 %v7959_v0  ;;  %v6555_v51 = vadd.f32 %v2688_v52, %v2676_v43  ;;  %v2701_v37 = vpop.f32.mrf.mxu2  ;;  %v7995_v0 = vld [vmem:[#allocation60_spill] sm:$0xff]  ;;  %v7998_v52 = vld [vmem:[#allocation63_spill] sm:$0xff] }
 0x24e   : > { %3073 = vmatmul.bf16.vlgmr.msra.gmra.mxu3 %v6535_v20  ;;  %3092 = vmatpush.bf16.msrb.mxu1 %v7722_v28  ;;  %v2702_v38 = vadd.f32 %v2701_v37, %v6164_v23  ;;  %v8004_v37 = vld [vmem:[#allocation65_spill] sm:$0xff] }
 0x24f   : > { %3117 = vmatpush.bf16.msrb.mxu3 %v7958_v14  ;;  %3105 = vmatpush.bf16.msrb.mxu2 %v7960_v10  ;;  %v2882_v28 = vmax.f32 %v6161_v35, %v6555_v51  ;;  %v2677_v42 = vpop.f32.mrf.mxu0  ;;  %v7994_v14 = vld [vmem:[#allocation57_spill] sm:$0xff] }
 0x250   : > { %v8006_v42 = vld [vmem:[#allocation16_spill] sm:$0xff] }
 0x251   : > { %3080 = vmatpush.bf16.msrb.mxu0 %v7962_v48  ;;  %v2714_v12 = vpop.f32.mrf.mxu3 }
 0x252   : > { %3093 = vmatpush.bf16.msrb.mxu1 %v7964_v1  ;;  %v2690_v55 = vpop.f32.mrf.mxu1  ;;  %v6567_v39 = vadd.f32 %v2714_v12, %v2702_v38  ;;  %v7999_v1 = vld [vmem:[#allocation61_spill] sm:$0xff]  ;;  %v8005_v38 = vld [vmem:[#allocation68_spill] sm:$0xff] }
 0x253   : > { %3118 = vmatpush.bf16.msrb.mxu3 %v7961_v31  ;;  %3106 = vmatpush.bf16.msrb.mxu2 %v7965_v29  ;;  %v7996_v31 = vld [vmem:[#allocation58_spill] sm:$0xff]  ;;  %v8000_v29 = vld [vmem:[#allocation64_spill] sm:$0xff] }
 0x254   : > { %v2883_v27 = vmax.f32 %v7975_v6, %v6567_v39 }
 0x255   : > { %3081 = vmatpush.bf16.msrb.mxu0 %v7967_v60  ;;  %v2703_v49 = vpop.f32.mrf.mxu2  ;;  %v8001_v60 = vld [vmem:[#allocation62_spill] sm:$0xff] }
 0x256   : > { %3094 = vmatpush.bf16.msrb.mxu1 %v7968_v26  ;;  %v8002_v26 = vld [vmem:[#allocation14_spill] sm:$0xff]  ;;  %v8011_v49 = vld [vmem:[#allocation20_spill] sm:$0xff] }
 0x257   : > { %3119 = vmatpush.bf16.msrb.mxu3 %v7966_v59  ;;  %3107 = vmatpush.bf16.msrb.mxu2 %v7969_v7 }
 0x259   : > { %3082 = vmatpush.bf16.msrb.mxu0 %v7971_v24  ;;  %v2716_v11 = vpop.f32.mrf.mxu3 }
 0x25a   : > { %3095 = vmatpush.bf16.msrb.mxu1 %v7972_v61 }
 0x25b   : > { %3120 = vmatpush.bf16.msrb.mxu3 %v7970_v34  ;;  %3108 = vmatpush.bf16.msrb.mxu2 %v7973_v44  ;;  %v8003_v34 = vld [vmem:[#allocation67_spill] sm:$0xff]  ;;  %v8007_v44 = vld [vmem:[#allocation66_spill] sm:$0xff] }
 0x25d   : > { %3083 = vmatpush.bf16.msrb.mxu0 %v7976_v36  ;;  %v8008_v36 = vld [vmem:[#allocation71_spill] sm:$0xff] }
 0x25e   : > { %3096 = vmatpush.bf16.msrb.mxu1 %v7977_v45  ;;  %v8009_v45 = vld [vmem:[#allocation69_spill] sm:$0xff] }
 0x25f   : > { %3121 = vmatpush.bf16.msrb.mxu3 %v7974_v40  ;;  %3109 = vmatpush.bf16.msrb.mxu2 %v7978_v46 }
 0x261   : > { %3084 = vmatpush.bf16.msrb.mxu0 %v7980_v17  ;;  %v8012_v17 = vld [vmem:[#allocation70_spill] sm:$0xff] }
 0x262   : > { %3097 = vmatpush.bf16.msrb.mxu1 %v7981_v15  ;;  %v8013_v15 = vld [vmem:[#allocation75_spill] sm:$0xff] }
 0x263   : > { %3122 = vmatpush.bf16.msrb.mxu3 %v7979_v8  ;;  %3110 = vmatpush.bf16.msrb.mxu2 %v7982_v21  ;;  %v8010_v8 = vld [vmem:[#allocation72_spill] sm:$0xff]  ;;  %v8014_v21 = vld [vmem:[#allocation73_spill] sm:$0xff] }
 0x265   : > { %3085 = vmatpush.bf16.msrb.mxu0 %v7984_v57  ;;  %v2727_v10 = vpop.f32.mrf.mxu0 }
 0x266   : > { %3098 = vmatpush.bf16.msrb.mxu1 %v7985_v58  ;;  %v2728_v48 = vadd.f32 %v2727_v10, %v7997_v63  ;;  %v2740_v43 = vpop.f32.mrf.mxu1  ;;  %v8026_v10 = vld [vmem:[#allocation83_spill] sm:$0xff] }
 0x267   : > { %3123 = vmatpush.bf16.msrb.mxu3 %v7983_v22  ;;  %3111 = vmatpush.bf16.msrb.mxu2 %v7986_v62  ;;  %v8015_v22 = vld [vmem:[#allocation76_spill] sm:$0xff]  ;;  %v8016_v62 = vld [vmem:[#allocation74_spill] sm:$0xff] }
 0x268   : > { %3086 = vmatmul.bf16.vlgmr.msrb.gmra.mxu0 %v6531_v19  ;;  %v6601_v59 = vadd.f32 %v2740_v43, %v2728_v48  ;;  %v8028_v48 = vld [vmem:[#allocation84_spill] sm:$0xff]  ;;  %v8029_v43 = vld [vmem:[#allocation91_spill] sm:$0xff] }
 0x269   : > { %3130 = vmatpush.bf16.msra.mxu0 %v7988_v25  ;;  %3099 = vmatmul.bf16.vlgmr.msrb.gmra.mxu1 %v6535_v20  ;;  %v8018_v25 = vld [vmem:[#allocation77_spill] sm:$0xff] }
 0x26a   : > { %3143 = vmatpush.bf16.msra.mxu1 %v7989_v54  ;;  %3112 = vmatmul.bf16.vlgmr.msrb.gmra.mxu2 %v6531_v19  ;;  %v2884_v7 = vmax.f32 %v8002_v26, %v6601_v59  ;;  %v8019_v54 = vld [vmem:[#allocation81_spill] sm:$0xff] }
 0x26b   : > { %3124 = vmatpush.bf16.msrb.mxu3 %v7987_v18  ;;  %3156 = vmatpush.bf16.msra.mxu2 %v7990_v32  ;;  %v8017_v18 = vld [vmem:[#allocation80_spill] sm:$0xff]  ;;  %v8020_v32 = vld [vmem:[#allocation78_spill] sm:$0xff] }
 0x26d   : > { %3131 = vmatpush.bf16.msra.mxu0 %v7992_v9  ;;  %v2753_v12 = vpop.f32.mrf.mxu2  ;;  %v2729_v61 = vpop.f32.mrf.mxu0  ;;  %v8022_v9 = vld [vmem:[#allocation82_spill] sm:$0xff] }
 0x26e   : > { %3125 = vmatmul.bf16.vlgmr.msrb.gmra.mxu3 %v6535_v20  ;;  %3144 = vmatpush.bf16.msra.mxu1 %v7993_v13  ;;  %v2754_v24 = vadd.f32 %v2753_v12, %v8006_v42  ;;  %v2742_v40 = vpop.f32.mrf.mxu1  ;;  %v8023_v13 = vld [vmem:[#allocation86_spill] sm:$0xff]  ;;  %v8034_v12 = vld [vmem:[#allocation95_spill] sm:$0xff] }
 0x26f   : > { %3169 = vmatpush.bf16.msra.mxu3 %v7991_v5  ;;  %3157 = vmatpush.bf16.msra.mxu2 %v7994_v14  ;;  %v8021_v5 = vld [vmem:[#allocation85_spill] sm:$0xff]  ;;  %v8024_v14 = vld [vmem:[#allocation79_spill] sm:$0xff] }
 0x270   : > { %v8038_v40 = vld [vmem:[#allocation15_spill] sm:$0xff] }
 0x271   : > { %3132 = vmatpush.bf16.msra.mxu0 %v7996_v31  ;;  %v2766_v55 = vpop.f32.mrf.mxu3  ;;  %v8027_v31 = vld [vmem:[#allocation88_spill] sm:$0xff] }
 0x272   : > { %3145 = vmatpush.bf16.msra.mxu1 %v7998_v52  ;;  %v6613_v46 = vadd.f32 %v2766_v55, %v2754_v24  ;;  %v8030_v52 = vld [vmem:[#allocation89_spill] sm:$0xff]  ;;  %v8036_v55 = vld [vmem:[#allocation96_spill] sm:$0xff] }
 0x273   : > { %3170 = vmatpush.bf16.msra.mxu3 %v7995_v0  ;;  %3158 = vmatpush.bf16.msra.mxu2 %v7999_v1  ;;  %v8025_v0 = vld [vmem:[#allocation87_spill] sm:$0xff]  ;;  %v8031_v1 = vld [vmem:[#allocation92_spill] sm:$0xff]  ;;  %v8035_v24 = vld [vmem:[#allocation93_spill] sm:$0xff] }
 0x274   : > { %v2885_v11 = vmax.f32 %v8011_v49, %v6613_v46 }
 0x275   : > { %3133 = vmatpush.bf16.msra.mxu0 %v8001_v60  ;;  %v2755_v57 = vpop.f32.mrf.mxu2  ;;  %v8032_v60 = vld [vmem:[#allocation90_spill] sm:$0xff] }
 0x276   : > { %3146 = vmatpush.bf16.msra.mxu1 %v8003_v34  ;;  %v8033_v34 = vld [vmem:[#allocation13_spill] sm:$0xff] }
 0x277   : > { %3171 = vmatpush.bf16.msra.mxu3 %v8000_v29  ;;  %3159 = vmatpush.bf16.msra.mxu2 %v8004_v37 }
 0x279   : > { %3134 = vmatpush.bf16.msra.mxu0 %v8007_v44  ;;  %v2768_v58 = vpop.f32.mrf.mxu3  ;;  %v8037_v44 = vld [vmem:[#allocation94_spill] sm:$0xff] }
 0x27a   : > { %3147 = vmatpush.bf16.msra.mxu1 %v8008_v36 }
 0x27b   : > { %3172 = vmatpush.bf16.msra.mxu3 %v8005_v38  ;;  %3160 = vmatpush.bf16.msra.mxu2 %v8009_v45  ;;  %v8039_v45 = vld [vmem:[#allocation99_spill] sm:$0xff] }
 0x27d   : > { %3135 = vmatpush.bf16.msra.mxu0 %v8012_v17  ;;  %v8041_v17 = vld [vmem:[#allocation100_spill] sm:$0xff] }
 0x27e   : > { %3148 = vmatpush.bf16.msra.mxu1 %v8013_v15 }
 0x27f   : > { %3173 = vmatpush.bf16.msra.mxu3 %v8010_v8  ;;  %3161 = vmatpush.bf16.msra.mxu2 %v8014_v21  ;;  %v8040_v8 = vld [vmem:[#allocation97_spill] sm:$0xff]  ;;  %v8042_v21 = vld [vmem:[#allocation18_spill] sm:$0xff] }
 0x281   : > { %3136 = vmatpush.bf16.msra.mxu0 %v8016_v62  ;;  %v8043_v62 = vld [vmem:[#allocation98_spill] sm:$0xff] }
 0x282   : > { %3149 = vmatpush.bf16.msra.mxu1 %v8017_v18 }
 0x283   : > { %3174 = vmatpush.bf16.msra.mxu3 %v8015_v22  ;;  %3162 = vmatpush.bf16.msra.mxu2 %v8018_v25  ;;  %v8044_v25 = vld [vmem:[#allocation103_spill] sm:$0xff] }
 0x285   : > { %3137 = vmatpush.bf16.msra.mxu0 %v8020_v32  ;;  %v2779_v29 = vpop.f32.mrf.mxu0 }
 0x286   : > { %3150 = vmatpush.bf16.msra.mxu1 %v8021_v5  ;;  %v2780_v37 = vadd.f32 %v2779_v29, %v8033_v34  ;;  %v2792_v38 = vpop.f32.mrf.mxu1  ;;  %v8046_v5 = vld [vmem:[#allocation104_spill] sm:$0xff]  ;;  %v8054_v29 = vld [vmem:[#allocation109_spill] sm:$0xff] }
 0x287   : > { %3175 = vmatpush.bf16.msra.mxu3 %v8019_v54  ;;  %3163 = vmatpush.bf16.msra.mxu2 %v8022_v9  ;;  %v8045_v54 = vld [vmem:[#allocation101_spill] sm:$0xff] }
 0x288   : > { %3138 = vmatmul.bf16.vlgmr.msra.gmra.mxu0 %v6531_v19  ;;  %v6647_v61 = vadd.f32 %v2792_v38, %v2780_v37  ;;  %v8047_v9 = vld [vmem:[#allocation17_spill] sm:$0xff]  ;;  %v8056_v37 = vld [vmem:[#allocation110_spill] sm:$0xff] }
 0x289   : > { %3182 = vmatpush.bf16.msrb.mxu0 %v8024_v14  ;;  %3151 = vmatmul.bf16.vlgmr.msra.gmra.mxu1 %v6535_v20  ;;  %v8048_v14 = vld [vmem:[#allocation102_spill] sm:$0xff]  ;;  %v8057_v38 = vld [vmem:[#allocation117_spill] sm:$0xff] }
 0x28a   : > { %3195 = vmatpush.bf16.msrb.mxu1 %v8025_v0  ;;  %3164 = vmatmul.bf16.vlgmr.msra.gmra.mxu2 %v6531_v19  ;;  %v2886_v36 = vmax.f32 %v8038_v40, %v6647_v61  ;;  %v8049_v0 = vld [vmem:[#allocation107_spill] sm:$0xff] }
 0x28b   : > { %3176 = vmatpush.bf16.msra.mxu3 %v8023_v13  ;;  %3208 = vmatpush.bf16.msrb.mxu2 %v8026_v10  ;;  %v8050_v10 = vld [vmem:[#allocation105_spill] sm:$0xff] }
 0x28d   : > { %3183 = vmatpush.bf16.msrb.mxu0 %v8028_v48  ;;  %v2805_v15 = vpop.f32.mrf.mxu2  ;;  %v2781_v58 = vpop.f32.mrf.mxu0 }
 0x28e   : > { %3177 = vmatmul.bf16.vlgmr.msra.gmra.mxu3 %v6535_v20  ;;  %3196 = vmatpush.bf16.msrb.mxu1 %v8029_v43  ;;  %v2806_v22 = vadd.f32 %v2805_v15, %v8042_v21  ;;  %v2794_v18 = vpop.f32.mrf.mxu1  ;;  %v8065_v15 = vld [vmem:[#allocation123_spill] sm:$0xff] }
 0x28f   : > { %3221 = vmatpush.bf16.msrb.mxu3 %v8027_v31  ;;  %3209 = vmatpush.bf16.msrb.mxu2 %v8030_v52  ;;  %v8051_v31 = vld [vmem:[#allocation108_spill] sm:$0xff]  ;;  %v8052_v52 = vld [vmem:[#allocation106_spill] sm:$0xff]  ;;  %v8069_v18 = vld [vmem:[#allocation19_spill] sm:$0xff] }
 0x291   : > { %3184 = vmatpush.bf16.msrb.mxu0 %v8032_v60  ;;  %v2818_v57 = vpop.f32.mrf.mxu3  ;;  %v8055_v60 = vld [vmem:[#allocation113_spill] sm:$0xff] }
 0x292   : > { %3197 = vmatpush.bf16.msrb.mxu1 %v8034_v12  ;;  %v6659_v32 = vadd.f32 %v2818_v57, %v2806_v22  ;;  %v8058_v12 = vld [vmem:[#allocation114_spill] sm:$0xff]  ;;  %v8066_v22 = vld [vmem:[#allocation121_spill] sm:$0xff]  ;;  %v8067_v57 = vld [vmem:[#allocation124_spill] sm:$0xff] }
 0x293   : > { %3222 = vmatpush.bf16.msrb.mxu3 %v8031_v1  ;;  %3210 = vmatpush.bf16.msrb.mxu2 %v8035_v24  ;;  %v8053_v1 = vld [vmem:[#allocation112_spill] sm:$0xff]  ;;  %v8059_v24 = vld [vmem:[#allocation118_spill] sm:$0xff] }
 0x294   : > { %v2887_v13 = vmax.f32 %v8047_v9, %v6659_v32 }
 0x295   : > { %3185 = vmatpush.bf16.msrb.mxu0 %v8037_v44  ;;  %v2807_v48 = vpop.f32.mrf.mxu2  ;;  %v8061_v44 = vld [vmem:[#allocation119_spill] sm:$0xff] }
 0x296   : > { %3198 = vmatpush.bf16.msrb.mxu1 %v8039_v45  ;;  %v8062_v45 = vld [vmem:[#allocation115_spill] sm:$0xff]  ;;  %v8074_v48 = vld [vmem:[#allocation21_spill] sm:$0xff] }
 0x297   : > { %3223 = vmatpush.bf16.msrb.mxu3 %v8036_v55  ;;  %3211 = vmatpush.bf16.msrb.mxu2 %v8040_v8  ;;  %v8060_v55 = vld [vmem:[#allocation111_spill] sm:$0xff]  ;;  %v8063_v8 = vld [vmem:[#allocation120_spill] sm:$0xff] }
 0x299   : > { %3186 = vmatpush.bf16.msrb.mxu0 %v8043_v62  ;;  %v2820_v43 = vpop.f32.mrf.mxu3  ;;  %v8068_v62 = vld [vmem:[#allocation122_spill] sm:$0xff] }
 0x29a   : > { %3199 = vmatpush.bf16.msrb.mxu1 %v8044_v25 }
 0x29b   : > { %3224 = vmatpush.bf16.msrb.mxu3 %v8041_v17  ;;  %3212 = vmatpush.bf16.msrb.mxu2 %v8045_v54  ;;  %v8064_v17 = vld [vmem:[#allocation116_spill] sm:$0xff] }
 0x29d   : > { %3187 = vmatpush.bf16.msrb.mxu0 %v8048_v14  ;;  %v8071_v14 = vld [vmem:[#allocation125_spill] sm:$0xff] }
 0x29e   : > { %3200 = vmatpush.bf16.msrb.mxu1 %v8049_v0  ;;  %v8072_v0 = vld [vmem:[#allocation128_spill] sm:$0xff] }
 0x29f   : > { %3225 = vmatpush.bf16.msrb.mxu3 %v8046_v5  ;;  %3213 = vmatpush.bf16.msrb.mxu2 %v8050_v10  ;;  %v8070_v5 = vld [vmem:[#allocation127_spill] sm:$0xff] }
 0x2a1   : > { %3188 = vmatpush.bf16.msrb.mxu0 %v8052_v52  ;;  %v8075_v52 = vld [vmem:[#allocation131_spill] sm:$0xff] }
 0x2a2   : > { %3201 = vmatpush.bf16.msrb.mxu1 %v8053_v1  ;;  %v8076_v1 = vld [vmem:[#allocation129_spill] sm:$0xff] }
 0x2a3   : > { %3226 = vmatpush.bf16.msrb.mxu3 %v8051_v31  ;;  %3214 = vmatpush.bf16.msrb.mxu2 %v8054_v29  ;;  %v8073_v31 = vld [vmem:[#allocation126_spill] sm:$0xff]  ;;  %v8077_v29 = vld [vmem:[#allocation132_spill] sm:$0xff] }
 0x2a5   : > { %3189 = vmatpush.bf16.msrb.mxu0 %v8056_v37  ;;  %v2831_v58 = vpop.f32.mrf.mxu0  ;;  %v8078_v37 = vld [vmem:[#allocation25_spill] sm:$0xff] }
 0x2a6   : > { %3202 = vmatpush.bf16.msrb.mxu1 %v8057_v38  ;;  %v2832_v25 = vadd.f32 %v2831_v58, %v8069_v18  ;;  %v2844_v54 = vpop.f32.mrf.mxu1  ;;  %v8084_v58 = vld [vmem:[#allocation134_spill] sm:$0xff] }
 0x2a7   : > { %3227 = vmatpush.bf16.msrb.mxu3 %v8055_v60  ;;  %3215 = vmatpush.bf16.msrb.mxu2 %v8058_v12 }
 0x2a8   : > { %3190 = vmatmul.bf16.vlgmr.msrb.gmra.mxu0 %v6531_v19  ;;  %v6693_v10 = vadd.f32 %v2844_v54, %v2832_v25  ;;  %v8086_v25 = vld [vmem:[#allocation137_spill] sm:$0xff]  ;;  %v8087_v54 = vld [vmem:[#allocation140_spill] sm:$0xff] }
 0x2a9   : > { %3234 = vmatpush.bf16.msra.mxu0 %v8060_v55  ;;  %3203 = vmatmul.bf16.vlgmr.msrb.gmra.mxu1 %v6535_v20  ;;  %v8079_v55 = vld [vmem:[#allocation130_spill] sm:$0xff] }
 0x2aa   : > { %3247 = vmatpush.bf16.msra.mxu1 %v8061_v44  ;;  %3216 = vmatmul.bf16.vlgmr.msrb.gmra.mxu2 %v6531_v19  ;;  %v2888_v43 = vmax.f32 %v8074_v48, %v6693_v10 }
 0x2ab   : > { %3228 = vmatpush.bf16.msrb.mxu3 %v8059_v24  ;;  %3260 = vmatpush.bf16.msra.mxu2 %v8062_v45  ;;  %v8080_v45 = vld [vmem:[#allocation135_spill] sm:$0xff] }
 0x2ad   : > { %3235 = vmatpush.bf16.msra.mxu0 %v8064_v17  ;;  %v2857_v60 = vpop.f32.mrf.mxu2  ;;  %v2833_v24 = vpop.f32.mrf.mxu0 }
 0x2ae   : > { %3229 = vmatmul.bf16.vlgmr.msrb.gmra.mxu3 %v6535_v20  ;;  %3248 = vmatpush.bf16.msra.mxu1 %v8065_v15  ;;  %v2858_v38 = vadd.f32 %v2857_v60, %v8078_v37  ;;  %v2846_v44 = vpop.f32.mrf.mxu1  ;;  %v8082_v15 = vld [vmem:[#allocation136_spill] sm:$0xff]  ;;  %v8093_v60 = vld [vmem:[#allocation149_spill] sm:$0xff]  ;;  %v8096_v24 = vld [vmem:[#allocation143_spill] sm:$0xff] }
 0x2af   : > { %3273 = vmatpush.bf16.msra.mxu3 %v8063_v8  ;;  %3261 = vmatpush.bf16.msra.mxu2 %v8066_v22  ;;  %v8081_v8 = vld [vmem:[#allocation133_spill] sm:$0xff]  ;;  %v8083_v22 = vld [vmem:[#allocation255_spill] sm:$0xff] }
 0x2b0   : > { %v8098_v44 = vld [vmem:[#allocation147_spill] sm:$0xff] }
 0x2b1   : > { %3236 = vmatpush.bf16.msra.mxu0 %v8068_v62  ;;  %v2870_v12 = vpop.f32.mrf.mxu3  ;;  %v8085_v62 = vld [vmem:[#allocation139_spill] sm:$0xff] }
 0x2b2   : > { %3249 = vmatpush.bf16.msra.mxu1 %v8070_v5  ;;  %v6705_v17 = vadd.f32 %v2870_v12, %v2858_v38  ;;  %v8094_v38 = vld [vmem:[#allocation146_spill] sm:$0xff] }
 0x2b3   : > { %3274 = vmatpush.bf16.msra.mxu3 %v8067_v57  ;;  %3262 = vmatpush.bf16.msra.mxu2 %v8071_v14  ;;  %v8095_v12 = vld [vmem:[#allocation150_spill] sm:$0xff] }
 0x2b4   : > { %v2889_v57 = vmax.f32 %v8083_v22, %v6705_v17 }
 0x2b5   : > { %3237 = vmatpush.bf16.msra.mxu0 %v8073_v31  ;;  %v2859_v5 = vpop.f32.mrf.mxu2  ;;  %v8089_v31 = vld [vmem:[#allocation144_spill] sm:$0xff] }
 0x2b6   : > { %3250 = vmatpush.bf16.msra.mxu1 %v8075_v52  ;;  %v8090_v52 = vld [vmem:[#allocation141_spill] sm:$0xff] }
 0x2b7   : > { %3275 = vmatpush.bf16.msra.mxu3 %v8072_v0  ;;  %3263 = vmatpush.bf16.msra.mxu2 %v8076_v1  ;;  %v8088_v0 = vld [vmem:[#allocation138_spill] sm:$0xff]  ;;  %v8091_v1 = vld [vmem:[#allocation145_spill] sm:$0xff] }
 0x2b8   : > { %v8105_v5 = vld [vmem:[#allocation189_spill] sm:$0xff] }
 0x2b9   : > { %3238 = vmatpush.bf16.msra.mxu0 %v8079_v55  ;;  %v2872_v14 = vpop.f32.mrf.mxu3  ;;  %v8097_v55 = vld [vmem:[#allocation151_spill] sm:$0xff] }
 0x2ba   : > { %3251 = vmatpush.bf16.msra.mxu1 %v8080_v45  ;;  %v8099_v45 = vld [vmem:[#allocation152_spill] sm:$0xff] }
 0x2bb   : > { %3276 = vmatpush.bf16.msra.mxu3 %v8077_v29  ;;  %3264 = vmatpush.bf16.msra.mxu2 %v8081_v8  ;;  %v8092_v29 = vld [vmem:[#allocation142_spill] sm:$0xff]  ;;  %v8100_v8 = vld [vmem:[#allocation148_spill] sm:$0xff] }
 0x2bd   : > { %3239 = vmatpush.bf16.msra.mxu0 %v8084_v58  ;;  %v8102_v58 = vld [vmem:[#allocation153_spill] sm:$0xff] }
 0x2be   : > { %3252 = vmatpush.bf16.msra.mxu1 %v8085_v62  ;;  %v8103_v62 = vld [vmem:[#allocation156_spill] sm:$0xff] }
 0x2bf   : > { %3277 = vmatpush.bf16.msra.mxu3 %v8082_v15  ;;  %3265 = vmatpush.bf16.msra.mxu2 %v8086_v25  ;;  %v8101_v15 = vld [vmem:[#allocation155_spill] sm:$0xff] }
 0x2c1   : > { %3240 = vmatpush.bf16.msra.mxu0 %v8088_v0 }
 0x2c2   : > { %3253 = vmatpush.bf16.msra.mxu1 %v8089_v31  ;;  %v8106_v31 = vld [vmem:[#allocation159_spill] sm:$0xff] }
 0x2c3   : > { %3278 = vmatpush.bf16.msra.mxu3 %v8087_v54  ;;  %3266 = vmatpush.bf16.msra.mxu2 %v8090_v52  ;;  %v8104_v54 = vld [vmem:[#allocation154_spill] sm:$0xff]  ;;  %v8107_v52 = vld [vmem:[#allocation157_spill] sm:$0xff] }
 0x2c5   : > { %3241 = vmatpush.bf16.msra.mxu0 %v8092_v29  ;;  %v3035_v25 = vpop.f32.mrf.mxu0 }
 0x2c6   : > { %3254 = vmatpush.bf16.msra.mxu1 %v8093_v60  ;;  %v3036_v14 = vadd.f32 %v3035_v25, %v8105_v5  ;;  %v3048_v0 = vpop.f32.mrf.mxu1  ;;  %v8109_v60 = vld [vmem:[#allocation158_spill] sm:$0xff] }
 0x2c7   : > { %3279 = vmatpush.bf16.msra.mxu3 %v8091_v1  ;;  %3267 = vmatpush.bf16.msra.mxu2 %v8094_v38  ;;  %v8108_v1 = vld [vmem:[#allocation160_spill] sm:$0xff]  ;;  %v8110_v38 = vld [vmem:[#allocation199_spill] sm:$0xff]  ;;  %v8117_v5 = vld [vmem:[#allocation162_spill] sm:$0xff] }
 0x2c8   : > { %3242 = vmatmul.bf16.vlgmr.msra.gmra.mxu0 %v6531_v19  ;;  %v3049_v29 = vadd.f32 %v3048_v0, %v3036_v14  ;;  %v8118_v0 = vld [vmem:[#allocation167_spill] sm:$0xff] }
 0x2c9   : > { %3286 = vmatpush.bf16.msrb.mxu0 %v8096_v24  ;;  %3255 = vmatmul.bf16.vlgmr.msra.gmra.mxu1 %v6535_v20 }
 0x2ca   : > { %3299 = vmatpush.bf16.msrb.mxu1 %v8097_v55  ;;  %3268 = vmatmul.bf16.vlgmr.msra.gmra.mxu2 %v6531_v19 }
 0x2cb   : > { %3280 = vmatpush.bf16.msra.mxu3 %v8095_v12  ;;  %3312 = vmatpush.bf16.msrb.mxu2 %v8098_v44  ;;  %v8111_v12 = vld [vmem:[#allocation256_spill] sm:$0xff]  ;;  %v8113_v44 = vld [vmem:[#allocation163_spill] sm:$0xff] }
 0x2cc   : > { %v8112_v24 = vmax.f32 %v8110_v38, %v8111_v12 }
 0x2cd   : > { %3287 = vmatpush.bf16.msrb.mxu0 %v8100_v8  ;;  %v8115_v8 = vld [vmem:[#allocation164_spill] sm:$0xff] }
 0x2ce   : > { %3281 = vmatmul.bf16.vlgmr.msra.gmra.mxu3 %v6535_v20  ;;  %3300 = vmatpush.bf16.msrb.mxu1 %v8101_v15  ;;  %v3442_v55 = vmax.f32 %v8112_v24, %v3049_v29  ;;  %v3061_v15 = vpop.f32.mrf.mxu2  ;;  %v3050_v14 = vpop.f32.mrf.mxu1  ;;  %v8121_v29 = vld [vmem:[#allocation206_spill] sm:$0xff] }
 0x2cf   : > { %3325 = vmatpush.bf16.msrb.mxu3 %v8099_v45  ;;  %3313 = vmatpush.bf16.msrb.mxu2 %v8102_v58  ;;  %v8114_v45 = vld [vmem:[#allocation161_spill] sm:$0xff]  ;;  %v8116_v58 = vld [vmem:[#allocation196_spill] sm:$0xff]  ;;  %v8124_v24 = vld [vmem:[#allocation166_spill] sm:$0xff] }
 0x2d0   : > { %3458 = vst [vmem:[%s6749_s25] sm:$0xff] %v3442_v55  ;;  %v8125_v55 = vld [vmem:[#allocation171_spill] sm:$0xff]  ;;  %v8133_v14 = vld [vmem:[#allocation181_spill] sm:$0xff] }
 0x2d1   : > { %3288 = vmatpush.bf16.msrb.mxu0 %v8104_v54  ;;  %v3074_v25 = vpop.f32.mrf.mxu3  ;;  %v3037_v54 = vpop.f32.mrf.mxu0 }
 0x2d2   : > { %3301 = vmatpush.bf16.msrb.mxu1 %v8106_v31  ;;  %v8119_v31 = vld [vmem:[#allocation165_spill] sm:$0xff] }
 0x2d3   : > { %3326 = vmatpush.bf16.msrb.mxu3 %v8103_v62  ;;  %3314 = vmatpush.bf16.msrb.mxu2 %v8107_v52  ;;  %v3062_v62 = vadd.f32 %v3061_v15, %v8116_v58  ;;  %v8128_v58 = vld [vmem:[#allocation170_spill] sm:$0xff]  ;;  %v8131_v54 = vld [vmem:[#allocation177_spill] sm:$0xff] }
 0x2d5   : > { %3289 = vmatpush.bf16.msrb.mxu0 %v8109_v60  ;;  %v3075_v52 = vadd.f32 %v3074_v25, %v3062_v62  ;;  %v8122_v60 = vld [vmem:[#allocation257_spill] sm:$0xff]  ;;  %v8129_v62 = vld [vmem:[#allocation176_spill] sm:$0xff] }
 0x2d6   : > { %3302 = vmatpush.bf16.msrb.mxu1 %v8113_v44  ;;  %v8123_v38 = vmax.f32 %v8121_v29, %v8122_v60  ;;  %v8126_v44 = vld [vmem:[#allocation169_spill] sm:$0xff]  ;;  %v8138_v29 = vld [vmem:[#allocation179_spill] sm:$0xff]  ;;  %v8139_v60 = vld [vmem:[#allocation184_spill] sm:$0xff] }
 0x2d7   : > { %3327 = vmatpush.bf16.msrb.mxu3 %v8108_v1  ;;  %3315 = vmatpush.bf16.msrb.mxu2 %v8114_v45  ;;  %v8120_v1 = vld [vmem:[#allocation168_spill] sm:$0xff]  ;;  %v8130_v25 = vld [vmem:[#allocation173_spill] sm:$0xff] }
 0x2d8   : > { %v3443_v12 = vmax.f32 %v8123_v38, %v3075_v52  ;;  %v8127_v45 = vld [vmem:[#allocation172_spill] sm:$0xff]  ;;  %v8136_v52 = vld [vmem:[#allocation175_spill] sm:$0xff] }
 0x2d9   : > { %3290 = vmatpush.bf16.msrb.mxu0 %v8117_v5  ;;  %v3076_v15 = vpop.f32.mrf.mxu3  ;;  %v8132_v5 = vld [vmem:[#allocation174_spill] sm:$0xff]  ;;  %v8140_v38 = vld [vmem:[#allocation180_spill] sm:$0xff] }
 0x2da   : > { %3303 = vmatpush.bf16.msrb.mxu1 %v8118_v0  ;;  %3459 = vst [vmem:[%s6749_s25 + $0x8] sm:$0xff] %v3443_v12  ;;  %v8134_v0 = vld [vmem:[#allocation178_spill] sm:$0xff]  ;;  %v8141_v12 = vld [vmem:[#allocation187_spill] sm:$0xff] }
 0x2db   : > { %3328 = vmatpush.bf16.msrb.mxu3 %v8115_v8  ;;  %3316 = vmatpush.bf16.msrb.mxu2 %v8119_v31  ;;  %v3063_v8 = vpop.f32.mrf.mxu2  ;;  %v8135_v31 = vld [vmem:[#allocation182_spill] sm:$0xff] }
 0x2dc   : > { %v8145_v8 = vld [vmem:[#allocation210_spill] sm:$0xff] }
 0x2dd   : > { %3291 = vmatpush.bf16.msrb.mxu0 %v8124_v24  ;;  %v8142_v24 = vld [vmem:[#allocation185_spill] sm:$0xff] }
 0x2de   : > { %3304 = vmatpush.bf16.msrb.mxu1 %v8125_v55  ;;  %v8143_v55 = vld [vmem:[#allocation188_spill] sm:$0xff] }
 0x2df   : > { %3329 = vmatpush.bf16.msrb.mxu3 %v8120_v1  ;;  %3317 = vmatpush.bf16.msrb.mxu2 %v8126_v44  ;;  %v8137_v1 = vld [vmem:[#allocation183_spill] sm:$0xff] }
 0x2e1   : > { %3292 = vmatpush.bf16.msrb.mxu0 %v8128_v58 }
 0x2e2   : > { %3305 = vmatpush.bf16.msrb.mxu1 %v8129_v62  ;;  %v8146_v62 = vld [vmem:[#allocation192_spill] sm:$0xff] }
 0x2e3   : > { %3330 = vmatpush.bf16.msrb.mxu3 %v8127_v45  ;;  %3318 = vmatpush.bf16.msrb.mxu2 %v8130_v25  ;;  %v8144_v45 = vld [vmem:[#allocation186_spill] sm:$0xff] }
 0x2e4   : > { %v8147_v25 = vld [vmem:[#allocation190_spill] sm:$0xff] }
 0x2e5   : > { %3293 = vmatpush.bf16.msrb.mxu0 %v8132_v5  ;;  %v3087_v44 = vpop.f32.mrf.mxu0 }
 0x2e6   : > { %3306 = vmatpush.bf16.msrb.mxu1 %v8133_v14  ;;  %v3088_v15 = vadd.f32 %v3087_v44, %v8145_v8  ;;  %v3100_v58 = vpop.f32.mrf.mxu1  ;;  %v8149_v14 = vld [vmem:[#allocation191_spill] sm:$0xff] }
 0x2e7   : > { %3331 = vmatpush.bf16.msrb.mxu3 %v8131_v54  ;;  %3319 = vmatpush.bf16.msrb.mxu2 %v8134_v0  ;;  %v8148_v54 = vld [vmem:[#allocation193_spill] sm:$0xff]  ;;  %v8150_v0 = vld [vmem:[#allocation223_spill] sm:$0xff] }
 0x2e8   : > { %3294 = vmatmul.bf16.vlgmr.msrb.gmra.mxu0 %v6531_v19  ;;  %v3101_v5 = vadd.f32 %v3100_v58, %v3088_v15  ;;  %v8157_v8 = vld [vmem:[#allocation195_spill] sm:$0xff]  ;;  %v8158_v58 = vld [vmem:[#allocation202_spill] sm:$0xff] }
 0x2e9   : > { %3338 = vmatpush.bf16.msra.mxu0 %v8136_v52  ;;  %3307 = vmatmul.bf16.vlgmr.msrb.gmra.mxu1 %v6535_v20 }
 0x2ea   : > { %3351 = vmatpush.bf16.msra.mxu1 %v8137_v1  ;;  %3320 = vmatmul.bf16.vlgmr.msrb.gmra.mxu2 %v6531_v19 }
 0x2eb   : > { %3332 = vmatpush.bf16.msrb.mxu3 %v8135_v31  ;;  %3364 = vmatpush.bf16.msra.mxu2 %v8138_v29  ;;  %v8151_v31 = vld [vmem:[#allocation258_spill] sm:$0xff]  ;;  %v8153_v29 = vld [vmem:[#allocation197_spill] sm:$0xff] }
 0x2ec   : > { %v8152_v52 = vmax.f32 %v8150_v0, %v8151_v31 }
 0x2ed   : > { %3339 = vmatpush.bf16.msra.mxu0 %v8140_v38  ;;  %v8155_v38 = vld [vmem:[#allocation198_spill] sm:$0xff] }
 0x2ee   : > { %3333 = vmatmul.bf16.vlgmr.msrb.gmra.mxu3 %v6535_v20  ;;  %3352 = vmatpush.bf16.msra.mxu1 %v8141_v12  ;;  %v3444_v1 = vmax.f32 %v8152_v52, %v3101_v5  ;;  %v3113_v12 = vpop.f32.mrf.mxu2  ;;  %v3102_v15 = vpop.f32.mrf.mxu1  ;;  %v8161_v5 = vld [vmem:[#allocation229_spill] sm:$0xff] }
 0x2ef   : > { %3377 = vmatpush.bf16.msra.mxu3 %v8139_v60  ;;  %3365 = vmatpush.bf16.msra.mxu2 %v8142_v24  ;;  %v8154_v60 = vld [vmem:[#allocation194_spill] sm:$0xff]  ;;  %v8164_v52 = vld [vmem:[#allocation201_spill] sm:$0xff]  ;;  %v8173_v15 = vld [vmem:[#allocation219_spill] sm:$0xff] }
 0x2f0   : > { %3460 = vst [vmem:[%s6749_s25 + $0x10] sm:$0xff] %v3444_v1  ;;  %v8156_v24 = vld [vmem:[#allocation218_spill] sm:$0xff]  ;;  %v8165_v1 = vld [vmem:[#allocation207_spill] sm:$0xff] }
 0x2f1   : > { %3340 = vmatpush.bf16.msra.mxu0 %v8144_v45  ;;  %v3126_v44 = vpop.f32.mrf.mxu3  ;;  %v3089_v45 = vpop.f32.mrf.mxu0 }
 0x2f2   : > { %3353 = vmatpush.bf16.msra.mxu1 %v8146_v62  ;;  %v8159_v62 = vld [vmem:[#allocation200_spill] sm:$0xff]  ;;  %v8171_v45 = vld [vmem:[#allocation214_spill] sm:$0xff] }
 0x2f3   : > { %3378 = vmatpush.bf16.msra.mxu3 %v8143_v55  ;;  %3366 = vmatpush.bf16.msra.mxu2 %v8147_v25  ;;  %v3114_v55 = vadd.f32 %v3113_v12, %v8156_v24  ;;  %v8168_v24 = vld [vmem:[#allocation205_spill] sm:$0xff] }
 0x2f5   : > { %3341 = vmatpush.bf16.msra.mxu0 %v8149_v14  ;;  %v3127_v25 = vadd.f32 %v3126_v44, %v3114_v55  ;;  %v8162_v14 = vld [vmem:[#allocation259_spill] sm:$0xff]  ;;  %v8169_v55 = vld [vmem:[#allocation213_spill] sm:$0xff] }
 0x2f6   : > { %3354 = vmatpush.bf16.msra.mxu1 %v8153_v29  ;;  %v8163_v0 = vmax.f32 %v8161_v5, %v8162_v14  ;;  %v8166_v29 = vld [vmem:[#allocation204_spill] sm:$0xff]  ;;  %v8170_v44 = vld [vmem:[#allocation209_spill] sm:$0xff]  ;;  %v8179_v14 = vld [vmem:[#allocation222_spill] sm:$0xff] }
 0x2f7   : > { %3379 = vmatpush.bf16.msra.mxu3 %v8148_v54  ;;  %3367 = vmatpush.bf16.msra.mxu2 %v8154_v60  ;;  %v8160_v54 = vld [vmem:[#allocation203_spill] sm:$0xff]  ;;  %v8167_v60 = vld [vmem:[#allocation208_spill] sm:$0xff] }
 0x2f8   : > { %v3445_v31 = vmax.f32 %v8163_v0, %v3127_v25  ;;  %v8176_v25 = vld [vmem:[#allocation212_spill] sm:$0xff]  ;;  %v8180_v0 = vld [vmem:[#allocation217_spill] sm:$0xff] }
 0x2f9   : > { %3342 = vmatpush.bf16.msra.mxu0 %v8157_v8  ;;  %v3128_v12 = vpop.f32.mrf.mxu3  ;;  %v8172_v8 = vld [vmem:[#allocation211_spill] sm:$0xff]  ;;  %v8178_v5 = vld [vmem:[#allocation216_spill] sm:$0xff] }
 0x2fa   : > { %3355 = vmatpush.bf16.msra.mxu1 %v8158_v58  ;;  %3461 = vst [vmem:[%s6749_s25 + $0x18] sm:$0xff] %v3445_v31  ;;  %v8174_v58 = vld [vmem:[#allocation215_spill] sm:$0xff]  ;;  %v8181_v31 = vld [vmem:[#allocation226_spill] sm:$0xff] }
 0x2fb   : > { %3380 = vmatpush.bf16.msra.mxu3 %v8155_v38  ;;  %3368 = vmatpush.bf16.msra.mxu2 %v8159_v62  ;;  %v3115_v38 = vpop.f32.mrf.mxu2  ;;  %v8175_v62 = vld [vmem:[#allocation220_spill] sm:$0xff] }
 0x2fc   : > { %v8185_v38 = vld [vmem:[#allocation234_spill] sm:$0xff] }
 0x2fd   : > { %3343 = vmatpush.bf16.msra.mxu0 %v8164_v52  ;;  %v8182_v52 = vld [vmem:[#allocation224_spill] sm:$0xff] }
 0x2fe   : > { %3356 = vmatpush.bf16.msra.mxu1 %v8165_v1  ;;  %v8183_v1 = vld [vmem:[#allocation227_spill] sm:$0xff] }
 0x2ff   : > { %3381 = vmatpush.bf16.msra.mxu3 %v8160_v54  ;;  %3369 = vmatpush.bf16.msra.mxu2 %v8166_v29  ;;  %v8177_v54 = vld [vmem:[#allocation221_spill] sm:$0xff] }
 0x301   : > { %3344 = vmatpush.bf16.msra.mxu0 %v8168_v24 }
 0x302   : > { %3357 = vmatpush.bf16.msra.mxu1 %v8169_v55  ;;  %v8186_v55 = vld [vmem:[#allocation231_spill] sm:$0xff] }
 0x303   : > { %3382 = vmatpush.bf16.msra.mxu3 %v8167_v60  ;;  %3370 = vmatpush.bf16.msra.mxu2 %v8170_v44  ;;  %v8184_v60 = vld [vmem:[#allocation225_spill] sm:$0xff]  ;;  %v8187_v44 = vld [vmem:[#allocation228_spill] sm:$0xff] }
 0x305   : > { %3345 = vmatpush.bf16.msra.mxu0 %v8172_v8  ;;  %v3139_v29 = vpop.f32.mrf.mxu0 }
 0x306   : > { %3358 = vmatpush.bf16.msra.mxu1 %v8173_v15  ;;  %v3140_v12 = vadd.f32 %v3139_v29, %v8185_v38  ;;  %v3152_v24 = vpop.f32.mrf.mxu1  ;;  %v8189_v15 = vld [vmem:[#allocation230_spill] sm:$0xff]  ;;  %v8197_v38 = vld [vmem:[#allocation235_spill] sm:$0xff] }
 0x307   : > { %3383 = vmatpush.bf16.msra.mxu3 %v8171_v45  ;;  %3371 = vmatpush.bf16.msra.mxu2 %v8174_v58  ;;  %v8188_v45 = vld [vmem:[#allocation232_spill] sm:$0xff]  ;;  %v8190_v58 = vld [vmem:[#allocation243_spill] sm:$0xff] }
 0x308   : > { %3346 = vmatmul.bf16.vlgmr.msra.gmra.mxu0 %v6531_v19  ;;  %v3153_v8 = vadd.f32 %v3152_v24, %v3140_v12  ;;  %v8198_v24 = vld [vmem:[#allocation240_spill] sm:$0xff] }
 0x309   : > { %3390 = vmatpush.bf16.msrb.mxu0 %v8176_v25  ;;  %3359 = vmatmul.bf16.vlgmr.msra.gmra.mxu1 %v6535_v20 }
 0x30a   : > { %3403 = vmatpush.bf16.msrb.mxu1 %v8177_v54  ;;  %3372 = vmatmul.bf16.vlgmr.msra.gmra.mxu2 %v6531_v19 }
 0x30b   : > { %3384 = vmatpush.bf16.msra.mxu3 %v8175_v62  ;;  %3416 = vmatpush.bf16.msrb.mxu2 %v8178_v5  ;;  %v8191_v62 = vld [vmem:[#allocation260_spill] sm:$0xff] }
 0x30c   : > { %v8192_v25 = vmax.f32 %v8190_v58, %v8191_v62  ;;  %v8193_v5 = vld [vmem:[#allocation236_spill] sm:$0xff] }
 0x30d   : > { %3391 = vmatpush.bf16.msrb.mxu0 %v8180_v0  ;;  %v8195_v0 = vld [vmem:[#allocation237_spill] sm:$0xff] }
 0x30e   : > { %3385 = vmatmul.bf16.vlgmr.msra.gmra.mxu3 %v6535_v20  ;;  %3404 = vmatpush.bf16.msrb.mxu1 %v8181_v31  ;;  %v3446_v54 = vmax.f32 %v8192_v25, %v3153_v8  ;;  %v3165_v31 = vpop.f32.mrf.mxu2  ;;  %v3154_v12 = vpop.f32.mrf.mxu1  ;;  %v8201_v8 = vld [vmem:[#allocation252_spill] sm:$0xff]  ;;  %v8204_v25 = vld [vmem:[#allocation239_spill] sm:$0xff] }
 0x30f   : > { %3429 = vmatpush.bf16.msrb.mxu3 %v8179_v14  ;;  %3417 = vmatpush.bf16.msrb.mxu2 %v8182_v52  ;;  %v8194_v14 = vld [vmem:[#allocation233_spill] sm:$0xff]  ;;  %v8213_v12 = vld [vmem:[#allocation254_spill] sm:$0xff] }
 0x310   : > { %3462 = vst [vmem:[%s6749_s25 + $0x20] sm:$0xff] %v3446_v54  ;;  %v8196_v52 = vld [vmem:[#allocation245_spill] sm:$0xff]  ;;  %v8205_v54 = vld [vmem:[#allocation246_spill] sm:$0xff] }
 0x311   : > { %3392 = vmatpush.bf16.msrb.mxu0 %v8184_v60  ;;  %v3178_v29 = vpop.f32.mrf.mxu3  ;;  %v3141_v60 = vpop.f32.mrf.mxu0 }
 0x312   : > { %3405 = vmatpush.bf16.msrb.mxu1 %v8186_v55  ;;  %v8199_v55 = vld [vmem:[#allocation238_spill] sm:$0xff]  ;;  %v8211_v60 = vld [vmem:[#allocation251_spill] sm:$0xff] }
 0x313   : > { %3430 = vmatpush.bf16.msrb.mxu3 %v8183_v1  ;;  %3418 = vmatpush.bf16.msrb.mxu2 %v8187_v44  ;;  %v3166_v1 = vadd.f32 %v3165_v31, %v8196_v52  ;;  %v8208_v52 = vld [vmem:[#allocation244_spill] sm:$0xff] }
 0x315   : > { %3393 = vmatpush.bf16.msrb.mxu0 %v8189_v15  ;;  %v3179_v44 = vadd.f32 %v3178_v29, %v3166_v1  ;;  %v8202_v15 = vld [vmem:[#allocation261_spill] sm:$0xff]  ;;  %v8209_v1 = vld [vmem:[#allocation250_spill] sm:$0xff]  ;;  %v8210_v29 = vld [vmem:[#allocation248_spill] sm:$0xff] }
 0x316   : > { %3406 = vmatpush.bf16.msrb.mxu1 %v8193_v5  ;;  %v8203_v58 = vmax.f32 %v8201_v8, %v8202_v15  ;;  %v8206_v5 = vld [vmem:[#allocation242_spill] sm:$0xff] }
 0x317   : > { %3431 = vmatpush.bf16.msrb.mxu3 %v8188_v45  ;;  %3419 = vmatpush.bf16.msrb.mxu2 %v8194_v14  ;;  %v8200_v45 = vld [vmem:[#allocation241_spill] sm:$0xff]  ;;  %v8207_v14 = vld [vmem:[#allocation247_spill] sm:$0xff] }
 0x318   : > { %v3447_v62 = vmax.f32 %v8203_v58, %v3179_v44 }
 0x319   : > { %3394 = vmatpush.bf16.msrb.mxu0 %v8197_v38  ;;  %v3180_v31 = vpop.f32.mrf.mxu3  ;;  %v8212_v38 = vld [vmem:[#allocation253_spill] sm:$0xff] }
 0x31a   : > { %3407 = vmatpush.bf16.msrb.mxu1 %v8198_v24  ;;  %3463 = vst [vmem:[%s6749_s25 + $0x28] sm:$0xff] %v3447_v62 }
 0x31b   : > { %3432 = vmatpush.bf16.msrb.mxu3 %v8195_v0  ;;  %3420 = vmatpush.bf16.msrb.mxu2 %v8199_v55  ;;  %v3167_v0 = vpop.f32.mrf.mxu2 }
 0x31d   : > { %3395 = vmatpush.bf16.msrb.mxu0 %v8204_v25 }
 0x31e   : > { %3408 = vmatpush.bf16.msrb.mxu1 %v8205_v54 }
 0x31f   : > { %3433 = vmatpush.bf16.msrb.mxu3 %v8200_v45  ;;  %3421 = vmatpush.bf16.msrb.mxu2 %v8206_v5 }
 0x321   : > { %3396 = vmatpush.bf16.msrb.mxu0 %v8208_v52 }
 0x322   : > { %3409 = vmatpush.bf16.msrb.mxu1 %v8209_v1 }
 0x323   : > { %3434 = vmatpush.bf16.msrb.mxu3 %v8207_v14  ;;  %3422 = vmatpush.bf16.msrb.mxu2 %v8210_v29 }
 0x325   : > { %3397 = vmatpush.bf16.msrb.mxu0 %v7954_v30  ;;  %v3191_v24 = vpop.f32.mrf.mxu0 }
 0x326   : > { %3410 = vmatpush.bf16.msrb.mxu1 %v6046_v2  ;;  %v3192_v55 = vadd.f32 %v3191_v24, %v6081_v53  ;;  %v3204_v44 = vpop.f32.mrf.mxu1 }
 0x327   : > { %3435 = vmatpush.bf16.msrb.mxu3 %v8211_v60  ;;  %3423 = vmatpush.bf16.msrb.mxu2 %v8212_v38 }
 0x328   : > { %3398 = vmatmul.bf16.vlgmr.msrb.gmra.mxu0 %v6531_v19  ;;  %v3205_v30 = vadd.f32 %v3204_v44, %v3192_v55 }
 0x329   : > { %3411 = vmatmul.bf16.vlgmr.msrb.gmra.mxu1 %v6535_v20 }
 0x32a   : > { %3424 = vmatmul.bf16.vlgmr.msrb.gmra.mxu2 %v6531_v19  ;;  %v3448_v2 = vmax.f32 %v2880_v33, %v3205_v30 }
 0x32b   : > { %3436 = vmatpush.bf16.msrb.mxu3 %v8213_v12 }
 0x32c   : > { %3464 = vst [vmem:[%s6749_s25 + $0x30] sm:$0xff] %v3448_v2 }
 0x32d   : > { %v3217_v45 = vpop.f32.mrf.mxu2  ;;  %v3193_v58 = vpop.f32.mrf.mxu0 }
 0x32e   : > { %3437 = vmatmul.bf16.vlgmr.msrb.gmra.mxu3 %v6535_v20  ;;  %v3218_v8 = vadd.f32 %v3217_v45, %v6103_v41  ;;  %v3206_v62 = vpop.f32.mrf.mxu1 }
 0x331   : > { %v3230_v15 = vpop.f32.mrf.mxu3 }
 0x332   : > { %v3231_v19 = vadd.f32 %v3230_v15, %v3218_v8 }
 0x334   : > { %v3449_v20 = vmax.f32 %v2881_v56, %v3231_v19 }
 0x335   : > { %v3219_v53 = vpop.f32.mrf.mxu2 }
 0x336   : > { %3465 = vst [vmem:[%s6749_s25 + $0x38] sm:$0xff] %v3449_v20 }
 0x339   : > { %v3232_v25 = vpop.f32.mrf.mxu3 }
 0x345   : > { %v3243_v54 = vpop.f32.mrf.mxu0 }
 0x346   : > { %v3244_v4 = vadd.f32 %v3243_v54, %v7963_v16  ;;  %v3256_v47 = vpop.f32.mrf.mxu1 }
 0x348   : > { %v3257_v33 = vadd.f32 %v3256_v47, %v3244_v4 }
 0x34a   : > { %v3450_v41 = vmax.f32 %v2882_v28, %v3257_v33 }
 0x34c   : > { %3466 = vst [vmem:[%s6749_s25 + $0x40] sm:$0xff] %v3450_v41 }
 0x34d   : > { %v3269_v5 = vpop.f32.mrf.mxu2  ;;  %v3245_v50 = vpop.f32.mrf.mxu0 }
 0x34e   : > { %v3270_v14 = vadd.f32 %v3269_v5, %v6164_v23  ;;  %v3258_v56 = vpop.f32.mrf.mxu1 }
 0x351   : > { %v3282_v3 = vpop.f32.mrf.mxu3 }
 0x352   : > { %v3283_v0 = vadd.f32 %v3282_v3, %v3270_v14 }
 0x354   : > { %v3451_v31 = vmax.f32 %v2883_v27, %v3283_v0 }
 0x355   : > { %v3271_v16 = vpop.f32.mrf.mxu2 }
 0x356   : > { %3467 = vst [vmem:[%s6749_s25 + $0x48] sm:$0xff] %v3451_v31 }
 0x359   : > { %v3284_v52 = vpop.f32.mrf.mxu3 }
 0x365   : > { %v3295_v1 = vpop.f32.mrf.mxu0 }
 0x366   : > { %v3296_v35 = vadd.f32 %v3295_v1, %v7997_v63  ;;  %v3308_v51 = vpop.f32.mrf.mxu1 }
 0x368   : > { %v3309_v28 = vadd.f32 %v3308_v51, %v3296_v35 }
 0x36a   : > { %v3452_v23 = vmax.f32 %v2884_v7, %v3309_v28 }
 0x36c   : > { %3468 = vst [vmem:[%s6749_s25 + $0x50] sm:$0xff] %v3452_v23 }
 0x36d   : > { %v3321_v29 = vpop.f32.mrf.mxu2  ;;  %v3297_v6 = vpop.f32.mrf.mxu0 }
 0x36e   : > { %v3322_v60 = vadd.f32 %v3321_v29, %v8006_v42  ;;  %v3310_v27 = vpop.f32.mrf.mxu1 }
 0x371   : > { %v3334_v39 = vpop.f32.mrf.mxu3 }
 0x372   : > { %v3335_v38 = vadd.f32 %v3334_v39, %v3322_v60 }
 0x374   : > { %v3453_v12 = vmax.f32 %v2885_v11, %v3335_v38 }
 0x375   : > { %v3323_v63 = vpop.f32.mrf.mxu2 }
 0x376   : > { %3469 = vst [vmem:[%s6749_s25 + $0x58] sm:$0xff] %v3453_v12 }
 0x379   : > { %v3336_v24 = vpop.f32.mrf.mxu3 }
 0x385   : > { %v3347_v55 = vpop.f32.mrf.mxu0 }
 0x386   : > { %v3348_v59 = vadd.f32 %v3347_v55, %v8033_v34  ;;  %v3360_v26 = vpop.f32.mrf.mxu1 }
 0x388   : > { %v3361_v7 = vadd.f32 %v3360_v26, %v3348_v59 }
 0x38a   : > { %v3454_v42 = vmax.f32 %v2886_v36, %v3361_v7 }
 0x38c   : > { %3470 = vst [vmem:[%s6749_s25 + $0x60] sm:$0xff] %v3454_v42 }
 0x38d   : > { %v3373_v44 = vpop.f32.mrf.mxu2  ;;  %v3349_v49 = vpop.f32.mrf.mxu0 }
 0x38e   : > { %v3374_v30 = vadd.f32 %v3373_v44, %v8042_v21  ;;  %v3362_v11 = vpop.f32.mrf.mxu1 }
 0x391   : > { %v3386_v46 = vpop.f32.mrf.mxu3 }
 0x392   : > { %v3387_v2 = vadd.f32 %v3386_v46, %v3374_v30 }
 0x394   : > { %v3455_v34 = vmax.f32 %v2887_v13, %v3387_v2 }
 0x395   : > { %v3375_v45 = vpop.f32.mrf.mxu2 }
 0x396   : > { %3471 = vst [vmem:[%s6749_s25 + $0x68] sm:$0xff] %v3455_v34 }
 0x399   : > { %v3388_v8 = vpop.f32.mrf.mxu3 }
 0x3a5   : > { %v3399_v61 = vpop.f32.mrf.mxu0 }
 0x3a6   : > { %v3400_v40 = vadd.f32 %v3399_v61, %v8069_v18  ;;  %v3412_v36 = vpop.f32.mrf.mxu1 }
 0x3a8   : > { %v3413_v15 = vadd.f32 %v3412_v36, %v3400_v40 }
 0x3aa   : > { %v3456_v21 = vmax.f32 %v2888_v43, %v3413_v15 }
 0x3ac   : > { %3472 = vst [vmem:[%s6749_s25 + $0x70] sm:$0xff] %v3456_v21 }
 0x3ad   : > { %v3425_v32 = vpop.f32.mrf.mxu2  ;;  %v3401_v18 = vpop.f32.mrf.mxu0 }
 0x3ae   : > { %v3426_v9 = vadd.f32 %v3425_v32, %v8078_v37  ;;  %v3414_v58 = vpop.f32.mrf.mxu1 }
 0x3b1   : > { %v3438_v13 = vpop.f32.mrf.mxu3 }
 0x3b2   : > { %v3439_v62 = vadd.f32 %v3438_v13, %v3426_v9 }
 0x3b4   : > { %v3457_v10 = vmax.f32 %v2889_v57, %v3439_v62 }
 0x3b5   : > { %v3427_v48 = vpop.f32.mrf.mxu2 }
 0x3b6   : > { %3473 = vst [vmem:[%s6749_s25 + $0x78] sm:$0xff] %v3457_v10 }
 0x3b7   : > { %4991 = shalt.err (!%p4988_p8)
}
 0x3b8   : > { %4886 = dma.vmem_to_hbm [thread:$0]  (%p5093_p5), %s3489_s30, 2048, %s3491_s4, %s3475_s16  }
 0x3b9   : > { %v3440_v43 = vpop.f32.mrf.mxu3 }
 0x3ba PF: > { %p4898_p9 = scmp.ge.s32.totalorder %s5030_s15, 2  ;;  %s3502_s17 = sand.u32 1, %s5018_s12  }
 0x3bb   : > { %s3503_s19 = scalar_lea.sflag [#allocation4], %s3502_s17 }
 0x3bc   : > { %p4893_p10 = pnand %p4898_p9, %p5097_p6 }
 0x3be   : > { %p4894_p11 = pneg %p4893_p10 }
 0x3c0   : > { %5013 = dma.done.wait (%p4894_p11), %s3503_s19, 2048  }
 0x3c1   : > { %5015 = vsyncadd (%p4894_p11), %s3503_s19, 4294965248  ;;  %p14_p12 = scmp.ge.s32.totalorder %s5080_s18, 4   ;;  %s8214_s12 = smov %s5022_s13 }
 0x3c2   : > { %s8215_s13 = smov %s5026_s14  ;;  %s8216_s14 = smov %s5091_s21 }
 0x3c3   : > { %s8217_s15 = smov %s5080_s18  ;;  %16 = sbr.rel (!%p14_p12) target bundleno = 4 (0x4), region = 95 }
 0x3c8   :  { %3509 = vsyncpa [#allocation3], 1 }
 0x3c9   :  { %3511 = vsyncpa [#allocation3 + $0x1], 1 }
 0x3ca   :  { %3512 = vsyncpa [#allocation4], 1 }
 0x3cb   :  { %3514 = vsyncpa [#allocation4 + $0x1], 1 }

</bundles_post_ra>
